<compile_context>
chip_gen: v7x
topology: tpu7x:2x2x1
jax: 0.10.0
libtpu: 0.0.40
codegen_flags: <defaults>
</compile_context>

<pallas_src>
import functools

import jax
import jax.numpy as jnp
from jax import lax
from jax.experimental import pallas as pl
from jax.experimental.pallas import tpu as pltpu

LANE = 128
_NEG_SLOPE = 0.01  # PyTorch LeakyReLU default


def _round_up(x, m):
    return (x + m - 1) // m * m


def _vmem_limit(per_step_bytes):
    # double-buffered blocks + headroom, clamped to a budget that is safe on
    # v7x (64 MiB physical VMEM) as well as v5e/v6e (128 MiB).
    return int(min(max(2 * per_step_bytes + (4 << 20), 32 << 20), 48 << 20))


# ------------------------------ Pallas kernels ------------------------------ #
def _conv1_kernel(x_ref, w_ref, b_ref, o_ref, *, M, Wq, Mq):
    """Stride-2 3x3 conv (+bias+LeakyReLU) as 9 shifted bf16 GEMMs over 4 phases.

    x_ref: (1, 4*Mq, C_in)  bf16  -- 4 flattened even/odd phase images
    w_ref: (9, C_in, OP)    bf16  -- one (C_in, OP) matrix per tap
    b_ref: (1, OP)          f32
    o_ref: (1, M, OP)       bf16  -- "wide" layout, row width Wq = Wo+1
    """
    op = o_ref.shape[-1]
    # One aligned load of the whole block; per-tap shifts are cheap static
    # slices of the f32 copy, each tap cast back to bf16 right before the MXU.
    xv = x_ref[0].astype(jnp.float32)                      # (4*Mq, C_in)
    acc = jnp.zeros((M, op), jnp.float32)
    for kh in range(3):
        for kw in range(3):
            t = kh * 3 + kw
            phase = (kh % 2) * 2 + (kw % 2)
            off = phase * Mq + (kh // 2) * Wq + (kw // 2)
            a = xv[off:off + M].astype(jnp.bfloat16)       # (M, C_in)
            acc = acc + jnp.dot(a, w_ref[t],
                                preferred_element_type=jnp.float32)
    y = acc + b_ref[...]
    o_ref[0] = jnp.where(y > 0, y, _NEG_SLOPE * y).astype(o_ref.dtype)


def _conv2_kernel(y_ref, x_ref, wa_ref, wb_ref, b_ref, o_ref, *, M, Wp):
    """Stride-1 3x3 conv over the *virtual* concat [y1, x2] (+bias+LeakyReLU).

    The concat is never materialized: w2 is split into its y1-half (wa) and
    x2-half (wb); both accumulate into one f32 accumulator.
    y_ref: (1, Mq, OP)  bf16 flattened padded conv1 output
    x_ref: (1, Mq, C2)  bf16 flattened padded x2
    wa_ref: (9, OP, OP) bf16, wb_ref: (9, C2, OP) bf16, b_ref: (1, OP) f32
    o_ref: (1, M, OP)   f32  -- "wide" layout, row width Wp = Wo+2
    """
    op = o_ref.shape[-1]
    yv = y_ref[0].astype(jnp.float32)                      # (Mq, OP)
    xv = x_ref[0].astype(jnp.float32)                      # (Mq, C2)
    acc = jnp.zeros((M, op), jnp.float32)
    for kh in range(3):
        for kw in range(3):
            t = kh * 3 + kw
            off = kh * Wp + kw
            a = yv[off:off + M].astype(jnp.bfloat16)
            acc = acc + jnp.dot(a, wa_ref[t],
                                preferred_element_type=jnp.float32)
            c = xv[off:off + M].astype(jnp.bfloat16)
            acc = acc + jnp.dot(c, wb_ref[t],
                                preferred_element_type=jnp.float32)
    z = acc + b_ref[...]
    o_ref[0] = jnp.where(z > 0, z, _NEG_SLOPE * z).astype(o_ref.dtype)


# ------------------------------ pallas_call glue ---------------------------- #
def _conv1_call(ph_flat, w1t, b1p, *, M, Wq, Mq):
    N, Mtot, Cin = ph_flat.shape
    OP = w1t.shape[-1]
    kern = functools.partial(_conv1_kernel, M=M, Wq=Wq, Mq=Mq)
    blk = (Mtot * Cin * 2 + 9 * Cin * OP * 2 + OP * 4
           + M * OP * 2 + Mtot * Cin * 4 + M * OP * 4)   # blocks + f32 copies/acc
    flops = 2 * N * 9 * M * Cin * OP
    byts = (ph_flat.size + w1t.size) * 2 + b1p.size * 4 + N * M * OP * 2
    return pl.pallas_call(
        kern,
        out_shape=jax.ShapeDtypeStruct((N, M, OP), jnp.bfloat16),
        grid=(N,),
        in_specs=[
            pl.BlockSpec((1, Mtot, Cin), lambda b: (b, 0, 0)),
            pl.BlockSpec((9, Cin, OP), lambda b: (0, 0, 0)),
            pl.BlockSpec((1, OP), lambda b: (0, 0)),
        ],
        out_specs=pl.BlockSpec((1, M, OP), lambda b: (b, 0, 0)),
        compiler_params=pltpu.CompilerParams(
            dimension_semantics=("parallel",),
            vmem_limit_bytes=_vmem_limit(blk)),
        cost_estimate=pl.CostEstimate(flops=flops, transcendentals=0,
                                      bytes_accessed=byts),
    )(ph_flat, w1t, b1p)


def _conv2_call(y1f, x2f, w2a, w2b, b2p, *, M, Wp):
    N, Mq, OP = y1f.shape
    C2 = x2f.shape[-1]
    kern = functools.partial(_conv2_kernel, M=M, Wp=Wp)
    blk = (Mq * OP * 2 + Mq * C2 * 2 + 9 * OP * OP * 2 + 9 * C2 * OP * 2
           + OP * 4 + M * OP * 4 + Mq * (OP + C2) * 4 + M * OP * 4)
    flops = 2 * N * 9 * M * (OP + C2) * OP
    byts = ((y1f.size + x2f.size + w2a.size + w2b.size) * 2
            + b2p.size * 4 + N * M * OP * 4)
    return pl.pallas_call(
        kern,
        out_shape=jax.ShapeDtypeStruct((N, M, OP), jnp.float32),
        grid=(N,),
        in_specs=[
            pl.BlockSpec((1, Mq, OP), lambda b: (b, 0, 0)),
            pl.BlockSpec((1, Mq, C2), lambda b: (b, 0, 0)),
            pl.BlockSpec((9, OP, OP), lambda b: (0, 0, 0)),
            pl.BlockSpec((9, C2, OP), lambda b: (0, 0, 0)),
            pl.BlockSpec((1, OP), lambda b: (0, 0)),
        ],
        out_specs=pl.BlockSpec((1, M, OP), lambda b: (b, 0, 0)),
        compiler_params=pltpu.CompilerParams(
            dimension_semantics=("parallel",),
            vmem_limit_bytes=_vmem_limit(blk)),
        cost_estimate=pl.CostEstimate(flops=flops, transcendentals=0,
                                      bytes_accessed=byts),
    )(y1f, x2f, w2a, w2b, b2p)


# --------------------------------- forward ---------------------------------- #
def encode_conv_forward(x1_nchw, x2_nchw, w1, b1, w2, b2):
    N, Cin, H, W = x1_nchw.shape
    Cout = int(w1.shape[0])
    assert H % 2 == 0 and W % 2 == 0, "even spatial dims expected for stride-2"
    Ho, Wo = H // 2, W // 2
    assert x2_nchw.shape == (N, Cout, Ho, Wo)
    OP = _round_up(Cout, LANE)          # lane-dense padded output channels

    # ----------------------------- conv1 (stride 2) -------------------------
    x1 = jnp.transpose(x1_nchw, (0, 2, 3, 1))                  # NHWC
    xp = jnp.pad(x1, ((0, 0), (1, 1), (1, 1), (0, 0)))         # (N,H+2,W+2,C)
    Wq = Wo + 1
    Mq1 = (Ho + 2) * Wq
    M1 = Ho * Wq
    # 4 even/odd phases, each (N, Ho+1, Wq, Cin); +1 zero row keeps every
    # flattened tap slice [off, off+M1) in bounds.
    phases = [xp[:, ph::2, pw::2, :] for ph in (0, 1) for pw in (0, 1)]
    phs = jnp.stack(phases, axis=1)                            # (N,4,Ho+1,Wq,C)
    phs = jnp.pad(phs, ((0, 0), (0, 0), (0, 1), (0, 0), (0, 0)))
    ph_flat = phs.reshape(N, 4 * Mq1, Cin).astype(jnp.bfloat16)

    w1t = jnp.transpose(w1, (2, 3, 1, 0)).reshape(9, Cin, Cout)
    w1t = jnp.pad(w1t, ((0, 0), (0, 0), (0, OP - Cout))).astype(jnp.bfloat16)
    b1p = jnp.pad(b1, (0, OP - Cout)).reshape(1, OP).astype(jnp.float32)

    y1 = _conv1_call(ph_flat, w1t, b1p, M=M1, Wq=Wq, Mq=Mq1)   # (N, M1, OP)

    # ---------------- conv2 (stride 1, fused virtual concat) ----------------
    Wp2 = Wo + 2
    M2 = Ho * Wp2
    Mq2 = (Ho + 3) * Wp2
    y1s = y1.reshape(N, Ho, Wq, OP)[:, :, :Wo, :]              # drop wide col
    y1f = jnp.pad(y1s, ((0, 0), (1, 2), (1, 1), (0, 0))).reshape(N, Mq2, OP)

    x2 = jnp.transpose(x2_nchw, (0, 2, 3, 1))                  # (N,Ho,Wo,Cout)
    x2f = jnp.pad(x2, ((0, 0), (1, 2), (1, 1), (0, 0)))
    x2f = x2f.reshape(N, Mq2, Cout).astype(jnp.bfloat16)

    w2a = jnp.transpose(w2[:, :Cout], (2, 3, 1, 0)).reshape(9, Cout, Cout)
    w2a = jnp.pad(w2a, ((0, 0), (0, OP - Cout), (0, OP - Cout))).astype(jnp.bfloat16)
    w2b = jnp.transpose(w2[:, Cout:], (2, 3, 1, 0)).reshape(9, Cout, Cout)
    w2b = jnp.pad(w2b, ((0, 0), (0, 0), (0, OP - Cout))).astype(jnp.bfloat16)
    b2p = jnp.pad(b2, (0, OP - Cout)).reshape(1, OP).astype(jnp.float32)

    y2 = _conv2_call(y1f, x2f, w2a, w2b, b2p, M=M2, Wp=Wp2)    # (N, M2, OP) f32

    out = y2.reshape(N, Ho, Wp2, OP)[:, :, :Wo, :Cout]
    return jnp.transpose(out, (0, 3, 1, 2))                    # back to NCHW


# ----------------------------- pure-JAX reference ---------------------------- #
def _ref_forward(x1, x2, w1, b1, w2, b2):
    # Operands rounded to bf16 to mirror the kernel's MXU inputs (accumulation
    # stays f32), so the comparison tolerance can stay tight.
    r = lambda a: a.astype(jnp.bfloat16).astype(jnp.float32)

    def conv(x, w, b, stride):
        y = lax.conv_general_dilated(
            r(x), r(w), window_strides=(stride, stride),
            padding=((1, 1), (1, 1)),
            dimension_numbers=("NCHW", "OIHW", "NCHW"))
        y = y + b[None, :, None, None]
        return jnp.where(y > 0, y, _NEG_SLOPE * y)

    y1 = r(conv(x1, w1, b1, 2))          # kernel stores y1 as bf16
    return conv(jnp.concatenate([y1, x2], axis=1), w2, b2, 1)


# ------------------------------------ main ----------------------------------- #
if __name__ == "__main__":
    key = jax.random.PRNGKey(0)
    k1, k2, k3, k4, k5, k6 = jax.random.split(key, 6)

    in_channels, out_channels = 4, 8
    N, H, W = 2, 16, 16

    # inputs (PyTorch NCHW convention)
    x1 = jax.random.normal(k1, (N, in_channels, H, W), dtype=jnp.float32)
    x2 = jax.random.normal(k2, (N, out_channels, H // 2, W // 2), dtype=jnp.float32)

    # deterministic parameters (nn.Conv2d shapes)
    w1 = 0.1 * jax.random.normal(k3, (out_channels, in_channels, 3, 3), jnp.float32)
    b1 = 0.1 * jax.random.normal(k4, (out_channels,), jnp.float32)
    w2 = 0.1 * jax.random.normal(k5, (out_channels, 2 * out_channels, 3, 3), jnp.float32)
    b2 = 0.1 * jax.random.normal(k6, (out_channels,), jnp.float32)

    fwd = jax.jit(encode_conv_forward)
    out = jax.block_until_ready(fwd(x1, x2, w1, b1, w2, b2))
    ref = jax.block_until_ready(_ref_forward(x1, x2, w1, b1, w2, b2))

    assert out.shape == (N, out_channels, H // 2, W // 2), out.shape
    assert jnp.allclose(out, ref, atol=1e-2, rtol=1e-2), (
        "mismatch vs reference: max |diff| = %e"
        % float(jnp.max(jnp.abs(out - ref))))

    print("KERNEL_OK")
</pallas_src>

<mosaic_0001>
module attributes {stable_mosaic.version = 11 : i64} {
  func.func @_conv1_kernel(%arg0: i32, %arg1: memref<1x360x4xbf16, #tpu.memory_space<vmem>>, %arg2: memref<9x4x128xbf16, #tpu.memory_space<vmem>>, %arg3: memref<1x128xf32, #tpu.memory_space<vmem>>, %arg4: memref<1x72x128xbf16, #tpu.memory_space<vmem>>) attributes {dimension_semantics = [#tpu.dimension_semantics<parallel>], iteration_bounds = array<i64: 2>, scalar_prefetch = 0 : i64, scratch_operands = 0 : i64, tpu.core_type = #tpu.core_type<tc>, window_params = [{transform_indices = @transform_0, window_bounds = array<i64: 1, 360, 4>}, {pipeline_mode = #tpu.pipeline_mode<synchronous>, transform_indices = @transform_1, window_bounds = array<i64: 9, 4, 128>}, {pipeline_mode = #tpu.pipeline_mode<synchronous>, transform_indices = @transform_2, window_bounds = array<i64: 1, 128>}, {transform_indices = @transform_3, window_bounds = array<i64: 1, 72, 128>}]} {
    %c0 = arith.constant 0 : index
    %c0_0 = arith.constant 0 : index
    %c0_1 = arith.constant 0 : index
    %0 = vector.load %arg1[%c0, %c0_0, %c0_1] : memref<1x360x4xbf16, #tpu.memory_space<vmem>>, vector<1x360x4xbf16>
    %1 = vector.shape_cast %0 : vector<1x360x4xbf16> to vector<360x4xbf16>
    %2 = arith.extf %1 : vector<360x4xbf16> to vector<360x4xf32>
    %cst = arith.constant 0.000000e+00 : f32
    %3 = vector.broadcast %cst : f32 to vector<72x128xf32>
    %4 = vector.extract_strided_slice %2 {offsets = [0, 0], sizes = [72, 4], strides = [1, 1]} : vector<360x4xf32> to vector<72x4xf32>
    %5 = arith.truncf %4 : vector<72x4xf32> to vector<72x4xbf16>
    %c0_2 = arith.constant 0 : index
    %c0_3 = arith.constant 0 : index
    %c0_4 = arith.constant 0 : index
    %6 = vector.load %arg2[%c0_2, %c0_3, %c0_4] : memref<9x4x128xbf16, #tpu.memory_space<vmem>>, vector<1x4x128xbf16>
    %7 = vector.shape_cast %6 : vector<1x4x128xbf16> to vector<4x128xbf16>
    %cst_5 = arith.constant dense<0.000000e+00> : vector<72x128xf32>
    %8 = tpu.matmul %5, %7, %cst_5 {dimension_numbers = #tpu.dot_dimension_numbers<[1], [0], [0], [1], [0, 0, 1, 1], [], []>} : vector<72x4xbf16>, vector<4x128xbf16>, vector<72x128xf32> -> vector<72x128xf32>
    %9 = arith.addf %3, %8 : vector<72x128xf32>
    %10 = vector.extract_strided_slice %2 {offsets = [90, 0], sizes = [72, 4], strides = [1, 1]} : vector<360x4xf32> to vector<72x4xf32>
    %11 = arith.truncf %10 : vector<72x4xf32> to vector<72x4xbf16>
    %c1 = arith.constant 1 : index
    %c0_6 = arith.constant 0 : index
    %c0_7 = arith.constant 0 : index
    %12 = vector.load %arg2[%c1, %c0_6, %c0_7] : memref<9x4x128xbf16, #tpu.memory_space<vmem>>, vector<1x4x128xbf16>
    %13 = vector.shape_cast %12 : vector<1x4x128xbf16> to vector<4x128xbf16>
    %cst_8 = arith.constant dense<0.000000e+00> : vector<72x128xf32>
    %14 = tpu.matmul %11, %13, %cst_8 {dimension_numbers = #tpu.dot_dimension_numbers<[1], [0], [0], [1], [0, 0, 1, 1], [], []>} : vector<72x4xbf16>, vector<4x128xbf16>, vector<72x128xf32> -> vector<72x128xf32>
    %15 = arith.addf %9, %14 : vector<72x128xf32>
    %16 = vector.extract_strided_slice %2 {offsets = [1, 0], sizes = [72, 4], strides = [1, 1]} : vector<360x4xf32> to vector<72x4xf32>
    %17 = arith.truncf %16 : vector<72x4xf32> to vector<72x4xbf16>
    %c2 = arith.constant 2 : index
    %c0_9 = arith.constant 0 : index
    %c0_10 = arith.constant 0 : index
    %18 = vector.load %arg2[%c2, %c0_9, %c0_10] : memref<9x4x128xbf16, #tpu.memory_space<vmem>>, vector<1x4x128xbf16>
    %19 = vector.shape_cast %18 : vector<1x4x128xbf16> to vector<4x128xbf16>
    %cst_11 = arith.constant dense<0.000000e+00> : vector<72x128xf32>
    %20 = tpu.matmul %17, %19, %cst_11 {dimension_numbers = #tpu.dot_dimension_numbers<[1], [0], [0], [1], [0, 0, 1, 1], [], []>} : vector<72x4xbf16>, vector<4x128xbf16>, vector<72x128xf32> -> vector<72x128xf32>
    %21 = arith.addf %15, %20 : vector<72x128xf32>
    %22 = vector.extract_strided_slice %2 {offsets = [180, 0], sizes = [72, 4], strides = [1, 1]} : vector<360x4xf32> to vector<72x4xf32>
    %23 = arith.truncf %22 : vector<72x4xf32> to vector<72x4xbf16>
    %c3 = arith.constant 3 : index
    %c0_12 = arith.constant 0 : index
    %c0_13 = arith.constant 0 : index
    %24 = vector.load %arg2[%c3, %c0_12, %c0_13] : memref<9x4x128xbf16, #tpu.memory_space<vmem>>, vector<1x4x128xbf16>
    %25 = vector.shape_cast %24 : vector<1x4x128xbf16> to vector<4x128xbf16>
    %cst_14 = arith.constant dense<0.000000e+00> : vector<72x128xf32>
    %26 = tpu.matmul %23, %25, %cst_14 {dimension_numbers = #tpu.dot_dimension_numbers<[1], [0], [0], [1], [0, 0, 1, 1], [], []>} : vector<72x4xbf16>, vector<4x128xbf16>, vector<72x128xf32> -> vector<72x128xf32>
    %27 = arith.addf %21, %26 : vector<72x128xf32>
    %28 = vector.extract_strided_slice %2 {offsets = [270, 0], sizes = [72, 4], strides = [1, 1]} : vector<360x4xf32> to vector<72x4xf32>
    %29 = arith.truncf %28 : vector<72x4xf32> to vector<72x4xbf16>
    %c4 = arith.constant 4 : index
    %c0_15 = arith.constant 0 : index
    %c0_16 = arith.constant 0 : index
    %30 = vector.load %arg2[%c4, %c0_15, %c0_16] : memref<9x4x128xbf16, #tpu.memory_space<vmem>>, vector<1x4x128xbf16>
    %31 = vector.shape_cast %30 : vector<1x4x128xbf16> to vector<4x128xbf16>
    %cst_17 = arith.constant dense<0.000000e+00> : vector<72x128xf32>
    %32 = tpu.matmul %29, %31, %cst_17 {dimension_numbers = #tpu.dot_dimension_numbers<[1], [0], [0], [1], [0, 0, 1, 1], [], []>} : vector<72x4xbf16>, vector<4x128xbf16>, vector<72x128xf32> -> vector<72x128xf32>
    %33 = arith.addf %27, %32 : vector<72x128xf32>
    %34 = vector.extract_strided_slice %2 {offsets = [181, 0], sizes = [72, 4], strides = [1, 1]} : vector<360x4xf32> to vector<72x4xf32>
    %35 = arith.truncf %34 : vector<72x4xf32> to vector<72x4xbf16>
    %c5 = arith.constant 5 : index
    %c0_18 = arith.constant 0 : index
    %c0_19 = arith.constant 0 : index
    %36 = vector.load %arg2[%c5, %c0_18, %c0_19] : memref<9x4x128xbf16, #tpu.memory_space<vmem>>, vector<1x4x128xbf16>
    %37 = vector.shape_cast %36 : vector<1x4x128xbf16> to vector<4x128xbf16>
    %cst_20 = arith.constant dense<0.000000e+00> : vector<72x128xf32>
    %38 = tpu.matmul %35, %37, %cst_20 {dimension_numbers = #tpu.dot_dimension_numbers<[1], [0], [0], [1], [0, 0, 1, 1], [], []>} : vector<72x4xbf16>, vector<4x128xbf16>, vector<72x128xf32> -> vector<72x128xf32>
    %39 = arith.addf %33, %38 : vector<72x128xf32>
    %40 = vector.extract_strided_slice %2 {offsets = [9, 0], sizes = [72, 4], strides = [1, 1]} : vector<360x4xf32> to vector<72x4xf32>
    %41 = arith.truncf %40 : vector<72x4xf32> to vector<72x4xbf16>
    %c6 = arith.constant 6 : index
    %c0_21 = arith.constant 0 : index
    %c0_22 = arith.constant 0 : index
    %42 = vector.load %arg2[%c6, %c0_21, %c0_22] : memref<9x4x128xbf16, #tpu.memory_space<vmem>>, vector<1x4x128xbf16>
    %43 = vector.shape_cast %42 : vector<1x4x128xbf16> to vector<4x128xbf16>
    %cst_23 = arith.constant dense<0.000000e+00> : vector<72x128xf32>
    %44 = tpu.matmul %41, %43, %cst_23 {dimension_numbers = #tpu.dot_dimension_numbers<[1], [0], [0], [1], [0, 0, 1, 1], [], []>} : vector<72x4xbf16>, vector<4x128xbf16>, vector<72x128xf32> -> vector<72x128xf32>
    %45 = arith.addf %39, %44 : vector<72x128xf32>
    %46 = vector.extract_strided_slice %2 {offsets = [99, 0], sizes = [72, 4], strides = [1, 1]} : vector<360x4xf32> to vector<72x4xf32>
    %47 = arith.truncf %46 : vector<72x4xf32> to vector<72x4xbf16>
    %c7 = arith.constant 7 : index
    %c0_24 = arith.constant 0 : index
    %c0_25 = arith.constant 0 : index
    %48 = vector.load %arg2[%c7, %c0_24, %c0_25] : memref<9x4x128xbf16, #tpu.memory_space<vmem>>, vector<1x4x128xbf16>
    %49 = vector.shape_cast %48 : vector<1x4x128xbf16> to vector<4x128xbf16>
    %cst_26 = arith.constant dense<0.000000e+00> : vector<72x128xf32>
    %50 = tpu.matmul %47, %49, %cst_26 {dimension_numbers = #tpu.dot_dimension_numbers<[1], [0], [0], [1], [0, 0, 1, 1], [], []>} : vector<72x4xbf16>, vector<4x128xbf16>, vector<72x128xf32> -> vector<72x128xf32>
    %51 = arith.addf %45, %50 : vector<72x128xf32>
    %52 = vector.extract_strided_slice %2 {offsets = [10, 0], sizes = [72, 4], strides = [1, 1]} : vector<360x4xf32> to vector<72x4xf32>
    %53 = arith.truncf %52 : vector<72x4xf32> to vector<72x4xbf16>
    %c8 = arith.constant 8 : index
    %c0_27 = arith.constant 0 : index
    %c0_28 = arith.constant 0 : index
    %54 = vector.load %arg2[%c8, %c0_27, %c0_28] : memref<9x4x128xbf16, #tpu.memory_space<vmem>>, vector<1x4x128xbf16>
    %55 = vector.shape_cast %54 : vector<1x4x128xbf16> to vector<4x128xbf16>
    %cst_29 = arith.constant dense<0.000000e+00> : vector<72x128xf32>
    %56 = tpu.matmul %53, %55, %cst_29 {dimension_numbers = #tpu.dot_dimension_numbers<[1], [0], [0], [1], [0, 0, 1, 1], [], []>} : vector<72x4xbf16>, vector<4x128xbf16>, vector<72x128xf32> -> vector<72x128xf32>
    %57 = arith.addf %51, %56 : vector<72x128xf32>
    %c0_30 = arith.constant 0 : index
    %c0_31 = arith.constant 0 : index
    %58 = vector.load %arg3[%c0_30, %c0_31] : memref<1x128xf32, #tpu.memory_space<vmem>>, vector<1x128xf32>
    %59 = vector.broadcast %58 : vector<1x128xf32> to vector<72x128xf32>
    %60 = arith.addf %57, %59 : vector<72x128xf32>
    %cst_32 = arith.constant 0.000000e+00 : f32
    %61 = vector.broadcast %cst_32 : f32 to vector<72x128xf32>
    %62 = arith.cmpf ogt, %60, %61 : vector<72x128xf32>
    %cst_33 = arith.constant 0.00999999977 : f32
    %63 = vector.broadcast %cst_33 : f32 to vector<72x128xf32>
    %64 = arith.mulf %63, %60 : vector<72x128xf32>
    %65 = arith.select %62, %60, %64 : vector<72x128xi1>, vector<72x128xf32>
    %66 = arith.truncf %65 : vector<72x128xf32> to vector<72x128xbf16>
    %c0_34 = arith.constant 0 : index
    %c0_35 = arith.constant 0 : index
    %c0_36 = arith.constant 0 : index
    %67 = vector.load %arg4[%c0_34, %c0_35, %c0_36] : memref<1x72x128xbf16, #tpu.memory_space<vmem>>, vector<1x72x128xbf16>
    %68 = vector.shape_cast %67 : vector<1x72x128xbf16> to vector<72x128xbf16>
    %69 = vector.shape_cast %66 : vector<72x128xbf16> to vector<1x72x128xbf16>
    tpu.vector_store %arg4[%c0_34, %c0_35, %c0_36], %69 {strides = array<i32>} : memref<1x72x128xbf16, #tpu.memory_space<vmem>>, vector<1x72x128xbf16>,
    return
  }
  func.func @transform_0(%arg0: i32) -> (i32, i32, i32) {
    %c0_i32 = arith.constant 0 : i32
    %c0_i32_0 = arith.constant 0 : i32
    %c0_i32_1 = arith.constant 0 : i32
    return %arg0, %c0_i32, %c0_i32_0 : i32, i32, i32
  }
  func.func @transform_1(%arg0: i32) -> (i32, i32, i32) {
    %c0_i32 = arith.constant 0 : i32
    %c0_i32_0 = arith.constant 0 : i32
    %c0_i32_1 = arith.constant 0 : i32
    %c0_i32_2 = arith.constant 0 : i32
    return %c0_i32, %c0_i32_0, %c0_i32_1 : i32, i32, i32
  }
  func.func @transform_2(%arg0: i32) -> (i32, i32) {
    %c0_i32 = arith.constant 0 : i32
    %c0_i32_0 = arith.constant 0 : i32
    %c0_i32_1 = arith.constant 0 : i32
    return %c0_i32, %c0_i32_0 : i32, i32
  }
  func.func @transform_3(%arg0: i32) -> (i32, i32, i32) {
    %c0_i32 = arith.constant 0 : i32
    %c0_i32_0 = arith.constant 0 : i32
    %c0_i32_1 = arith.constant 0 : i32
    return %arg0, %c0_i32, %c0_i32_0 : i32, i32, i32
  }
}

module attributes {stable_mosaic.version = 11 : i64} {
  func.func @_conv2_kernel(%arg0: i32, %arg1: memref<1x110x128xbf16, #tpu.memory_space<vmem>>, %arg2: memref<1x110x8xbf16, #tpu.memory_space<vmem>>, %arg3: memref<9x128x128xbf16, #tpu.memory_space<vmem>>, %arg4: memref<9x8x128xbf16, #tpu.memory_space<vmem>>, %arg5: memref<1x128xf32, #tpu.memory_space<vmem>>, %arg6: memref<1x80x128xf32, #tpu.memory_space<vmem>>) attributes {dimension_semantics = [#tpu.dimension_semantics<parallel>], iteration_bounds = array<i64: 2>, scalar_prefetch = 0 : i64, scratch_operands = 0 : i64, tpu.core_type = #tpu.core_type<tc>, window_params = [{transform_indices = @transform_0, window_bounds = array<i64: 1, 110, 128>}, {transform_indices = @transform_1, window_bounds = array<i64: 1, 110, 8>}, {pipeline_mode = #tpu.pipeline_mode<synchronous>, transform_indices = @transform_2, window_bounds = array<i64: 9, 128, 128>}, {pipeline_mode = #tpu.pipeline_mode<synchronous>, transform_indices = @transform_3, window_bounds = array<i64: 9, 8, 128>}, {pipeline_mode = #tpu.pipeline_mode<synchronous>, transform_indices = @transform_4, window_bounds = array<i64: 1, 128>}, {transform_indices = @transform_5, window_bounds = array<i64: 1, 80, 128>}]} {
    %c0 = arith.constant 0 : index
    %c0_0 = arith.constant 0 : index
    %c0_1 = arith.constant 0 : index
    %0 = vector.load %arg1[%c0, %c0_0, %c0_1] : memref<1x110x128xbf16, #tpu.memory_space<vmem>>, vector<1x110x128xbf16>
    %1 = vector.shape_cast %0 : vector<1x110x128xbf16> to vector<110x128xbf16>
    %2 = arith.extf %1 : vector<110x128xbf16> to vector<110x128xf32>
    %c0_2 = arith.constant 0 : index
    %c0_3 = arith.constant 0 : index
    %c0_4 = arith.constant 0 : index
    %3 = vector.load %arg2[%c0_2, %c0_3, %c0_4] : memref<1x110x8xbf16, #tpu.memory_space<vmem>>, vector<1x110x8xbf16>
    %4 = vector.shape_cast %3 : vector<1x110x8xbf16> to vector<110x8xbf16>
    %5 = arith.extf %4 : vector<110x8xbf16> to vector<110x8xf32>
    %cst = arith.constant 0.000000e+00 : f32
    %6 = vector.broadcast %cst : f32 to vector<80x128xf32>
    %7 = vector.extract_strided_slice %2 {offsets = [0, 0], sizes = [80, 128], strides = [1, 1]} : vector<110x128xf32> to vector<80x128xf32>
    %8 = arith.truncf %7 : vector<80x128xf32> to vector<80x128xbf16>
    %c0_5 = arith.constant 0 : index
    %c0_6 = arith.constant 0 : index
    %c0_7 = arith.constant 0 : index
    %9 = vector.load %arg3[%c0_5, %c0_6, %c0_7] : memref<9x128x128xbf16, #tpu.memory_space<vmem>>, vector<1x128x128xbf16>
    %10 = vector.shape_cast %9 : vector<1x128x128xbf16> to vector<128x128xbf16>
    %cst_8 = arith.constant dense<0.000000e+00> : vector<80x128xf32>
    %11 = tpu.matmul %8, %10, %cst_8 {dimension_numbers = #tpu.dot_dimension_numbers<[1], [0], [0], [1], [0, 0, 1, 1], [], []>} : vector<80x128xbf16>, vector<128x128xbf16>, vector<80x128xf32> -> vector<80x128xf32>
    %12 = arith.addf %6, %11 : vector<80x128xf32>
    %13 = vector.extract_strided_slice %5 {offsets = [0, 0], sizes = [80, 8], strides = [1, 1]} : vector<110x8xf32> to vector<80x8xf32>
    %14 = arith.truncf %13 : vector<80x8xf32> to vector<80x8xbf16>
    %c0_9 = arith.constant 0 : index
    %c0_10 = arith.constant 0 : index
    %c0_11 = arith.constant 0 : index
    %15 = vector.load %arg4[%c0_9, %c0_10, %c0_11] : memref<9x8x128xbf16, #tpu.memory_space<vmem>>, vector<1x8x128xbf16>
    %16 = vector.shape_cast %15 : vector<1x8x128xbf16> to vector<8x128xbf16>
    %cst_12 = arith.constant dense<0.000000e+00> : vector<80x128xf32>
    %17 = tpu.matmul %14, %16, %cst_12 {dimension_numbers = #tpu.dot_dimension_numbers<[1], [0], [0], [1], [0, 0, 1, 1], [], []>} : vector<80x8xbf16>, vector<8x128xbf16>, vector<80x128xf32> -> vector<80x128xf32>
    %18 = arith.addf %12, %17 : vector<80x128xf32>
    %19 = vector.extract_strided_slice %2 {offsets = [1, 0], sizes = [80, 128], strides = [1, 1]} : vector<110x128xf32> to vector<80x128xf32>
    %20 = arith.truncf %19 : vector<80x128xf32> to vector<80x128xbf16>
    %c1 = arith.constant 1 : index
    %c0_13 = arith.constant 0 : index
    %c0_14 = arith.constant 0 : index
    %21 = vector.load %arg3[%c1, %c0_13, %c0_14] : memref<9x128x128xbf16, #tpu.memory_space<vmem>>, vector<1x128x128xbf16>
    %22 = vector.shape_cast %21 : vector<1x128x128xbf16> to vector<128x128xbf16>
    %cst_15 = arith.constant dense<0.000000e+00> : vector<80x128xf32>
    %23 = tpu.matmul %20, %22, %cst_15 {dimension_numbers = #tpu.dot_dimension_numbers<[1], [0], [0], [1], [0, 0, 1, 1], [], []>} : vector<80x128xbf16>, vector<128x128xbf16>, vector<80x128xf32> -> vector<80x128xf32>
    %24 = arith.addf %18, %23 : vector<80x128xf32>
    %25 = vector.extract_strided_slice %5 {offsets = [1, 0], sizes = [80, 8], strides = [1, 1]} : vector<110x8xf32> to vector<80x8xf32>
    %26 = arith.truncf %25 : vector<80x8xf32> to vector<80x8xbf16>
    %c1_16 = arith.constant 1 : index
    %c0_17 = arith.constant 0 : index
    %c0_18 = arith.constant 0 : index
    %27 = vector.load %arg4[%c1_16, %c0_17, %c0_18] : memref<9x8x128xbf16, #tpu.memory_space<vmem>>, vector<1x8x128xbf16>
    %28 = vector.shape_cast %27 : vector<1x8x128xbf16> to vector<8x128xbf16>
    %cst_19 = arith.constant dense<0.000000e+00> : vector<80x128xf32>
    %29 = tpu.matmul %26, %28, %cst_19 {dimension_numbers = #tpu.dot_dimension_numbers<[1], [0], [0], [1], [0, 0, 1, 1], [], []>} : vector<80x8xbf16>, vector<8x128xbf16>, vector<80x128xf32> -> vector<80x128xf32>
    %30 = arith.addf %24, %29 : vector<80x128xf32>
    %31 = vector.extract_strided_slice %2 {offsets = [2, 0], sizes = [80, 128], strides = [1, 1]} : vector<110x128xf32> to vector<80x128xf32>
    %32 = arith.truncf %31 : vector<80x128xf32> to vector<80x128xbf16>
    %c2 = arith.constant 2 : index
    %c0_20 = arith.constant 0 : index
    %c0_21 = arith.constant 0 : index
    %33 = vector.load %arg3[%c2, %c0_20, %c0_21] : memref<9x128x128xbf16, #tpu.memory_space<vmem>>, vector<1x128x128xbf16>
    %34 = vector.shape_cast %33 : vector<1x128x128xbf16> to vector<128x128xbf16>
    %cst_22 = arith.constant dense<0.000000e+00> : vector<80x128xf32>
    %35 = tpu.matmul %32, %34, %cst_22 {dimension_numbers = #tpu.dot_dimension_numbers<[1], [0], [0], [1], [0, 0, 1, 1], [], []>} : vector<80x128xbf16>, vector<128x128xbf16>, vector<80x128xf32> -> vector<80x128xf32>
    %36 = arith.addf %30, %35 : vector<80x128xf32>
    %37 = vector.extract_strided_slice %5 {offsets = [2, 0], sizes = [80, 8], strides = [1, 1]} : vector<110x8xf32> to vector<80x8xf32>
    %38 = arith.truncf %37 : vector<80x8xf32> to vector<80x8xbf16>
    %c2_23 = arith.constant 2 : index
    %c0_24 = arith.constant 0 : index
    %c0_25 = arith.constant 0 : index
    %39 = vector.load %arg4[%c2_23, %c0_24, %c0_25] : memref<9x8x128xbf16, #tpu.memory_space<vmem>>, vector<1x8x128xbf16>
    %40 = vector.shape_cast %39 : vector<1x8x128xbf16> to vector<8x128xbf16>
    %cst_26 = arith.constant dense<0.000000e+00> : vector<80x128xf32>
    %41 = tpu.matmul %38, %40, %cst_26 {dimension_numbers = #tpu.dot_dimension_numbers<[1], [0], [0], [1], [0, 0, 1, 1], [], []>} : vector<80x8xbf16>, vector<8x128xbf16>, vector<80x128xf32> -> vector<80x128xf32>
    %42 = arith.addf %36, %41 : vector<80x128xf32>
    %43 = vector.extract_strided_slice %2 {offsets = [10, 0], sizes = [80, 128], strides = [1, 1]} : vector<110x128xf32> to vector<80x128xf32>
    %44 = arith.truncf %43 : vector<80x128xf32> to vector<80x128xbf16>
    %c3 = arith.constant 3 : index
    %c0_27 = arith.constant 0 : index
    %c0_28 = arith.constant 0 : index
    %45 = vector.load %arg3[%c3, %c0_27, %c0_28] : memref<9x128x128xbf16, #tpu.memory_space<vmem>>, vector<1x128x128xbf16>
    %46 = vector.shape_cast %45 : vector<1x128x128xbf16> to vector<128x128xbf16>
    %cst_29 = arith.constant dense<0.000000e+00> : vector<80x128xf32>
    %47 = tpu.matmul %44, %46, %cst_29 {dimension_numbers = #tpu.dot_dimension_numbers<[1], [0], [0], [1], [0, 0, 1, 1], [], []>} : vector<80x128xbf16>, vector<128x128xbf16>, vector<80x128xf32> -> vector<80x128xf32>
    %48 = arith.addf %42, %47 : vector<80x128xf32>
    %49 = vector.extract_strided_slice %5 {offsets = [10, 0], sizes = [80, 8], strides = [1, 1]} : vector<110x8xf32> to vector<80x8xf32>
    %50 = arith.truncf %49 : vector<80x8xf32> to vector<80x8xbf16>
    %c3_30 = arith.constant 3 : index
    %c0_31 = arith.constant 0 : index
    %c0_32 = arith.constant 0 : index
    %51 = vector.load %arg4[%c3_30, %c0_31, %c0_32] : memref<9x8x128xbf16, #tpu.memory_space<vmem>>, vector<1x8x128xbf16>
    %52 = vector.shape_cast %51 : vector<1x8x128xbf16> to vector<8x128xbf16>
    %cst_33 = arith.constant dense<0.000000e+00> : vector<80x128xf32>
    %53 = tpu.matmul %50, %52, %cst_33 {dimension_numbers = #tpu.dot_dimension_numbers<[1], [0], [0], [1], [0, 0, 1, 1], [], []>} : vector<80x8xbf16>, vector<8x128xbf16>, vector<80x128xf32> -> vector<80x128xf32>
    %54 = arith.addf %48, %53 : vector<80x128xf32>
    %55 = vector.extract_strided_slice %2 {offsets = [11, 0], sizes = [80, 128], strides = [1, 1]} : vector<110x128xf32> to vector<80x128xf32>
    %56 = arith.truncf %55 : vector<80x128xf32> to vector<80x128xbf16>
    %c4 = arith.constant 4 : index
    %c0_34 = arith.constant 0 : index
    %c0_35 = arith.constant 0 : index
    %57 = vector.load %arg3[%c4, %c0_34, %c0_35] : memref<9x128x128xbf16, #tpu.memory_space<vmem>>, vector<1x128x128xbf16>
    %58 = vector.shape_cast %57 : vector<1x128x128xbf16> to vector<128x128xbf16>
    %cst_36 = arith.constant dense<0.000000e+00> : vector<80x128xf32>
    %59 = tpu.matmul %56, %58, %cst_36 {dimension_numbers = #tpu.dot_dimension_numbers<[1], [0], [0], [1], [0, 0, 1, 1], [], []>} : vector<80x128xbf16>, vector<128x128xbf16>, vector<80x128xf32> -> vector<80x128xf32>
    %60 = arith.addf %54, %59 : vector<80x128xf32>
    %61 = vector.extract_strided_slice %5 {offsets = [11, 0], sizes = [80, 8], strides = [1, 1]} : vector<110x8xf32> to vector<80x8xf32>
    %62 = arith.truncf %61 : vector<80x8xf32> to vector<80x8xbf16>
    %c4_37 = arith.constant 4 : index
    %c0_38 = arith.constant 0 : index
    %c0_39 = arith.constant 0 : index
    %63 = vector.load %arg4[%c4_37, %c0_38, %c0_39] : memref<9x8x128xbf16, #tpu.memory_space<vmem>>, vector<1x8x128xbf16>
    %64 = vector.shape_cast %63 : vector<1x8x128xbf16> to vector<8x128xbf16>
    %cst_40 = arith.constant dense<0.000000e+00> : vector<80x128xf32>
    %65 = tpu.matmul %62, %64, %cst_40 {dimension_numbers = #tpu.dot_dimension_numbers<[1], [0], [0], [1], [0, 0, 1, 1], [], []>} : vector<80x8xbf16>, vector<8x128xbf16>, vector<80x128xf32> -> vector<80x128xf32>
    %66 = arith.addf %60, %65 : vector<80x128xf32>
    %67 = vector.extract_strided_slice %2 {offsets = [12, 0], sizes = [80, 128], strides = [1, 1]} : vector<110x128xf32> to vector<80x128xf32>
    %68 = arith.truncf %67 : vector<80x128xf32> to vector<80x128xbf16>
    %c5 = arith.constant 5 : index
    %c0_41 = arith.constant 0 : index
    %c0_42 = arith.constant 0 : index
    %69 = vector.load %arg3[%c5, %c0_41, %c0_42] : memref<9x128x128xbf16, #tpu.memory_space<vmem>>, vector<1x128x128xbf16>
    %70 = vector.shape_cast %69 : vector<1x128x128xbf16> to vector<128x128xbf16>
    %cst_43 = arith.constant dense<0.000000e+00> : vector<80x128xf32>
    %71 = tpu.matmul %68, %70, %cst_43 {dimension_numbers = #tpu.dot_dimension_numbers<[1], [0], [0], [1], [0, 0, 1, 1], [], []>} : vector<80x128xbf16>, vector<128x128xbf16>, vector<80x128xf32> -> vector<80x128xf32>
    %72 = arith.addf %66, %71 : vector<80x128xf32>
    %73 = vector.extract_strided_slice %5 {offsets = [12, 0], sizes = [80, 8], strides = [1, 1]} : vector<110x8xf32> to vector<80x8xf32>
    %74 = arith.truncf %73 : vector<80x8xf32> to vector<80x8xbf16>
    %c5_44 = arith.constant 5 : index
    %c0_45 = arith.constant 0 : index
    %c0_46 = arith.constant 0 : index
    %75 = vector.load %arg4[%c5_44, %c0_45, %c0_46] : memref<9x8x128xbf16, #tpu.memory_space<vmem>>, vector<1x8x128xbf16>
    %76 = vector.shape_cast %75 : vector<1x8x128xbf16> to vector<8x128xbf16>
    %cst_47 = arith.constant dense<0.000000e+00> : vector<80x128xf32>
    %77 = tpu.matmul %74, %76, %cst_47 {dimension_numbers = #tpu.dot_dimension_numbers<[1], [0], [0], [1], [0, 0, 1, 1], [], []>} : vector<80x8xbf16>, vector<8x128xbf16>, vector<80x128xf32> -> vector<80x128xf32>
    %78 = arith.addf %72, %77 : vector<80x128xf32>
    %79 = vector.extract_strided_slice %2 {offsets = [20, 0], sizes = [80, 128], strides = [1, 1]} : vector<110x128xf32> to vector<80x128xf32>
    %80 = arith.truncf %79 : vector<80x128xf32> to vector<80x128xbf16>
    %c6 = arith.constant 6 : index
    %c0_48 = arith.constant 0 : index
    %c0_49 = arith.constant 0 : index
    %81 = vector.load %arg3[%c6, %c0_48, %c0_49] : memref<9x128x128xbf16, #tpu.memory_space<vmem>>, vector<1x128x128xbf16>
    %82 = vector.shape_cast %81 : vector<1x128x128xbf16> to vector<128x128xbf16>
    %cst_50 = arith.constant dense<0.000000e+00> : vector<80x128xf32>
    %83 = tpu.matmul %80, %82, %cst_50 {dimension_numbers = #tpu.dot_dimension_numbers<[1], [0], [0], [1], [0, 0, 1, 1], [], []>} : vector<80x128xbf16>, vector<128x128xbf16>, vector<80x128xf32> -> vector<80x128xf32>
    %84 = arith.addf %78, %83 : vector<80x128xf32>
    %85 = vector.extract_strided_slice %5 {offsets = [20, 0], sizes = [80, 8], strides = [1, 1]} : vector<110x8xf32> to vector<80x8xf32>
    %86 = arith.truncf %85 : vector<80x8xf32> to vector<80x8xbf16>
    %c6_51 = arith.constant 6 : index
    %c0_52 = arith.constant 0 : index
    %c0_53 = arith.constant 0 : index
    %87 = vector.load %arg4[%c6_51, %c0_52, %c0_53] : memref<9x8x128xbf16, #tpu.memory_space<vmem>>, vector<1x8x128xbf16>
    %88 = vector.shape_cast %87 : vector<1x8x128xbf16> to vector<8x128xbf16>
    %cst_54 = arith.constant dense<0.000000e+00> : vector<80x128xf32>
    %89 = tpu.matmul %86, %88, %cst_54 {dimension_numbers = #tpu.dot_dimension_numbers<[1], [0], [0], [1], [0, 0, 1, 1], [], []>} : vector<80x8xbf16>, vector<8x128xbf16>, vector<80x128xf32> -> vector<80x128xf32>
    %90 = arith.addf %84, %89 : vector<80x128xf32>
    %91 = vector.extract_strided_slice %2 {offsets = [21, 0], sizes = [80, 128], strides = [1, 1]} : vector<110x128xf32> to vector<80x128xf32>
    %92 = arith.truncf %91 : vector<80x128xf32> to vector<80x128xbf16>
    %c7 = arith.constant 7 : index
    %c0_55 = arith.constant 0 : index
    %c0_56 = arith.constant 0 : index
    %93 = vector.load %arg3[%c7, %c0_55, %c0_56] : memref<9x128x128xbf16, #tpu.memory_space<vmem>>, vector<1x128x128xbf16>
    %94 = vector.shape_cast %93 : vector<1x128x128xbf16> to vector<128x128xbf16>
    %cst_57 = arith.constant dense<0.000000e+00> : vector<80x128xf32>
    %95 = tpu.matmul %92, %94, %cst_57 {dimension_numbers = #tpu.dot_dimension_numbers<[1], [0], [0], [1], [0, 0, 1, 1], [], []>} : vector<80x128xbf16>, vector<128x128xbf16>, vector<80x128xf32> -> vector<80x128xf32>
    %96 = arith.addf %90, %95 : vector<80x128xf32>
    %97 = vector.extract_strided_slice %5 {offsets = [21, 0], sizes = [80, 8], strides = [1, 1]} : vector<110x8xf32> to vector<80x8xf32>
    %98 = arith.truncf %97 : vector<80x8xf32> to vector<80x8xbf16>
    %c7_58 = arith.constant 7 : index
    %c0_59 = arith.constant 0 : index
    %c0_60 = arith.constant 0 : index
    %99 = vector.load %arg4[%c7_58, %c0_59, %c0_60] : memref<9x8x128xbf16, #tpu.memory_space<vmem>>, vector<1x8x128xbf16>
    %100 = vector.shape_cast %99 : vector<1x8x128xbf16> to vector<8x128xbf16>
    %cst_61 = arith.constant dense<0.000000e+00> : vector<80x128xf32>
    %101 = tpu.matmul %98, %100, %cst_61 {dimension_numbers = #tpu.dot_dimension_numbers<[1], [0], [0], [1], [0, 0, 1, 1], [], []>} : vector<80x8xbf16>, vector<8x128xbf16>, vector<80x128xf32> -> vector<80x128xf32>
    %102 = arith.addf %96, %101 : vector<80x128xf32>
    %103 = vector.extract_strided_slice %2 {offsets = [22, 0], sizes = [80, 128], strides = [1, 1]} : vector<110x128xf32> to vector<80x128xf32>
    %104 = arith.truncf %103 : vector<80x128xf32> to vector<80x128xbf16>
    %c8 = arith.constant 8 : index
    %c0_62 = arith.constant 0 : index
    %c0_63 = arith.constant 0 : index
    %105 = vector.load %arg3[%c8, %c0_62, %c0_63] : memref<9x128x128xbf16, #tpu.memory_space<vmem>>, vector<1x128x128xbf16>
    %106 = vector.shape_cast %105 : vector<1x128x128xbf16> to vector<128x128xbf16>
    %cst_64 = arith.constant dense<0.000000e+00> : vector<80x128xf32>
    %107 = tpu.matmul %104, %106, %cst_64 {dimension_numbers = #tpu.dot_dimension_numbers<[1], [0], [0], [1], [0, 0, 1, 1], [], []>} : vector<80x128xbf16>, vector<128x128xbf16>, vector<80x128xf32> -> vector<80x128xf32>
    %108 = arith.addf %102, %107 : vector<80x128xf32>
    %109 = vector.extract_strided_slice %5 {offsets = [22, 0], sizes = [80, 8], strides = [1, 1]} : vector<110x8xf32> to vector<80x8xf32>
    %110 = arith.truncf %109 : vector<80x8xf32> to vector<80x8xbf16>
    %c8_65 = arith.constant 8 : index
    %c0_66 = arith.constant 0 : index
    %c0_67 = arith.constant 0 : index
    %111 = vector.load %arg4[%c8_65, %c0_66, %c0_67] : memref<9x8x128xbf16, #tpu.memory_space<vmem>>, vector<1x8x128xbf16>
    %112 = vector.shape_cast %111 : vector<1x8x128xbf16> to vector<8x128xbf16>
    %cst_68 = arith.constant dense<0.000000e+00> : vector<80x128xf32>
    %113 = tpu.matmul %110, %112, %cst_68 {dimension_numbers = #tpu.dot_dimension_numbers<[1], [0], [0], [1], [0, 0, 1, 1], [], []>} : vector<80x8xbf16>, vector<8x128xbf16>, vector<80x128xf32> -> vector<80x128xf32>
    %114 = arith.addf %108, %113 : vector<80x128xf32>
    %c0_69 = arith.constant 0 : index
    %c0_70 = arith.constant 0 : index
    %115 = vector.load %arg5[%c0_69, %c0_70] : memref<1x128xf32, #tpu.memory_space<vmem>>, vector<1x128xf32>
    %116 = vector.broadcast %115 : vector<1x128xf32> to vector<80x128xf32>
    %117 = arith.addf %114, %116 : vector<80x128xf32>
    %cst_71 = arith.constant 0.000000e+00 : f32
    %118 = vector.broadcast %cst_71 : f32 to vector<80x128xf32>
    %119 = arith.cmpf ogt, %117, %118 : vector<80x128xf32>
    %cst_72 = arith.constant 0.00999999977 : f32
    %120 = vector.broadcast %cst_72 : f32 to vector<80x128xf32>
    %121 = arith.mulf %120, %117 : vector<80x128xf32>
    %122 = arith.select %119, %117, %121 : vector<80x128xi1>, vector<80x128xf32>
    %c0_73 = arith.constant 0 : index
    %c0_74 = arith.constant 0 : index
    %c0_75 = arith.constant 0 : index
    %123 = vector.load %arg6[%c0_73, %c0_74, %c0_75] : memref<1x80x128xf32, #tpu.memory_space<vmem>>, vector<1x80x128xf32>
    %124 = vector.shape_cast %123 : vector<1x80x128xf32> to vector<80x128xf32>
    %125 = vector.shape_cast %122 : vector<80x128xf32> to vector<1x80x128xf32>
    tpu.vector_store %arg6[%c0_73, %c0_74, %c0_75], %125 {strides = array<i32>} : memref<1x80x128xf32, #tpu.memory_space<vmem>>, vector<1x80x128xf32>,
    return
  }
  func.func @transform_0(%arg0: i32) -> (i32, i32, i32) {
    %c0_i32 = arith.constant 0 : i32
    %c0_i32_0 = arith.constant 0 : i32
    %c0_i32_1 = arith.constant 0 : i32
    return %arg0, %c0_i32, %c0_i32_0 : i32, i32, i32
  }
  func.func @transform_1(%arg0: i32) -> (i32, i32, i32) {
    %c0_i32 = arith.constant 0 : i32
    %c0_i32_0 = arith.constant 0 : i32
    %c0_i32_1 = arith.constant 0 : i32
    return %arg0, %c0_i32, %c0_i32_0 : i32, i32, i32
  }
  func.func @transform_2(%arg0: i32) -> (i32, i32, i32) {
    %c0_i32 = arith.constant 0 : i32
    %c0_i32_0 = arith.constant 0 : i32
    %c0_i32_1 = arith.constant 0 : i32
    %c0_i32_2 = arith.constant 0 : i32
    return %c0_i32, %c0_i32_0, %c0_i32_1 : i32, i32, i32
  }
  func.func @transform_3(%arg0: i32) -> (i32, i32, i32) {
    %c0_i32 = arith.constant 0 : i32
    %c0_i32_0 = arith.constant 0 : i32
    %c0_i32_1 = arith.constant 0 : i32
    %c0_i32_2 = arith.constant 0 : i32
    return %c0_i32, %c0_i32_0, %c0_i32_1 : i32, i32, i32
  }
  func.func @transform_4(%arg0: i32) -> (i32, i32) {
    %c0_i32 = arith.constant 0 : i32
    %c0_i32_0 = arith.constant 0 : i32
    %c0_i32_1 = arith.constant 0 : i32
    return %c0_i32, %c0_i32_0 : i32, i32
  }
  func.func @transform_5(%arg0: i32) -> (i32, i32, i32) {
    %c0_i32 = arith.constant 0 : i32
    %c0_i32_0 = arith.constant 0 : i32
    %c0_i32_1 = arith.constant 0 : i32
    return %arg0, %c0_i32, %c0_i32_0 : i32, i32, i32
  }
}

</mosaic_0001>

<bundles_post_ra>
// kernel: encode_conv_forward.2
= control target key start
LH: loop header
LB: loop body
LE: loop exit
PB: predicated region body
PF: predicated region fallthrough
CT: control target
= control target key end

     0   :  { %s2009_s12 = smov 0   ;;  %s2439_s0 = inlined_call_operand.vmem [shape: bf16[2,360,4], index: 0, kind: input, shape index: {}]   ;;  %s2440_s1 = inlined_call_operand.vmem [shape: bf16[9,4,128], index: 1, kind: input, shape index: {}]   ;;  %s2441_s2 = inlined_call_operand.vmem [shape: f32[1,128], index: 2, kind: input, shape index: {}]   ;;  %s2442_s3 = inlined_call_operand.vmem [shape: bf16[2,72,128], index: 3, kind: output, shape index: {}]  }
   0x1 LB: > { %s1547_s13 = sadd.s32 4294967295, %s1985_s12   ;;  %p1551_p0 = scmp.ge.s32.totalorder %s1985_s12, 1  ;;  %s1985_s12 = sphi %s2009_s12, %s13_s12  }
   0x2   : > { %p137_p1 = scmp.lt.s32.totalorder %s1985_s12, 3 }
   0x4   : > { %p138_p2 = pnand %p1551_p0, %p137_p1 }
   0x5   : > { %v1564_v0 = vld [vmem:[%s2440_s1 + $0x2] sm:$0x3] (!%p138_p2)  ;;  %vm300_vm0 = vcmask (!%p138_p2), 1041408   ;;  %p161_p3 = scmp.lt.s32.totalorder (!%p138_p2), %s1547_s13, 1  ;;  %v1987_v1 = vmov (!%p138_p2), 0.0   ;;  %vm1988_vm1 = vmmov (!%p138_p2), 0  }
   0x6   : > { %141 = sbr.rel (%p138_p2) target bundleno = 422 (0x1a6), region = 32  ;;  %1736 = vmatprep.subr.bf16.mxu0 (!%p138_p2), %v1987_v1  ;;  %1934 = vmatprep.subr.bf16.mxu1 (!%p138_p2), %v1987_v1  ;;  %v302_v2 = vsel (!%p138_p2), %vm300_vm0, %v1564_v0, 0  ;;  %vm274_vm2 = vcmask (!%p138_p2), 1046528   ;;  %v1576_v6 = vld [vmem:[%s2440_s1 + $0x4] sm:$0x3] (!%p138_p2)  ;;  %vm284_vm3 = vcmask (!%p138_p2), 31744  }
   0x7   : > { %1737 = vmatpush3.bf16.msra.mxu0 (!%p138_p2), %v302_v2  ;;  %1935 = vmatpush3.bf16.msra.mxu1 (!%p138_p2), %v302_v2  ;;  %v261_v19 = vld [vmem:[%s2440_s1] sm:$0x3] (!%p138_p2)  ;;  %v521_v27 = vsel (!%p138_p2), %vm300_vm0, %v1576_v6, 0  ;;  %v1587_v55 = vld [vmem:[%s2440_s1 + $0x6] sm:$0x3] (!%p138_p2)  ;;  %vm616_vm6 = vcmask (!%p138_p2), 1045504  }
   0x8   : > { %1738 = vmatprep.mubr.msk.bf16.mxu0 (!%p138_p2), %vm1988_vm1, %v1987_v1  ;;  %1750 = vmatprep.mubr.msk.bf16.mxu1 (!%p138_p2), %vm1988_vm1, %v1987_v1  ;;  %v392_v30 = vsel (!%p138_p2), %vm300_vm0, %v261_v19, 0  ;;  %v642_v62 = vsel (!%p138_p2), %vm300_vm0, %v1587_v55, 0  ;;  %vm469_vm4 = vsmask.f32 (!%p138_p2), 7424  ;;  %vm1144_vm5 = vsmask.f32 (!%p138_p2), 6400 }
   0x9   : > { %1780 = vmatprep.subr.bf16.mxu0 (!%p138_p2), %v1987_v1  ;;  %1758 = vmatprep.subr.bf16.mxu1 (!%p138_p2), %v1987_v1  ;;  %vm737_vm7 = vcmask (!%p138_p2), 1044480   ;;  %vm848_vm8 = vsmask.f32 (!%p138_p2), 5376 }
   0xd   : > { %s2444_s13 = smov (!%p161_p3, %s1547_s13), 1 }
   0xe   : > { %s1936_s16 = smul.u32 180, %s2444_s13 }
   0xf   : > { %s1937_s11 = smul.u32 36, %s2444_s13 }
  0x10   : > { %s2035_s19 = scalar_lea.vmem %s2439_s0, %s1936_s16 }
  0x11   : > { %v183_v3 = vld [vmem:[%s2035_s19 + $0x2c] sm:$0xf]  ;;  %v184_v4 = vld [vmem:[%s2035_s19 + $0x30] sm:$0xf]  ;;  %v185_v5 = vld [vmem:[%s2035_s19 + $0x34] sm:$0xf]  ;;  %s2419_s16 = scalar_lea.vmem %s2442_s3, %s1937_s11 }
  0x12   : > { %v186_v7 = vld [vmem:[%s2035_s19 + $0x38] sm:$0xf]  ;;  %v1559_v8 = vcombine.low %v183_v3, %v184_v4  ;;  %v2044_v9 = vcombine.low %v184_v4, %v185_v5  ;;  %v189_v10 = vld [vmem:[%s2035_s19 + $0x44] sm:$0xf]  ;;  %v190_v11 = vld [vmem:[%s2035_s19 + $0x48] sm:$0xf] }
  0x13   : > { %v1560_v12 = vcombine.low %v185_v5, %v186_v7  ;;  %v191_v13 = vld [vmem:[%s2035_s19 + $0x4c] sm:$0xf]  ;;  %v192_v14 = vld [vmem:[%s2035_s19 + $0x50] sm:$0xf]  ;;  %v193_v15 = vld [vmem:[%s2035_s19 + $0x54] sm:$0xf]  ;;  %v1562_v16 = vcombine.low %v189_v10, %v190_v11 }
  0x14   : > { %v275_v17 = vrot.slane %v1559_v8, 1  ;;  %v1563_v18 = vcombine.low %v191_v13, %v192_v14  ;;  %v187_v20 = vld [vmem:[%s2035_s19 + $0x3c] sm:$0xf]  ;;  %v2055_v23 = vcombine.low %v190_v11, %v191_v13  ;;  %v2057_v24 = vcombine.low %v192_v14, %v193_v15  ;;  %v188_v25 = vld [vmem:[%s2035_s19 + $0x40] sm:$0xf] }
  0x15   : > { %v276_v21 = vrot.slane %v1560_v12, 1  ;;  %v280_v22 = vrot.slane %v1562_v16, 1  ;;  %v1561_v28 = vcombine.low %v187_v20, %v188_v25  ;;  %v2063_v31 = vcombine.low %v186_v7, %v187_v20  ;;  %v173_v33 = vld [vmem:[%s2035_s19 + $0x4] sm:$0xf]  ;;  %v174_v34 = vld [vmem:[%s2035_s19 + $0x8] sm:$0xf] }
  0x16   : > { %v282_v26 = vrot.slane %v1563_v18, 1  ;;  %v2065_v32 = vcombine.low %v188_v25, %v189_v10  ;;  %v2071_v36 = vcombine.low %v173_v33, %v174_v34  ;;  %v172_v38 = vld [vmem:[%s2035_s19] sm:$0xf]  ;;  %v175_v39 = vld [vmem:[%s2035_s19 + $0xc] sm:$0xf]  ;;  %v1146_v61 = vshrl.u32 %v2044_v9, 16 }
  0x17   : > { %v277_v29 = vsel %vm274_vm2, %v275_v17, %v276_v21  ;;  %v278_v37 = vrot.slane %v1561_v28, 1  ;;  %v176_v40 = vld [vmem:[%s2035_s19 + $0x10] sm:$0xf]  ;;  %v177_v41 = vld [vmem:[%s2035_s19 + $0x14] sm:$0xf]  ;;  %v1554_v47 = vcombine.low %v172_v38, %v173_v33  ;;  %v1555_v53 = vcombine.low %v174_v34, %v175_v39 }
  0x18   : > { %1739 = vmatmul.mubr.msk.bf16.vlgmr.msra.gmra.mrb[0].mxu0 %vm284_vm3, %v277_v29  ;;  %v283_v35 = vsel %vm274_vm2, %v280_v22, %v282_v26  ;;  %v178_v42 = vld [vmem:[%s2035_s19 + $0x18] sm:$0xf]  ;;  %v179_v43 = vld [vmem:[%s2035_s19 + $0x1c] sm:$0xf]  ;;  %v2086_v44 = vcombine.low %v175_v39, %v176_v40  ;;  %v2089_v45 = vld [vmem:[%s2035_s19 + $0x20] sm:$0xf]  ;;  %v2122_v5 = vcombine.low %v176_v40, %v177_v41 }
  0x19   : > { %1751 = vmatmul.mubr.msk.bf16.vlgmr.msra.gmra.mrb[0].mxu1 %vm284_vm3, %v283_v35  ;;  %1781 = vmatpush3.bf16.msra.mxu0 %v521_v27  ;;  %v279_v46 = vsel %vm274_vm2, %v276_v21, %v278_v37  ;;  %v2092_v48 = vcombine.low %v177_v41, %v178_v42  ;;  %v182_v49 = vld [vmem:[%s2035_s19 + $0x28] sm:$0xf]  ;;  %v2096_v50 = vcombine.low %v179_v43, %v2089_v45  ;;  %v2099_v51 = vld [vmem:[%s2035_s19 + $0x24] sm:$0xf]  ;;  %v472_v54 = vshll.u32 %v1554_v47, 16 }
  0x1a   : > { %1759 = vmatpush3.bf16.msra.mxu1 %v392_v30  ;;  %1742 = vmatprep.mubr.msk.bf16.mxu0 %vm1988_vm1, %v1987_v1  ;;  %v2103_v52 = vcombine.low %v2099_v51, %v182_v49  ;;  %v1002_v56 = vshll.u32 %v2071_v36, 16  ;;  %v470_v57 = vshrl.u32 %v1554_v47, 16  ;;  %v281_v58 = vsel %vm274_vm2, %v278_v37, %v280_v22 }
  0x1b   : > { %1754 = vmatprep.mubr.msk.bf16.mxu1 %vm1988_vm1, %v1987_v1  ;;  %1802 = vmatprep.subr.bf16.mxu1 %v1987_v1  ;;  %v476_v59 = vshll.u32 %v1555_v53, 16  ;;  %v474_v60 = vrot.slane %v472_v54, 1  ;;  %v1000_v63 = vshrl.u32 %v2071_v36, 16  ;;  %v1149_v2 = vshll.u32 %v2044_v9, 16  ;;  %v1598_v9 = vld [vmem:[%s2440_s1 + $0x8] sm:$0x3] }
  0x1c   : > { %1824 = vmatprep.subr.bf16.mxu0 %v1987_v1  ;;  %v1004_v0 = vrot.slane %v1002_v56, 1  ;;  %v1154_v3 = vshrl.u32 %v2063_v31, 16  ;;  %v1157_v4 = vshll.u32 %v2063_v31, 16  ;;  %v1148_v8 = vrot.slane %v1146_v61, 1 }
  0x1d   : > { %v478_v6 = vrot.slane %v476_v59, 1  ;;  %v475_v7 = vor.u32 %v474_v60, %v470_v57  ;;  %v480_v10 = vshrl.u32 %v1555_v53, 16  ;;  %v1007_v12 = vshll.u32 %v2086_v44, 16 }
  0x1e   : > { %v1005_v11 = vor.u32 %v1004_v0, %v1000_v63  ;;  %v1151_v13 = vrot.slane %v1149_v2, 2  ;;  %v1156_v14 = vrot.slane %v1154_v3, 1  ;;  %v1159_v15 = vrot.slane %v1157_v4, 2 }
  0x1f   : > { %v483_v16 = vshll.u32 %v2122_v5, 16  ;;  %v479_v17 = vsel %vm469_vm4, %v475_v7, %v478_v6  ;;  %v1009_v18 = vrot.slane %v1007_v12, 1  ;;  %v1011_v19 = vshrl.u32 %v2086_v44, 16 }
  0x20   : > { %1743 = vmatmul.mubr.msk.bf16.gmra.mrb[4].mxu0 %vm284_vm3, %v279_v46  ;;  %v1015_v20 = vshll.u32 %v2092_v48, 16  ;;  %v763_v21 = vsel %vm300_vm0, %v1598_v9, 0  ;;  %v2139_v22 = vcombine.low %v178_v42, %v179_v43  ;;  %v482_v25 = vor.u32 %v480_v10, %v478_v6 }
  0x21   : > { %1755 = vmatmul.mubr.msk.bf16.gmra.mrb[4].mxu1 %vm284_vm3, %v282_v26  ;;  %1746 = vmatprep.mubr.msk.bf16.mxu0 %vm1988_vm1, %v1987_v1  ;;  %v2142_v26 = vsel %vm469_vm4, %v1005_v11, %v1009_v18  ;;  %v1013_v27 = vor.u32 %v1011_v19, %v1009_v18  ;;  %v485_v29 = vrot.slane %v483_v16, 1  ;;  %v1019_v30 = vshrl.u32 %v2092_v48, 16 }
  0x22   : > { %1760 = vmatprep.mubr.msk.bf16.mxu1 %vm1988_vm1, %v1987_v1  ;;  %v1017_v28 = vrot.slane %v1015_v20, 1  ;;  %v1152_v31 = vor.u32 %v1151_v13, %v1148_v8  ;;  %v1160_v33 = vor.u32 %v1159_v15, %v1156_v14  ;;  %v1023_v35 = vshll.u32 %v2096_v50, 16 }
  0x23   : > { %v1027_v37 = vshrl.u32 %v2096_v50, 16  ;;  %v487_v38 = vshrl.u32 %v2122_v5, 16  ;;  %v490_v39 = vshll.u32 %v2139_v22, 16  ;;  %v1031_v41 = vshll.u32 %v2103_v52, 16 }
  0x24   : > { %v2148_v34 = vsel %vm469_vm4, %v1013_v27, %v1017_v28  ;;  %v1021_v40 = vor.u32 %v1019_v30, %v1017_v28  ;;  %v2161_v42 = vcombine.low %v2089_v45, %v2099_v51  ;;  %v1025_v43 = vrot.slane %v1023_v35, 1  ;;  %v1972_v30 = vld [vmem:[%s2035_s19 + $0x84] sm:$0xff]  }
  0x25   : > { %v1163_v46 = vshrl.u32 %v2065_v32, 16  ;;  %v2166_v49 = vrot.slane %v1031_v41, 1  ;;  %v1166_v54 = vshll.u32 %v2065_v32, 16  ;;  %v1295_v57 = vrot.slane %v2071_v36, 1  ;;  %v2256_v35 = vld [vmem:[%s2035_s19 + $0x68] sm:$0xff]  }
  0x26   : > { %v2173_v55 = vsel %vm469_vm4, %v1021_v40, %v1025_v43  ;;  %v1029_v51 = vor.u32 %v1027_v37, %v1025_v43  ;;  %v492_v59 = vrot.slane %v490_v39, 1  ;;  %v1296_v61 = vrot.slane %v2086_v44, 1  ;;  %v1615_v41 = vld [vmem:[%s2440_s1 + $0xc] sm:$0x3]  ;;  %v1975_v43 = vld [vmem:[%s2035_s19 + $0x94] sm:$0xff]  }
  0x27   : > { %v1165_v56 = vrot.slane %v1163_v46, 1  ;;  %v1168_v60 = vrot.slane %v1166_v54, 2  ;;  %v1172_v63 = vshrl.u32 %v2055_v23, 16  ;;  %v1175_v32 = vshll.u32 %v2055_v23, 16  ;;  %v1974_v54 = vld [vmem:[%s2035_s19 + $0x70] sm:$0xff]  }
  0x28   : > { %1747 = vmatmul.mubr.msk.bf16.gmra.mrb[8].mxu0 %vm284_vm3, %v281_v58  ;;  %v489_v58 = vor.u32 %v487_v38, %v485_v29  ;;  %v1298_v0 = vrot.slane %v2092_v48, 1  ;;  %v2186_v36 = vsel %vm274_vm2, %v1295_v57, %v1296_v61  ;;  %v1181_v3 = vshrl.u32 %v2057_v24, 16 }
  0x29   : > { %1761 = vmatmul.mubr.msk.bf16.vlgmr.msra.gmra.mrb[8].mxu1 %vm284_vm3, %v1554_v47  ;;  %1782 = vmatprep.mubr.msk.bf16.mxu0 %vm1988_vm1, %v1987_v1  ;;  %v486_v47 = vsel %vm469_vm4, %v482_v25, %v485_v29  ;;  %v1169_v2 = vor.u32 %v1168_v60, %v1165_v56  ;;  %v1184_v44 = vshll.u32 %v2057_v24, 16  ;;  %v1174_v4 = vrot.slane %v1172_v63, 1  ;;  %v2238_v25 = vld [vmem:[%s2035_s19 + $0x60] sm:$0xff]   ;;  %v1604_v29 = vld [vmem:[%s2440_s1 + $0xa] sm:$0x3]  ;;  %v1976_v60 = vld [vmem:[%s2035_s19 + $0x78] sm:$0xff]  }
  0x2a   : > { %1803 = vmatpush3.bf16.msra.mxu1 %v642_v62  ;;  %1764 = vmatprep.mubr.msk.bf16.mxu1 %vm1988_vm1, %v1987_v1  ;;  %v2179_v62 = vsel %vm469_vm4, %v1029_v51, %v2166_v49  ;;  %v1177_v23 = vrot.slane %v1175_v32, 2  ;;  %v2195_v48 = vsel %vm274_vm2, %v1296_v61, %v1298_v0  ;;  %v1300_v6 = vrot.slane %v2096_v50, 1 }
  0x2b   : > { %1846 = vmatprep.subr.bf16.mxu1 %v1987_v1  ;;  %v2201_v7 = vsel %vm1144_vm5, %v1160_v33, %v1169_v2  ;;  %v1183_v24 = vrot.slane %v1181_v3, 1  ;;  %v1186_v8 = vrot.slane %v1184_v44, 2  ;;  %v493_v11 = vsel %vm469_vm4, %v489_v58, %v492_v59  ;;  %v1977_v58 = vld [vmem:[%s2035_s19 + $0x9c] sm:$0xff]  }
  0x2c   : > { %v1178_v9 = vor.u32 %v1177_v23, %v1174_v4  ;;  %v494_v50 = vshrl.u32 %v2139_v22, 16  ;;  %v498_v12 = vshll.u32 %v2161_v42, 16  ;;  %v1302_v15 = vrot.slane %v2103_v52, 1 }
  0x2d   : > { %v2206_v10 = vor.u32 %v1186_v8, %v1183_v24  ;;  %v1558_v19 = vcombine.low %v2089_v45, %v2089_v45  ;;  %v618_v27 = vrot.slane %v2238_v25, 2  ;;  %v909_v37 = vsel %vm300_vm0, %v1604_v29, 0 }
  0x2e   : > { %v2212_v13 = vsel %vm1144_vm5, %v1169_v2, %v1178_v9  ;;  %v2223_v16 = vsel %vm274_vm2, %v1300_v6, %v1302_v15  ;;  %v500_v18 = vrot.slane %v498_v12, 1  ;;  %v738_v38 = vrot.slane %v1972_v30, 3  ;;  %v1632_v30 = vld [vmem:[%s2440_s1 + $0x10] sm:$0x3] }
  0x2f   : > { %v2216_v14 = vsel %vm1144_vm5, %v1178_v9, %v2206_v10  ;;  %v620_v40 = vrot.slane %v2256_v35, 2  ;;  %v741_v51 = vrot.slane %v1975_v43, 3  ;;  %v622_v56 = vrot.slane %v1974_v54, 2 }
  0x30   : > { %1783 = vmatmul.mubr.msk.bf16.vlgmr.msra.gmra.mrb[12].mxu0 %vm284_vm3, %v479_v17  ;;  %v496_v17 = vor.u32 %v494_v50, %v492_v59  ;;  %v743_v61 = vrot.slane %v1977_v58, 3  ;;  %v624_v63 = vrot.slane %v1976_v60, 2  ;;  %v858_v23 = vshrl.u32 %v2238_v25, 16 }
  0x31   : > { %1765 = vmatmul.mubr.msk.bf16.gmra.mrb[12].mxu1 %vm284_vm3, %v1555_v53  ;;  %1825 = vmatpush3.bf16.msra.mxu0 %v763_v21  ;;  %v2169_v53 = vsel %vm1144_vm5, %v1152_v31, %v1160_v33  ;;  %v2235_v21 = vld [vmem:[%s2035_s19 + $0x58] sm:$0xff]   ;;  %v1973_v31 = vld [vmem:[%s2035_s19 + $0x8c] sm:$0xff]   ;;  %v621_v46 = vsel %vm616_vm6, %v618_v27, %v620_v40  ;;  %v623_v59 = vsel %vm616_vm6, %v620_v40, %v622_v56  ;;  %v879_v29 = vshll.u32 %v1974_v54, 16 }
  0x32   : > { %1768 = vmatprep.mubr.msk.bf16.mxu1 %vm1988_vm1, %v1987_v1  ;;  %1786 = vmatprep.mubr.msk.bf16.mxu0 %vm1988_vm1, %v1987_v1  ;;  %v501_v20 = vsel %vm469_vm4, %v496_v17, %v500_v18  ;;  %v617_v45 = vrot.slane %v2235_v21, 2  ;;  %v739_v39 = vrot.slane %v1973_v31, 3  ;;  %v744_v32 = vsel %vm737_vm7, %v741_v51, %v743_v61 }
  0x33   : > { %1868 = vmatprep.subr.bf16.mxu0 %v1987_v1  ;;  %v625_v2 = vsel %vm616_vm6, %v622_v56, %v624_v63  ;;  %v850_v44 = vshrl.u32 %v2235_v21, 16  ;;  %v853_v4 = vshll.u32 %v2235_v21, 16  ;;  %v888_v40 = vshll.u32 %v1976_v60, 16 }
  0x34   : > { %v619_v33 = vsel %vm616_vm6, %v617_v45, %v618_v27  ;;  %v742_v57 = vsel %vm737_vm7, %v739_v39, %v741_v51 }
  0x35   : > { %v852_v8 = vrot.slane %v850_v44, 2  ;;  %v855_v9 = vrot.slane %v853_v4, 3  ;;  %v890_v43 = vrot.slane %v888_v40, 3 }
  0x37   : > { %v856_v12 = vor.u32 %v855_v9, %v852_v8 }
  0x38   : > { %1787 = vmatmul.mubr.msk.bf16.gmra.mrb[16].mxu0 %vm284_vm3, %v486_v47  ;;  %v1054_v47 = vsel %vm300_vm0, %v1615_v41, 0 }
  0x39   : > { %1769 = vmatmul.mubr.msk.bf16.gmra.mrb[16].mxu1 %vm284_vm3, %v2122_v5  ;;  %1790 = vmatprep.mubr.msk.bf16.mxu0 %vm1988_vm1, %v1987_v1  ;;  %v2204_v5 = vsel %vm274_vm2, %v1298_v0, %v1300_v6  ;;  %v1978_v0 = vld [vmem:[%s2035_s19 + $0xa4] sm:$0xff]   ;;  %v861_v6 = vshll.u32 %v2238_v25, 16 }
  0x3a   : > { %1772 = vmatprep.mubr.msk.bf16.mxu1 %vm1988_vm1, %v1987_v1  ;;  %v745_v3 = vrot.slane %v1978_v0, 3 }
  0x3b   : > { %v863_v50 = vrot.slane %v861_v6, 3 }
  0x3c   : > { %v746_v24 = vsel %vm737_vm7, %v743_v61, %v745_v3 }
  0x40   : > { %1791 = vmatmul.mubr.msk.bf16.gmra.mrb[20].mxu0 %vm284_vm3, %v493_v11  ;;  %v860_v11 = vrot.slane %v858_v23, 2 }
  0x41   : > { %1773 = vmatmul.mubr.msk.bf16.gmra.mrb[20].mxu1 %vm284_vm3, %v2139_v22  ;;  %1794 = vmatprep.mubr.msk.bf16.mxu0 %vm1988_vm1, %v1987_v1  ;;  %v502_v22 = vshrl.u32 %v2161_v42, 16  ;;  %v740_v42 = vsel %vm737_vm7, %v738_v38, %v739_v39  ;;  %v885_v39 = vshrl.u32 %v1976_v60, 16 }
  0x42   : > { %1776 = vmatprep.mubr.msk.bf16.mxu1 %vm1988_vm1, %v1987_v1  ;;  %v864_v17 = vor.u32 %v863_v50, %v860_v11 }
  0x43   : > { %v504_v28 = vor.u32 %v502_v22, %v500_v18  ;;  %v867_v18 = vshrl.u32 %v2256_v35, 16 }
  0x44   : > { %v865_v21 = vsel %vm848_vm8, %v856_v12, %v864_v17 }
  0x45   : > { %v869_v25 = vrot.slane %v867_v18, 2 }
  0x48   : > { %1795 = vmatmul.mubr.msk.bf16.gmra.mrb[24].mxu0 %vm284_vm3, %v501_v20  ;;  %v1626_v20 = vld [vmem:[%s2440_s1 + $0xe] sm:$0x3] }
  0x49   : > { %1777 = vmatmul.mubr.msk.bf16.gmra.mrb[24].mxu1 %vm284_vm3, %v1558_v19  ;;  %1798 = vmatprep.mubr.msk.bf16.mxu0 %vm1988_vm1, %v1987_v1  ;;  %v870_v19 = vshll.u32 %v2256_v35, 16  ;;  %v1205_v45 = vsel %vm300_vm0, %v1626_v20, 0 }
  0x4a   : > { %1804 = vmatprep.mubr.msk.bf16.mxu1 %vm1988_vm1, %v1987_v1 }
  0x4b   : > { %v872_v22 = vrot.slane %v870_v19, 3 }
  0x4d   : > { %v873_v27 = vor.u32 %v872_v22, %v869_v25 }
  0x4f   : > { %v874_v31 = vsel %vm848_vm8, %v864_v17, %v873_v27 }
  0x50   : > { %1799 = vmatmul.mubr.msk.bf16.gmra.mrb[28].mxu0 %vm284_vm3, %v504_v28  ;;  %v876_v28 = vshrl.u32 %v1974_v54, 16 }
  0x51   : > { %1805 = vmatmul.mubr.msk.bf16.vlgmr.msra.gmra.mrb[28].mxu1 %vm284_vm3, %v619_v33  ;;  %1826 = vmatprep.mubr.msk.bf16.mxu0 %vm1988_vm1, %v1987_v1  ;;  %v1320_v33 = vsel %vm300_vm0, %v1632_v30, 0 }
  0x52   : > { %1847 = vmatpush3.bf16.msra.mxu1 %v909_v37  ;;  %1808 = vmatprep.mubr.msk.bf16.mxu1 %vm1988_vm1, %v1987_v1  ;;  %v878_v35 = vrot.slane %v876_v28, 2  ;;  %v881_v37 = vrot.slane %v879_v29, 3 }
  0x53   : > { %1890 = vmatprep.subr.bf16.mxu1 %v1987_v1 }
  0x54   : > { %v882_v38 = vor.u32 %v881_v37, %v878_v35 }
  0x56   : > { %v883_v41 = vsel %vm848_vm8, %v873_v27, %v882_v38 }
  0x58   : > { %1827 = vmatmul.mubr.msk.bf16.vlgmr.msra.gmra.mrb[32].mxu0 %vm284_vm3, %v740_v42  ;;  %v887_v42 = vrot.slane %v885_v39, 2 }
  0x59   : > { %1809 = vmatmul.mubr.msk.bf16.gmra.mrb[32].mxu1 %vm284_vm3, %v621_v46  ;;  %1869 = vmatpush3.bf16.msra.mxu0 %v1054_v47 }
  0x5a   : > { %1812 = vmatprep.mubr.msk.bf16.mxu1 %vm1988_vm1, %v1987_v1  ;;  %1830 = vmatprep.mubr.msk.bf16.mxu0 %vm1988_vm1, %v1987_v1 }
  0x5b   : > { %1912 = vmatprep.subr.bf16.mxu0 %v1987_v1 }
  0x60   : > { %1831 = vmatmul.mubr.msk.bf16.gmra.mrb[36].mxu0 %vm284_vm3, %v742_v57 }
  0x61   : > { %1813 = vmatmul.mubr.msk.bf16.gmra.mrb[36].mxu1 %vm284_vm3, %v623_v59  ;;  %1834 = vmatprep.mubr.msk.bf16.mxu0 %vm1988_vm1, %v1987_v1 }
  0x62   : > { %1816 = vmatprep.mubr.msk.bf16.mxu1 %vm1988_vm1, %v1987_v1 }
  0x68   : > { %1835 = vmatmul.mubr.msk.bf16.gmra.mrb[40].mxu0 %vm284_vm3, %v744_v32 }
  0x69   : > { %1817 = vmatmul.mubr.msk.bf16.gmra.mrb[40].mxu1 %vm284_vm3, %v625_v2  ;;  %1838 = vmatprep.mubr.msk.bf16.mxu0 %vm1988_vm1, %v1987_v1 }
  0x6a   : > { %1820 = vmatprep.mubr.msk.bf16.mxu1 %vm1988_vm1, %v1987_v1 }
  0x70   : > { %1839 = vmatmul.mubr.msk.bf16.gmra.mrb[44].mxu0 %vm284_vm3, %v746_v24 }
  0x71   : > { %1821 = vmatmul.mubr.msk.bf16.gmra.mrb[44].mxu1 %vm284_vm3, %v624_v63  ;;  %1842 = vmatprep.mubr.msk.bf16.mxu0 %vm1988_vm1, %v1987_v1 }
  0x72   : > { %1848 = vmatprep.mubr.msk.bf16.mxu1 %vm1988_vm1, %v1987_v1 }
  0x78   : > { %1843 = vmatmul.mubr.msk.bf16.gmra.mrb[48].mxu0 %vm284_vm3, %v745_v3 }
  0x79   : > { %1849 = vmatmul.mubr.msk.bf16.vlgmr.msra.gmra.mrb[48].mxu1 %vm284_vm3, %v865_v21  ;;  %1870 = vmatprep.mubr.msk.bf16.mxu0 %vm1988_vm1, %v1987_v1 }
  0x7a   : > { %1891 = vmatpush3.bf16.msra.mxu1 %v1205_v45  ;;  %1852 = vmatprep.mubr.msk.bf16.mxu1 %vm1988_vm1, %v1987_v1 }
  0x80   : > { %1871 = vmatmul.mubr.msk.bf16.vlgmr.msra.gmra.mrb[52].mxu0 %vm284_vm3, %v2142_v26  ;;  %v891_v26 = vor.u32 %v890_v43, %v887_v42 }
  0x81   : > { %1853 = vmatmul.mubr.msk.bf16.gmra.mrb[52].mxu1 %vm284_vm3, %v874_v31  ;;  %1913 = vmatpush3.bf16.msra.mxu0 %v1320_v33 }
  0x82   : > { %1856 = vmatprep.mubr.msk.bf16.mxu1 %vm1988_vm1, %v1987_v1  ;;  %1874 = vmatprep.mubr.msk.bf16.mxu0 %vm1988_vm1, %v1987_v1  ;;  %v892_v46 = vsel %vm848_vm8, %v882_v38, %v891_v26 }
  0x88   : > { %1875 = vmatmul.mubr.msk.bf16.gmra.mrb[56].mxu0 %vm284_vm3, %v2148_v34  ;;  %v1035_v34 = vshrl.u32 %v2103_v52, 16 }
  0x89   : > { %1857 = vmatmul.mubr.msk.bf16.gmra.mrb[56].mxu1 %vm284_vm3, %v883_v41  ;;  %1878 = vmatprep.mubr.msk.bf16.mxu0 %vm1988_vm1, %v1987_v1 }
  0x8a   : > { %1860 = vmatprep.mubr.msk.bf16.mxu1 %vm1988_vm1, %v1987_v1 }
  0x90   : > { %1879 = vmatmul.mubr.msk.bf16.gmra.mrb[60].mxu0 %vm284_vm3, %v2173_v55  ;;  %v1037_v55 = vor.u32 %v1035_v34, %v2166_v49 }
  0x91   : > { %1861 = vmatmul.mubr.msk.bf16.gmra.mrb[60].mxu1 %vm284_vm3, %v892_v46  ;;  %1882 = vmatprep.mubr.msk.bf16.mxu0 %vm1988_vm1, %v1987_v1 }
  0x92   : > { %1864 = vmatprep.mubr.msk.bf16.mxu1 %vm1988_vm1, %v1987_v1 }
  0x98   : > { %1883 = vmatmul.mubr.msk.bf16.gmra.mrb[64].mxu0 %vm284_vm3, %v2179_v62 }
  0x99   : > { %1865 = vmatmul.mubr.msk.bf16.gmra.mrb[64].mxu1 %vm284_vm3, %v891_v26  ;;  %1886 = vmatprep.mubr.msk.bf16.mxu0 %vm1988_vm1, %v1987_v1 }
  0x9a   : > { %1892 = vmatprep.mubr.msk.bf16.mxu1 %vm1988_vm1, %v1987_v1 }
  0xa0   : > { %1887 = vmatmul.mubr.msk.bf16.gmra.mrb[68].mxu0 %vm284_vm3, %v1037_v55 }
  0xa1   : > { %1893 = vmatmul.mubr.msk.bf16.vlgmr.msra.gmra.mrb[68].mxu1 %vm284_vm3, %v2169_v53  ;;  %1914 = vmatprep.mubr.msk.bf16.mxu0 %vm1988_vm1, %v1987_v1 }
  0xa2   : > { %1896 = vmatprep.mubr.msk.bf16.mxu1 %vm1988_vm1, %v1987_v1 }
  0xa8   : > { %1915 = vmatmul.mubr.msk.bf16.vlgmr.msra.gmra.mrb[72].mxu0 %vm284_vm3, %v2186_v36 }
  0xa9   : > { %1897 = vmatmul.mubr.msk.bf16.gmra.mrb[72].mxu1 %vm284_vm3, %v2201_v7  ;;  %1918 = vmatprep.mubr.msk.bf16.mxu0 %vm1988_vm1, %v1987_v1 }
  0xaa   : > { %1900 = vmatprep.mubr.msk.bf16.mxu1 %vm1988_vm1, %v1987_v1 }
  0xb0   : > { %1919 = vmatmul.mubr.msk.bf16.gmra.mrb[76].mxu0 %vm284_vm3, %v2195_v48 }
  0xb1   : > { %1901 = vmatmul.mubr.msk.bf16.gmra.mrb[76].mxu1 %vm284_vm3, %v2212_v13  ;;  %1922 = vmatprep.mubr.msk.bf16.mxu0 %vm1988_vm1, %v1987_v1 }
  0xb2   : > { %1904 = vmatprep.mubr.msk.bf16.mxu1 %vm1988_vm1, %v1987_v1 }
  0xb8   : > { %1923 = vmatmul.mubr.msk.bf16.gmra.mrb[80].mxu0 %vm284_vm3, %v2204_v5 }
  0xb9   : > { %1905 = vmatmul.mubr.msk.bf16.gmra.mrb[80].mxu1 %vm284_vm3, %v2216_v14  ;;  %1926 = vmatprep.mubr.msk.bf16.mxu0 %vm1988_vm1, %v1987_v1 }
  0xba   : > { %1908 = vmatprep.mubr.msk.bf16.mxu1 %vm1988_vm1, %v1987_v1 }
  0xc0   : > { %1927 = vmatmul.mubr.msk.bf16.gmra.mrb[84].mxu0 %vm284_vm3, %v2223_v16 }
  0xc1   : > { %1909 = vmatmul.mubr.msk.bf16.gmra.mrb[84].mxu1 %vm284_vm3, %v2206_v10  ;;  %1930 = vmatprep.mubr.msk.bf16.mxu0 %vm1988_vm1, %v1987_v1 }
  0xc8   : > { %1931 = vmatmul.mubr.msk.bf16.gmra.mrb[88].mxu0 %vm284_vm3, %v1302_v15 }
  0xeb   : > { %v338_v49 = vpop.f32.mrb[0].mxu0 }
  0xec   : > { %v1740_v53 = vpop.f32.mrb[1].mxu0  ;;  %v362_v62 = vpop.f32.mrb[0].mxu1 }
  0xed   : > { %v341_v36 = vpop.f32.mrb[2].mxu0  ;;  %v1752_v48 = vpop.f32.mrb[1].mxu1 }
  0xee   : > { %v1741_v7 = vpop.f32.mrb[3].mxu0  ;;  %v365_v5 = vpop.f32.mrb[2].mxu1 }
  0xef   : > { %v1753_v13 = vpop.f32.mrb[3].mxu1 }
  0xf3   : > { %v346_v14 = vpop.f32.mrb[4].mxu0 }
  0xf4   : > { %v1744_v16 = vpop.f32.mrb[5].mxu0  ;;  %v370_v47 = vpop.f32.mrb[4].mxu1 }
  0xf5   : > { %v349_v54 = vpop.f32.mrb[6].mxu0  ;;  %v1756_v10 = vpop.f32.mrb[5].mxu1 }
  0xf6   : > { %v1745_v51 = vpop.f32.mrb[7].mxu0  ;;  %v373_v56 = vpop.f32.mrb[6].mxu1 }
  0xf7   : > { %v1757_v1 = vpop.f32.mrb[7].mxu1 }
  0xfb   : > { %v354_v57 = vpop.f32.mrb[8].mxu0 }
  0xfc   : > { %v428_v52 = vpop.f32.mrb[8].mxu1  ;;  %v1748_v58 = vpop.f32.mrb[9].mxu0 }
  0xfd   : > { %v429_v15 = vadd.f32 %v428_v52, %v338_v49  ;;  %v1762_v59 = vpop.f32.mrb[9].mxu1  ;;  %v357_v60 = vpop.f32.mrb[10].mxu0 }
  0xfe   : > { %v431_v61 = vpop.f32.mrb[10].mxu1  ;;  %v1749_v63 = vpop.f32.mrb[11].mxu0 }
  0xff   : > { %v432_v32 = vadd.f32 %v431_v61, %v341_v36  ;;  %v1763_v0 = vpop.f32.mrb[11].mxu1 }
 0x103   : > { %v557_v2 = vpop.f32.mrb[12].mxu0 }
 0x104   : > { %v436_v3 = vpop.f32.mrb[12].mxu1  ;;  %v595_v44 = vadd.f32 %v557_v2, %v429_v15  ;;  %v1784_v4 = vpop.f32.mrb[13].mxu0 }
 0x105   : > { %v437_v23 = vadd.f32 %v436_v3, %v346_v14  ;;  %v1766_v6 = vpop.f32.mrb[13].mxu1  ;;  %v560_v24 = vpop.f32.mrb[14].mxu0 }
 0x106   : > { %v439_v8 = vpop.f32.mrb[14].mxu1  ;;  %v596_v9 = vadd.f32 %v560_v24, %v432_v32  ;;  %v1785_v11 = vpop.f32.mrb[15].mxu0 }
 0x107   : > { %v440_v50 = vadd.f32 %v439_v8, %v349_v54  ;;  %v1767_v12 = vpop.f32.mrb[15].mxu1 }
 0x10b   : > { %v565_v17 = vpop.f32.mrb[16].mxu0 }
 0x10c   : > { %v444_v18 = vpop.f32.mrb[16].mxu1  ;;  %v597_v19 = vadd.f32 %v565_v17, %v437_v23  ;;  %v1788_v20 = vpop.f32.mrb[17].mxu0 }
 0x10d   : > { %v445_v21 = vadd.f32 %v444_v18, %v354_v57  ;;  %v1770_v25 = vpop.f32.mrb[17].mxu1  ;;  %v568_v22 = vpop.f32.mrb[18].mxu0 }
 0x10e   : > { %v447_v45 = vpop.f32.mrb[18].mxu1  ;;  %v598_v27 = vadd.f32 %v568_v22, %v440_v50  ;;  %v1789_v28 = vpop.f32.mrb[19].mxu0 }
 0x10f   : > { %v448_v29 = vadd.f32 %v447_v45, %v357_v60  ;;  %v1771_v30 = vpop.f32.mrb[19].mxu1 }
 0x113   : > { %v573_v31 = vpop.f32.mrb[20].mxu0 }
 0x114   : > { %v452_v33 = vpop.f32.mrb[20].mxu1  ;;  %v599_v35 = vadd.f32 %v573_v31, %v445_v21  ;;  %v1792_v37 = vpop.f32.mrb[21].mxu0 }
 0x115   : > { %v453_v38 = vadd.f32 %v452_v33, %v362_v62  ;;  %v1774_v39 = vpop.f32.mrb[21].mxu1  ;;  %v576_v40 = vpop.f32.mrb[22].mxu0 }
 0x116   : > { %v455_v41 = vpop.f32.mrb[22].mxu1  ;;  %v600_v42 = vadd.f32 %v576_v40, %v448_v29  ;;  %v1793_v43 = vpop.f32.mrb[23].mxu0 }
 0x117   : > { %v456_v26 = vadd.f32 %v455_v41, %v365_v5  ;;  %v1775_v46 = vpop.f32.mrb[23].mxu1 }
 0x11b   : > { %v581_v34 = vpop.f32.mrb[24].mxu0 }
 0x11c   : > { %v460_v55 = vpop.f32.mrb[24].mxu1  ;;  %v601_v49 = vadd.f32 %v581_v34, %v453_v38  ;;  %v1796_v53 = vpop.f32.mrb[25].mxu0 }
 0x11d   : > { %v461_v36 = vadd.f32 %v460_v55, %v370_v47  ;;  %v584_v48 = vpop.f32.mrb[26].mxu0  ;;  %v1778_v7 = vpop.f32.mrb[25].mxu1 }
 0x11e   : > { %v602_v13 = vadd.f32 %v584_v48, %v456_v26  ;;  %v1797_v14 = vpop.f32.mrb[27].mxu0  ;;  %v463_v16 = vpop.f32.mrb[26].mxu1 }
 0x11f   : > { %v1779_v54 = vpop.f32.mrb[27].mxu1 }
 0x123   : > { %v589_v10 = vpop.f32.mrb[28].mxu0 }
 0x124   : > { %v603_v62 = vadd.f32 %v589_v10, %v461_v36  ;;  %v678_v51 = vpop.f32.mrb[28].mxu1  ;;  %v1800_v56 = vpop.f32.mrb[29].mxu0 }
 0x125   : > { %v716_v1 = vadd.f32 %v678_v51, %v595_v44  ;;  %v1806_v57 = vpop.f32.mrb[29].mxu1  ;;  %v592_v52 = vpop.f32.mrb[30].mxu0 }
 0x126   : > { %v681_v5 = vpop.f32.mrb[30].mxu1  ;;  %v1801_v58 = vpop.f32.mrb[31].mxu0 }
 0x127   : > { %v717_v15 = vadd.f32 %v681_v5, %v596_v9  ;;  %v1807_v59 = vpop.f32.mrb[31].mxu1 }
 0x12b   : > { %v799_v60 = vpop.f32.mrb[32].mxu0 }
 0x12c   : > { %v686_v61 = vpop.f32.mrb[32].mxu1  ;;  %v837_v47 = vadd.f32 %v799_v60, %v716_v1  ;;  %v1828_v63 = vpop.f32.mrb[33].mxu0 }
 0x12d   : > { %v718_v32 = vadd.f32 %v686_v61, %v597_v19  ;;  %v1810_v0 = vpop.f32.mrb[33].mxu1  ;;  %v802_v2 = vpop.f32.mrb[34].mxu0 }
 0x12e   : > { %v689_v3 = vpop.f32.mrb[34].mxu1  ;;  %v838_v4 = vadd.f32 %v802_v2, %v717_v15  ;;  %v1829_v23 = vpop.f32.mrb[35].mxu0 }
 0x12f   : > { %v719_v6 = vadd.f32 %v689_v3, %v598_v27  ;;  %v1811_v24 = vpop.f32.mrb[35].mxu1 }
 0x133   : > { %v807_v8 = vpop.f32.mrb[36].mxu0 }
 0x134   : > { %v694_v44 = vpop.f32.mrb[36].mxu1  ;;  %v839_v11 = vadd.f32 %v807_v8, %v718_v32  ;;  %v1832_v50 = vpop.f32.mrb[37].mxu0 }
 0x135   : > { %v720_v12 = vadd.f32 %v694_v44, %v599_v35  ;;  %v1814_v17 = vpop.f32.mrb[37].mxu1  ;;  %v810_v9 = vpop.f32.mrb[38].mxu0 }
 0x136   : > { %v697_v18 = vpop.f32.mrb[38].mxu1  ;;  %v840_v20 = vadd.f32 %v810_v9, %v719_v6  ;;  %v1833_v21 = vpop.f32.mrb[39].mxu0 }
 0x137   : > { %v721_v25 = vadd.f32 %v697_v18, %v600_v42  ;;  %v1815_v22 = vpop.f32.mrb[39].mxu1 }
 0x13b   : > { %v815_v19 = vpop.f32.mrb[40].mxu0 }
 0x13c   : > { %v702_v45 = vpop.f32.mrb[40].mxu1  ;;  %v841_v28 = vadd.f32 %v815_v19, %v720_v12  ;;  %v1836_v29 = vpop.f32.mrb[41].mxu0 }
 0x13d   : > { %v722_v30 = vadd.f32 %v702_v45, %v601_v49  ;;  %v1818_v31 = vpop.f32.mrb[41].mxu1  ;;  %v818_v27 = vpop.f32.mrb[42].mxu0 }
 0x13e   : > { %v705_v33 = vpop.f32.mrb[42].mxu1  ;;  %v842_v37 = vadd.f32 %v818_v27, %v721_v25  ;;  %v1837_v38 = vpop.f32.mrb[43].mxu0 }
 0x13f   : > { %v723_v39 = vadd.f32 %v705_v33, %v602_v13  ;;  %v1819_v40 = vpop.f32.mrb[43].mxu1 }
 0x143   : > { %v823_v35 = vpop.f32.mrb[44].mxu0 }
 0x144   : > { %v710_v41 = vpop.f32.mrb[44].mxu1  ;;  %v843_v43 = vadd.f32 %v823_v35, %v722_v30  ;;  %v1840_v26 = vpop.f32.mrb[45].mxu0 }
 0x145   : > { %v724_v46 = vadd.f32 %v710_v41, %v603_v62  ;;  %v826_v34 = vpop.f32.mrb[46].mxu0  ;;  %v1822_v42 = vpop.f32.mrb[45].mxu1 }
 0x146   : > { %v844_v55 = vadd.f32 %v826_v34, %v723_v39  ;;  %v1841_v53 = vpop.f32.mrb[47].mxu0  ;;  %v713_v36 = vpop.f32.mrb[46].mxu1 }
 0x147   : > { %v1823_v48 = vpop.f32.mrb[47].mxu1 }
 0x14b   : > { %v831_v7 = vpop.f32.mrb[48].mxu0 }
 0x14c   : > { %v845_v49 = vadd.f32 %v831_v7, %v724_v46  ;;  %v945_v14 = vpop.f32.mrb[48].mxu1  ;;  %v1844_v16 = vpop.f32.mrb[49].mxu0 }
 0x14d   : > { %v983_v54 = vadd.f32 %v945_v14, %v837_v47  ;;  %v1850_v10 = vpop.f32.mrb[49].mxu1  ;;  %v834_v51 = vpop.f32.mrb[50].mxu0 }
 0x14e   : > { %v948_v13 = vpop.f32.mrb[50].mxu1  ;;  %v1845_v56 = vpop.f32.mrb[51].mxu0  ;;  %v2411_v51 = vld [vmem:[%s2441_s2] ss:$0 sm:$0xff] }
 0x14f   : > { %v984_v1 = vadd.f32 %v948_v13, %v838_v4  ;;  %v1851_v57 = vpop.f32.mrb[51].mxu1 }
 0x153   : > { %v1090_v52 = vpop.f32.mrb[52].mxu0 }
 0x154   : > { %v953_v5 = vpop.f32.mrb[52].mxu1  ;;  %v1128_v62 = vadd.f32 %v1090_v52, %v983_v54  ;;  %v1872_v58 = vpop.f32.mrb[53].mxu0 }
 0x155   : > { %v985_v15 = vadd.f32 %v953_v5, %v839_v11  ;;  %v1854_v59 = vpop.f32.mrb[53].mxu1  ;;  %v1093_v60 = vpop.f32.mrb[54].mxu0 }
 0x156   : > { %v956_v61 = vpop.f32.mrb[54].mxu1  ;;  %v1129_v63 = vadd.f32 %v1093_v60, %v984_v1  ;;  %v1873_v32 = vpop.f32.mrb[55].mxu0 }
 0x157   : > { %v986_v0 = vadd.f32 %v956_v61, %v840_v20  ;;  %v1855_v2 = vpop.f32.mrb[55].mxu1 }
 0x15b   : > { %v1098_v3 = vpop.f32.mrb[56].mxu0 }
 0x15c   : > { %v961_v47 = vpop.f32.mrb[56].mxu1  ;;  %v1130_v23 = vadd.f32 %v1098_v3, %v985_v15  ;;  %v1876_v6 = vpop.f32.mrb[57].mxu0 }
 0x15d   : > { %v987_v24 = vadd.f32 %v961_v47, %v841_v28  ;;  %v1858_v8 = vpop.f32.mrb[57].mxu1  ;;  %v1101_v4 = vpop.f32.mrb[58].mxu0 }
 0x15e   : > { %v964_v44 = vpop.f32.mrb[58].mxu1  ;;  %v1131_v50 = vadd.f32 %v1101_v4, %v986_v0  ;;  %v1877_v12 = vpop.f32.mrb[59].mxu0 }
 0x15f   : > { %v988_v17 = vadd.f32 %v964_v44, %v842_v37  ;;  %v1859_v9 = vpop.f32.mrb[59].mxu1 }
 0x163   : > { %v1106_v11 = vpop.f32.mrb[60].mxu0 }
 0x164   : > { %v969_v18 = vpop.f32.mrb[60].mxu1  ;;  %v1132_v21 = vadd.f32 %v1106_v11, %v987_v24  ;;  %v1880_v25 = vpop.f32.mrb[61].mxu0 }
 0x165   : > { %v989_v22 = vadd.f32 %v969_v18, %v843_v43  ;;  %v1862_v19 = vpop.f32.mrb[61].mxu1  ;;  %v1109_v20 = vpop.f32.mrb[62].mxu0 }
 0x166   : > { %v972_v45 = vpop.f32.mrb[62].mxu1  ;;  %v1133_v29 = vadd.f32 %v1109_v20, %v988_v17  ;;  %v1881_v30 = vpop.f32.mrb[63].mxu0 }
 0x167   : > { %v990_v31 = vadd.f32 %v972_v45, %v844_v55  ;;  %v1863_v27 = vpop.f32.mrb[63].mxu1 }
 0x16b   : > { %v1114_v28 = vpop.f32.mrb[64].mxu0 }
 0x16c   : > { %v977_v33 = vpop.f32.mrb[64].mxu1  ;;  %v2402_v38 = vadd.f32 %v1114_v28, %v989_v22  ;;  %v1884_v39 = vpop.f32.mrb[65].mxu0 }
 0x16d   : > { %v991_v40 = vadd.f32 %v977_v33, %v845_v49  ;;  %v1117_v37 = vpop.f32.mrb[66].mxu0  ;;  %v1866_v35 = vpop.f32.mrb[65].mxu1 }
 0x16e   : > { %v2404_v41 = vadd.f32 %v1117_v37, %v990_v31  ;;  %v1885_v26 = vpop.f32.mrb[67].mxu0  ;;  %v980_v46 = vpop.f32.mrb[66].mxu1 }
 0x16f   : > { %v1867_v43 = vpop.f32.mrb[67].mxu1 }
 0x173   : > { %v1122_v34 = vpop.f32.mrb[68].mxu0 }
 0x174   : > { %v2406_v42 = vadd.f32 %v1122_v34, %v991_v40  ;;  %v1241_v53 = vpop.f32.mrb[68].mxu1  ;;  %v1888_v36 = vpop.f32.mrb[69].mxu0 }
 0x175   : > { %v1279_v55 = vadd.f32 %v1241_v53, %v1128_v62  ;;  %v1894_v48 = vpop.f32.mrb[69].mxu1  ;;  %v1125_v7 = vpop.f32.mrb[70].mxu0 }
 0x176   : > { %v1244_v14 = vpop.f32.mrb[70].mxu1  ;;  %v1889_v16 = vpop.f32.mrb[71].mxu0 }
 0x177   : > { %v1280_v54 = vadd.f32 %v1244_v14, %v1129_v63  ;;  %v1895_v10 = vpop.f32.mrb[71].mxu1 }
 0x17b   : > { %v1356_v49 = vpop.f32.mrb[72].mxu0 }
 0x17c   : > { %v1249_v13 = vpop.f32.mrb[72].mxu1  ;;  %v1394_v56 = vadd.f32 %v1356_v49, %v1279_v55  ;;  %v1916_v1 = vpop.f32.mrb[73].mxu0 }
 0x17d   : > { %v1281_v57 = vadd.f32 %v1249_v13, %v1130_v23  ;;  %v1898_v52 = vpop.f32.mrb[73].mxu1  ;;  %v1359_v5 = vpop.f32.mrb[74].mxu0 }
 0x17e   : > { %v1410_v62 = vadd.f32 %v2411_v51, %v1394_v56  ;;  %v1252_v58 = vpop.f32.mrb[74].mxu1  ;;  %v1395_v15 = vadd.f32 %v1359_v5, %v1280_v54  ;;  %v1917_v59 = vpop.f32.mrb[75].mxu0 }
 0x17f   : > { %v1282_v60 = vadd.f32 %v1252_v58, %v1131_v50  ;;  %v1899_v61 = vpop.f32.mrb[75].mxu1 }
 0x180   : > { %v1428_v63 = vmul.f32 0.01, %v1410_v62  ;;  %v1411_v32 = vadd.f32 %v2411_v51, %v1395_v15  ;;  %vm1419_vm9 = vcmp.gt.f32.partialorder %v1410_v62, 0.0 }
 0x182   : > { %vm1420_vm10 = vcmp.gt.f32.partialorder %v1411_v32, 0.0  ;;  %v1429_v0 = vmul.f32 0.01, %v1411_v32  ;;  %v1437_v3 = vsel %vm1419_vm9, %v1410_v62, %v1428_v63 }
 0x183   : > { %v1364_v2 = vpop.f32.mrb[76].mxu0 }
 0x184   : > { %v1438_v47 = vsel %vm1420_vm10, %v1411_v32, %v1429_v0  ;;  %v1257_v23 = vpop.f32.mrb[76].mxu1  ;;  %v1396_v6 = vadd.f32 %v1364_v2, %v1281_v57  ;;  %v1920_v24 = vpop.f32.mrb[77].mxu0 }
 0x185   : > { %v1662_v8 = vpack.c.bf16 %v1438_v47, %v1437_v3  ;;  %v1283_v4 = vadd.f32 %v1257_v23, %v1132_v21  ;;  %v1902_v44 = vpop.f32.mrb[77].mxu1  ;;  %v1367_v50 = vpop.f32.mrb[78].mxu0 }
 0x186   : > { %v1412_v12 = vadd.f32 %v2411_v51, %v1396_v6  ;;  %v1260_v17 = vpop.f32.mrb[78].mxu1  ;;  %v1397_v9 = vadd.f32 %v1367_v50, %v1282_v60  ;;  %v1921_v11 = vpop.f32.mrb[79].mxu0 }
 0x187   : > { %1663 = vst [vmem:[%s2419_s16] sm:$0xff] %v1662_v8   ;;  %v1284_v18 = vadd.f32 %v1260_v17, %v1133_v29  ;;  %v1903_v25 = vpop.f32.mrb[79].mxu1 }
 0x188   : > { %v1430_v22 = vmul.f32 0.01, %v1412_v12  ;;  %v1413_v19 = vadd.f32 %v2411_v51, %v1397_v9  ;;  %vm1421_vm11 = vcmp.gt.f32.partialorder %v1412_v12, 0.0 }
 0x18a   : > { %vm1422_vm12 = vcmp.gt.f32.partialorder %v1413_v19, 0.0  ;;  %v1431_v20 = vmul.f32 0.01, %v1413_v19  ;;  %v1439_v30 = vsel %vm1421_vm11, %v1412_v12, %v1430_v22 }
 0x18b   : > { %v1372_v45 = vpop.f32.mrb[80].mxu0 }
 0x18c   : > { %v1440_v21 = vsel %vm1422_vm12, %v1413_v19, %v1431_v20  ;;  %v1265_v31 = vpop.f32.mrb[80].mxu1  ;;  %v1398_v27 = vadd.f32 %v1372_v45, %v1283_v4  ;;  %v1924_v28 = vpop.f32.mrb[81].mxu0 }
 0x18d   : > { %v1667_v33 = vpack.c.bf16 %v1440_v21, %v1439_v30  ;;  %v1285_v39 = vadd.f32 %v1265_v31, %v2402_v38  ;;  %v1906_v40 = vpop.f32.mrb[81].mxu1  ;;  %v1375_v37 = vpop.f32.mrb[82].mxu0 }
 0x18e   : > { %v1414_v29 = vadd.f32 %v2411_v51, %v1398_v27  ;;  %v1268_v35 = vpop.f32.mrb[82].mxu1  ;;  %v1399_v26 = vadd.f32 %v1375_v37, %v1284_v18  ;;  %v1925_v46 = vpop.f32.mrb[83].mxu0 }
 0x18f   : > { %1679 = vst [vmem:[%s2419_s16 + $0x8] sm:$0xff] %v1667_v33   ;;  %v1286_v43 = vadd.f32 %v1268_v35, %v2404_v41  ;;  %v1907_v34 = vpop.f32.mrb[83].mxu1 }
 0x190   : > { %v1432_v53 = vmul.f32 0.01, %v1414_v29  ;;  %v1415_v36 = vadd.f32 %v2411_v51, %v1399_v26  ;;  %vm1423_vm13 = vcmp.gt.f32.partialorder %v1414_v29, 0.0 }
 0x192   : > { %vm1424_vm14 = vcmp.gt.f32.partialorder %v1415_v36, 0.0  ;;  %v1433_v55 = vmul.f32 0.01, %v1415_v36  ;;  %v1441_v38 = vsel %vm1423_vm13, %v1414_v29, %v1432_v53 }
 0x193   : > { %v1380_v48 = vpop.f32.mrb[84].mxu0 }
 0x194   : > { %v1442_v7 = vsel %vm1424_vm14, %v1415_v36, %v1433_v55  ;;  %v1273_v14 = vpop.f32.mrb[84].mxu1  ;;  %v1400_v16 = vadd.f32 %v1380_v48, %v1285_v39  ;;  %v1928_v54 = vpop.f32.mrb[85].mxu0 }
 0x195   : > { %v1672_v10 = vpack.c.bf16 %v1442_v7, %v1441_v38  ;;  %v1287_v49 = vadd.f32 %v1273_v14, %v2406_v42  ;;  %v1383_v13 = vpop.f32.mrb[86].mxu0  ;;  %v1910_v56 = vpop.f32.mrb[85].mxu1 }
 0x196   : > { %v1416_v41 = vadd.f32 %v2411_v51, %v1400_v16  ;;  %v1401_v1 = vadd.f32 %v1383_v13, %v1286_v43  ;;  %v1929_v57 = vpop.f32.mrb[87].mxu0  ;;  %v1276_v52 = vpop.f32.mrb[86].mxu1 }
 0x197   : > { %1680 = vst [vmem:[%s2419_s16 + $0x10] sm:$0xff] %v1672_v10   ;;  %v1911_v5 = vpop.f32.mrb[87].mxu1 }
 0x198   : > { %v1434_v62 = vmul.f32 0.01, %v1416_v41  ;;  %v1417_v58 = vadd.f32 %v2411_v51, %v1401_v1  ;;  %vm1425_vm15 = vcmp.gt.f32.partialorder %v1416_v41, 0.0 }
 0x19a   : > { %vm1426_vm0 = vcmp.gt.f32.partialorder %v1417_v58, 0.0  ;;  %v1435_v15 = vmul.f32 0.01, %v1417_v58  ;;  %v1443_v60 = vsel %vm1425_vm15, %v1416_v41, %v1434_v62 }
 0x19b   : > { %v1388_v59 = vpop.f32.mrb[88].mxu0 }
 0x19c   : > { %v1444_v42 = vsel %vm1426_vm0, %v1417_v58, %v1435_v15  ;;  %v1402_v61 = vadd.f32 %v1388_v59, %v1287_v49  ;;  %v1932_v63 = vpop.f32.mrb[89].mxu0 }
 0x19d   : > { %v1677_v32 = vpack.c.bf16 %v1444_v42, %v1443_v60  ;;  %v1391_v0 = vpop.f32.mrb[90].mxu0 }
 0x19e   : > { %v1418_v2 = vadd.f32 %v2411_v51, %v1402_v61  ;;  %v1933_v3 = vpop.f32.mrb[91].mxu0 }
 0x19f   : > { %1681 = vst [vmem:[%s2419_s16 + $0x18] sm:$0xff] %v1677_v32  }
 0x1a0   : > { %vm1427_vm1 = vcmp.gt.f32.partialorder %v1418_v2, 0.0  ;;  %v1436_v47 = vmul.f32 0.01, %v1418_v2 }
 0x1a2   : > { %v1445_v23 = vsel %vm1427_vm1, %v1418_v2, %v1436_v47 }
 0x1a3   : > { %v1658_v6 = vpack.c.bf16 %v1445_v23, %v1445_v23 }
 0x1a5   : > { %1491 = vst [vmem:[%s2419_s16 + $0x20] sm:$0xf] %v1658_v6 }
 0x1a6 PF: > { %s13_s12 = sadd.s32 1, %s1985_s12  }
 0x1a7   : > { %p10_p4 = scmp.ge.s32.totalorder %s13_s12, 4  }
 0x1a9   :  { %12 = sbr.rel (!%p10_p4) target bundleno = 1 (0x1), region = 70 }

// kernel: encode_conv_forward.3
= control target key start
LH: loop header
LB: loop body
LE: loop exit
PB: predicated region body
PF: predicated region fallthrough
CT: control target
= control target key end

     0   :  { %s4267_s18 = smov 0   ;;  %s5493_s0 = inlined_call_operand.vmem [shape: bf16[2,110,128], index: 0, kind: input, shape index: {}]   ;;  %s5494_s1 = inlined_call_operand.vmem [shape: bf16[2,110,8], index: 1, kind: input, shape index: {}]   ;;  %s5495_s2 = inlined_call_operand.vmem [shape: bf16[9,128,128], index: 2, kind: input, shape index: {}]   ;;  %s5496_s3 = inlined_call_operand.vmem [shape: bf16[9,8,128], index: 3, kind: input, shape index: {}]   ;;  %s5497_s4 = inlined_call_operand.vmem [shape: f32[1,128], index: 4, kind: input, shape index: {}]   ;;  %s5498_s5 = inlined_call_operand.vmem [shape: f32[2,80,128], index: 5, kind: output, shape index: {}]  }
   0x1 LB: > { %s3128_s19 = sadd.s32 4294967295, %s4233_s18   ;;  %p3132_p0 = scmp.ge.s32.totalorder %s4233_s18, 1  ;;  %s4233_s18 = sphi %s4267_s18, %s15_s18  }
   0x2   : > { %p197_p1 = scmp.lt.s32.totalorder %s4233_s18, 3 }
   0x4   : > { %p198_p2 = pnand %p3132_p0, %p197_p1 }
   0x5   : > { %v4127_v0 = vld [vmem:[%s5495_s2] sm:$0xff] (!%p198_p2)   ;;  %v4235_v1 = vmov (!%p198_p2), 0.0   ;;  %vm341_vm0 = vcmask (!%p198_p2), 1043456   ;;  %v4128_v4 = vld [vmem:[%s5495_s2 + $0x8] sm:$0xff] (!%p198_p2)   ;;  %p230_p3 = scmp.lt.s32.totalorder (!%p198_p2), %s3128_s19, 1  ;;  %vm4236_vm1 = vmmov (!%p198_p2), 0  }
   0x6   : > { %201 = sbr.rel (%p198_p2) target bundleno = 605 (0x25d), region = 40  ;;  %3613 = vmatprep.subr.bf16.mxu1 (!%p198_p2), %v4235_v1  ;;  %3591 = vmatprep.subr.bf16.mxu0 (!%p198_p2), %v4235_v1  ;;  %v324_v2 = vld [vmem:[%s5496_s3] sm:$0xf] (!%p198_p2)  ;;  %v4134_v5 = vld [vmem:[%s5495_s2 + $0x10] sm:$0xff] (!%p198_p2)   ;;  %vm325_vm2 = vcmask (!%p198_p2), 64512   ;;  %v4135_v14 = vld [vmem:[%s5495_s2 + $0x18] sm:$0xff] (!%p198_p2)  }
   0x7   : > { %3614 = vmatpush3.bf16.msra.mxu1 (!%p198_p2), %v4127_v0  ;;  %v343_v3 = vsel (!%p198_p2), %vm341_vm0, %v324_v2, 0  ;;  %3593 = vmatprep.mubr.msk.bf16.mxu0 (!%p198_p2), %vm4236_vm1, %v4235_v1  ;;  %v4137_v6 = vld [vmem:[%s5495_s2 + $0x40] sm:$0xff] (!%p198_p2)   ;;  %v4139_v16 = vld [vmem:[%s5495_s2 + $0x48] sm:$0xff] (!%p198_p2)   ;;  %v4141_v19 = vld [vmem:[%s5495_s2 + $0x50] sm:$0xff] (!%p198_p2)   ;;  %vm904_vm3 = vcmask (!%p198_p2), 1046528   ;;  %vm1854_vm6 = vcmask (!%p198_p2), 1045504  }
   0x8   : > { %3615 = vmatprep.subr.bf16.mxu1 (!%p198_p2), %v4235_v1  ;;  %3592 = vmatpush3.bf16.msra.mxu0 (!%p198_p2), %v343_v3  ;;  %v4136_v17 = vld [vmem:[%s5495_s2 + $0x20] sm:$0xff] (!%p198_p2)   ;;  %v4138_v25 = vld [vmem:[%s5495_s2 + $0x28] sm:$0xff] (!%p198_p2)   ;;  %v4143_v28 = vld [vmem:[%s5495_s2 + $0x58] sm:$0xff] (!%p198_p2)   ;;  %vm557_vm4 = vsmask.f32 (!%p198_p2), 7424  ;;  %vm2742_vm8 = vcmask (!%p198_p2), 1044480  }
   0x9   : > { %3649 = vmatprep.subr.bf16.mxu0 (!%p198_p2), %v4235_v1  ;;  %3629 = vmatprep.mubr.msk.bf16.mxu1 (!%p198_p2), %vm4236_vm1, %v4235_v1  ;;  %v4140_v29 = vld [vmem:[%s5495_s2 + $0x30] sm:$0xff] (!%p198_p2)   ;;  %v4142_v33 = vld [vmem:[%s5495_s2 + $0x38] sm:$0xff] (!%p198_p2)   ;;  %v4150_v36 = vld [vmem:[%s5495_s2 + $0x60] sm:$0xff] (!%p198_p2)   ;;  %vm1491_vm5 = vsmask.f32 (!%p198_p2), 6400 }
   0xa   : > { %v3185_v41 = vld [vmem:[%s5496_s3 + $0x4] sm:$0xf] (!%p198_p2)  ;;  %v4151_v44 = vld [vmem:[%s5495_s2 + $0x68] sm:$0xff] (!%p198_p2)   ;;  %v4153_v50 = vld [vmem:[%s5495_s2 + $0x70] sm:$0xff] (!%p198_p2)   ;;  %vm2419_vm7 = vsmask.f32 (!%p198_p2), 5376 }
   0xb   : > { %3616 = vmatpush3.bf16.msra.mxu1 (!%p198_p2), %v4128_v4  ;;  %v796_v46 = vsel (!%p198_p2), %vm341_vm0, %v3185_v41, 0  ;;  %v4154_v57 = vld [vmem:[%s5495_s2 + $0x78] sm:$0xff] (!%p198_p2)  }
   0xc   : > { %3617 = vmatprep.subr.bf16.mxu1 (!%p198_p2), %v4235_v1 }
   0xd   : > { %s5522_s19 = smov (!%p230_p3, %s3128_s19), 1 }
   0xe   : > { %s4115_s26 = smul.u32 56, %s5522_s19 }
   0xf   : > { %3618 = vmatpush3.bf16.msra.mxu1 %v4134_v5  ;;  %s4116_s17 = smul.u32 80, %s5522_s19 }
  0x10   : > { %s4303_s6 = scalar_lea.vmem %s5494_s1, %s4115_s26  ;;  %3619 = vmatprep.subr.bf16.mxu1 %v4235_v1  ;;  %s4333_s15 = scalar_lea.vmem %s5493_s0, %s4115_s26 }
  0x11   : > { %v272_v7 = vld [vmem:[%s4303_s6] sm:$0xf]  ;;  %v273_v8 = vld [vmem:[%s4303_s6 + $0x4] sm:$0xf]  ;;  %v274_v9 = vld [vmem:[%s4303_s6 + $0x8] sm:$0xf]  ;;  %s5467_s21 = scalar_lea.vmem %s5498_s5, %s4116_s17 }
  0x12   : > { %v275_v10 = vld [vmem:[%s4303_s6 + $0xc] sm:$0xf]  ;;  %v276_v11 = vld [vmem:[%s4303_s6 + $0x10] sm:$0xf]  ;;  %v4313_v12 = vcombine.low %v272_v7, %v273_v8  ;;  %v4315_v13 = vcombine.low %v273_v8, %v274_v9  ;;  %v247_v20 = vld [vmem:[%s4333_s15 + $0x4] sm:$0xf] }
  0x13   : > { %v4320_v15 = vcombine.low %v275_v10, %v276_v11  ;;  %3620 = vmatpush3.bf16.msra.mxu1 %v4135_v14  ;;  %v4340_v18 = vcombine.low %v274_v9, %v275_v10  ;;  %v248_v21 = vld [vmem:[%s4333_s15 + $0x8] sm:$0xf]  ;;  %v249_v22 = vld [vmem:[%s4333_s15 + $0xc] sm:$0xf]  ;;  %v4349_v23 = vld [vmem:[%s4333_s15 + $0x10] sm:$0xf] }
  0x14   : > { %3594 = vmatmul.mubr.msk.bf16.vlgmr.msra.gmra.mrb[0].mxu0 %vm325_vm2, %v4313_v12  ;;  %3621 = vmatprep.subr.bf16.mxu1 %v4235_v1  ;;  %v4351_v24 = vcombine.low %v247_v20, %v248_v21  ;;  %v4358_v26 = vcombine.low %v249_v22, %v4349_v23  ;;  %v277_v27 = vld [vmem:[%s4303_s6 + $0x14] sm:$0xf]  ;;  %v4376_v31 = vld [vmem:[%s4333_s15 + $0x18] sm:$0xf]  ;;  %v246_v35 = vld [vmem:[%s4333_s15] sm:$0xf]  ;;  %v4448_v55 = vcombine.low %v248_v21, %v249_v22 }
  0x15   : > { %3597 = vmatprep.mubr.msk.bf16.mxu0 %vm4236_vm1, %v4235_v1  ;;  %3650 = vmatpush3.bf16.msra.mxu0 %v4137_v6  ;;  %v251_v30 = vld [vmem:[%s4333_s15 + $0x14] sm:$0xf]  ;;  %v4378_v32 = vcombine.low %v276_v11, %v277_v27  ;;  %v4392_v37 = vld [vmem:[%s4333_s15 + $0x1c] sm:$0xf]  ;;  %v4395_v38 = vld [vmem:[%s4333_s15 + $0x20] sm:$0xf]  ;;  %v4411_v43 = vcombine.low %v246_v35, %v247_v20 }
  0x16   : > { %3651 = vmatprep.subr.bf16.mxu0 %v4235_v1  ;;  %v4384_v34 = vcombine.low %v251_v30, %v4376_v31  ;;  %v278_v39 = vld [vmem:[%s4303_s6 + $0x18] sm:$0xf]  ;;  %v4401_v40 = vcombine.low %v4392_v37, %v4395_v38  ;;  %v279_v42 = vld [vmem:[%s4303_s6 + $0x1c] sm:$0xf]  ;;  %v4424_v48 = vld [vmem:[%s4333_s15 + $0x24] sm:$0xf]  ;;  %v4479_v5 = vcombine.low %v4349_v23, %v251_v30  ;;  %v4506_v23 = vcombine.low %v4376_v31, %v4392_v37 }
  0x17   : > { %3622 = vmatpush3.bf16.msra.mxu1 %v4136_v17  ;;  %v4417_v45 = vcombine.low %v277_v27, %v278_v39  ;;  %v4421_v47 = vcombine.low %v278_v39, %v279_v42  ;;  %v4427_v49 = vld [vmem:[%s4333_s15 + $0x28] sm:$0xf]  ;;  %v257_v51 = vld [vmem:[%s4333_s15 + $0x2c] sm:$0xf]  ;;  %v280_v54 = vld [vmem:[%s4303_s6 + $0x20] sm:$0xf] }
  0x18   : > { %3623 = vmatprep.subr.bf16.mxu1 %v4235_v1  ;;  %v4436_v52 = vcombine.low %v4424_v48, %v4427_v49  ;;  %v4441_v53 = vcombine.low %v4427_v49, %v257_v51  ;;  %v281_v56 = vld [vmem:[%s4303_s6 + $0x24] sm:$0xf]  ;;  %v561_v58 = vshll.u32 %v4411_v43, 16  ;;  %v559_v59 = vshrl.u32 %v4411_v43, 16  ;;  %v4460_v60 = vld [vmem:[%s4303_s6 + $0x28] sm:$0xf] }
  0x19   : > { %3652 = vmatpush3.bf16.msra.mxu0 %v4139_v16  ;;  %v4462_v61 = vcombine.low %v279_v42, %v280_v54  ;;  %v4464_v62 = vcombine.low %v280_v54, %v281_v56  ;;  %v4467_v63 = vld [vmem:[%s4303_s6 + $0x2c] sm:$0xf]  ;;  %v5500_v2 = vshll.u32 %v4448_v55, 16  ;;  %v4472_v3 = vcombine.low %v281_v56, %v4460_v60  ;;  %v4156_v17 = vld [vmem:[%s5495_s2 + $0x80] sm:$0xff]  }
  0x1a   : > { %3653 = vmatprep.subr.bf16.mxu0 %v4235_v1  ;;  %v563_v0 = vrot.slane %v561_v58, 1  ;;  %v4476_v4 = vcombine.low %v4460_v60, %v4467_v63  ;;  %v743_v6 = vshll.u32 %v4313_v12, 16  ;;  %v5505_v7 = vshll.u32 %v4479_v5, 16  ;;  %v4157_v42 = vld [vmem:[%s5495_s2 + $0x88] sm:$0xff]  }
  0x1b   : > { %3624 = vmatpush3.bf16.msra.mxu1 %v4138_v25  ;;  %v568_v9 = vrot.slane %v5500_v2, 1  ;;  %v741_v10 = vshrl.u32 %v4313_v12, 16  ;;  %v5506_v11 = vshrl.u32 %v4448_v55, 16  ;;  %v1202_v20 = vrot.slane %v4358_v26, 1 }
  0x1c   : > { %3598 = vmatmul.mubr.msk.bf16.gmra.mrb[4].mxu0 %vm325_vm2, %v4340_v18  ;;  %3625 = vmatprep.subr.bf16.mxu1 %v4235_v1  ;;  %v564_v8 = vor.u32 %v563_v0, %v559_v59  ;;  %v745_v14 = vrot.slane %v743_v6, 1  ;;  %v576_v16 = vrot.slane %v5505_v7, 1  ;;  %v1204_v21 = vrot.slane %v4384_v34, 1 }
  0x1d   : > { %3601 = vmatprep.mubr.msk.bf16.mxu0 %vm4236_vm1, %v4235_v1  ;;  %3654 = vmatpush3.bf16.msra.mxu0 %v4141_v19  ;;  %v1201_v19 = vrot.slane %v4351_v24, 1  ;;  %v5504_v25 = vshrl.u32 %v4479_v5, 16  ;;  %v1206_v27 = vrot.slane %v4401_v40, 1  ;;  %v1208_v30 = vrot.slane %v4436_v52, 1 }
  0x1e   : > { %3655 = vmatprep.subr.bf16.mxu0 %v4235_v1  ;;  %v569_v22 = vsel %vm557_vm4, %v564_v8, %v568_v9  ;;  %v572_v31 = vor.u32 %v5506_v11, %v568_v9  ;;  %v5499_v35 = vshll.u32 %v4506_v23, 16  ;;  %v1362_v37 = vrot.slane %v4315_v13, 1 }
  0x1f   : > { %3626 = vmatpush3.bf16.msra.mxu1 %v4140_v29  ;;  %v4516_v29 = vsel %vm904_vm3, %v1202_v20, %v1204_v21  ;;  %v4529_v39 = vsel %vm904_vm3, %v1206_v27, %v1208_v30  ;;  %v1363_v41 = vrot.slane %v4320_v15, 1  ;;  %v1367_v59 = vrot.slane %v4462_v61, 1 }
  0x20   : > { %3627 = vmatprep.subr.bf16.mxu1 %v4235_v1  ;;  %v577_v58 = vsel %vm557_vm4, %v572_v31, %v576_v16  ;;  %v1493_v9 = vshrl.u32 %v4351_v24, 16  ;;  %v5509_v7 = vshll.u32 %v4378_v32, 16 }
  0x21   : > { %3656 = vmatpush3.bf16.msra.mxu0 %v4143_v28  ;;  %v4513_v28 = vsel %vm904_vm3, %v1201_v19, %v1202_v20  ;;  %v4547_v54 = vsel %vm904_vm3, %v1362_v37, %v1363_v41  ;;  %v1504_v19 = vshll.u32 %v4358_v26, 16 }
  0x22   : > { %3657 = vmatprep.subr.bf16.mxu0 %v4235_v1  ;;  %v1495_v20 = vrot.slane %v1493_v9, 1 }
  0x23   : > { %3628 = vmatpush3.bf16.msra.mxu1 %v4142_v33  ;;  %v4519_v33 = vcombine.low %v257_v51, %v257_v51  ;;  %v5507_v51 = vshrl.u32 %v4506_v23, 16 }
  0x24   : > { %3602 = vmatmul.mubr.msk.bf16.gmra.mrb[8].mxu0 %vm325_vm2, %v4378_v32  ;;  %3685 = vmatprep.subr.bf16.mxu1 %v4235_v1 }
  0x25   : > { %3605 = vmatprep.mubr.msk.bf16.mxu0 %vm4236_vm1, %v4235_v1  ;;  %3658 = vmatpush3.bf16.msra.mxu0 %v4150_v36  ;;  %v4525_v36 = vsel %vm904_vm3, %v1204_v21, %v1206_v27  ;;  %v1210_v56 = vrot.slane %v4519_v33, 1  ;;  %v5503_v21 = vrot.slane %v4472_v3, 1  ;;  %v1513_v27 = vshll.u32 %v4384_v34, 16 }
  0x26   : > { %3659 = vmatprep.subr.bf16.mxu0 %v4235_v1  ;;  %3630 = vmatmul.mubr.bf16.vlgmr.msra.gmra.mrb[0].mxu1 %v4411_v43 }
  0x27   : > { %3686 = vmatpush3.bf16.msra.mxu1 %v796_v46  ;;  %3633 = vmatprep.mubr.msk.bf16.mxu1 %vm4236_vm1, %v4235_v1  ;;  %v4541_v46 = vor.u32 %v745_v14, %v741_v10  ;;  %v4559_v6 = vsel %vm904_vm3, %v1208_v30, %v1210_v56  ;;  %v4159_v10 = vld [vmem:[%s5495_s2 + $0x90] sm:$0xff]   ;;  %v4160_v30 = vld [vmem:[%s5495_s2 + $0x98] sm:$0xff]   ;;  %v4591_v56 = vsel %vm904_vm3, %v1367_v59, %v5503_v21  ;;  %v1515_v9 = vrot.slane %v1513_v27, 2 }
  0x28   : > { %3743 = vmatprep.subr.bf16.mxu1 %v4235_v1  ;;  %v1531_v27 = vshll.u32 %v4436_v52, 16 }
  0x29   : > { %3660 = vmatpush3.bf16.msra.mxu0 %v4151_v44  ;;  %v4539_v44 = vcombine.low %v4395_v38, %v4424_v48  ;;  %v580_v38 = vor.u32 %v5504_v25, %v576_v16  ;;  %v584_v48 = vrot.slane %v5499_v35, 1  ;;  %v1496_v16 = vshll.u32 %v4351_v24, 16 }
  0x2a   : > { %3661 = vmatprep.subr.bf16.mxu0 %v4235_v1 }
  0x2b   : > { %v5502_v0 = vshll.u32 %v4539_v44, 16  ;;  %v1498_v37 = vrot.slane %v1496_v16, 2  ;;  %v1522_v16 = vshll.u32 %v4401_v40, 16 }
  0x2c   : > { %3606 = vmatmul.mubr.msk.bf16.gmra.mrb[12].mxu0 %vm325_vm2, %v4421_v47 }
  0x2d   : > { %3609 = vmatprep.mubr.msk.bf16.mxu0 %vm4236_vm1, %v4235_v1  ;;  %3662 = vmatpush3.bf16.msra.mxu0 %v4153_v50  ;;  %v5501_v50 = vshll.u32 %v4340_v18, 16  ;;  %v1499_v35 = vor.u32 %v1498_v37, %v1495_v20  ;;  %v1524_v20 = vrot.slane %v1522_v16, 2  ;;  %v1692_v16 = vshrl.u32 %v4320_v15, 16 }
  0x2e   : > { %3663 = vmatprep.subr.bf16.mxu0 %v4235_v1  ;;  %3634 = vmatmul.mubr.bf16.gmra.mrb[4].mxu1 %v4448_v55 }
  0x2f   : > { %3637 = vmatprep.mubr.msk.bf16.mxu1 %vm4236_vm1, %v4235_v1  ;;  %v4586_v31 = vrot.slane %v5501_v50, 1  ;;  %v1519_v50 = vshrl.u32 %v4401_v40, 16 }
  0x31   : > { %3664 = vmatpush3.bf16.msra.mxu0 %v4154_v57  ;;  %v1365_v57 = vrot.slane %v4417_v45, 1 }
  0x32   : > { %3707 = vmatprep.subr.bf16.mxu0 %v4235_v1 }
  0x33   : > { %v4562_v8 = vsel %vm904_vm3, %v1363_v41, %v1365_v57  ;;  %v4570_v14 = vsel %vm904_vm3, %v1365_v57, %v1367_v59  ;;  %v4601_v59 = vrot.slane %v5502_v0, 1  ;;  %v1695_v0 = vshll.u32 %v4320_v15, 16 }
  0x34   : > { %3610 = vmatmul.mubr.msk.bf16.gmra.mrb[16].mxu0 %vm325_vm2, %v4464_v62 }
  0x35   : > { %3665 = vmatprep.mubr.msk.bf16.mxu0 %vm4236_vm1, %v4235_v1  ;;  %v1697_v25 = vrot.slane %v1695_v0, 2  ;;  %v4162_v0 = vld [vmem:[%s5495_s2 + $0xa8] sm:$0xff]  }
  0x36   : > { %3638 = vmatmul.mubr.bf16.gmra.mrb[8].mxu1 %v4479_v5 }
  0x37   : > { %3641 = vmatprep.mubr.msk.bf16.mxu1 %vm4236_vm1, %v4235_v1 }
  0x3c   : > { %3666 = vmatmul.mubr.bf16.vlgmr.msra.gmra.mrb[20].mxu0 %v569_v22  ;;  %v1510_v22 = vshrl.u32 %v4384_v34, 16 }
  0x3d   : > { %3669 = vmatprep.mubr.msk.bf16.mxu0 %vm4236_vm1, %v4235_v1  ;;  %3708 = vmatpush3.bf16.msra.mxu0 %v4156_v17  ;;  %v1501_v17 = vshrl.u32 %v4358_v26, 16 }
  0x3e   : > { %3709 = vmatprep.subr.bf16.mxu0 %v4235_v1  ;;  %3642 = vmatmul.mubr.bf16.gmra.mrb[12].mxu1 %v4506_v23  ;;  %v1512_v57 = vrot.slane %v1510_v22, 1 }
  0x3f   : > { %3645 = vmatprep.mubr.msk.bf16.mxu1 %vm4236_vm1, %v4235_v1  ;;  %v1503_v41 = vrot.slane %v1501_v17, 1 }
  0x40   : > { %v1516_v17 = vor.u32 %v1515_v9, %v1512_v57  ;;  %v1687_v57 = vshll.u32 %v4315_v13, 16  ;;  %v1533_v9 = vrot.slane %v1531_v27, 2  ;;  %v1694_v27 = vrot.slane %v1692_v16, 1 }
  0x41   : > { %3710 = vmatpush3.bf16.msra.mxu0 %v4157_v42  ;;  %v1506_v42 = vrot.slane %v1504_v19, 2  ;;  %v1528_v19 = vshrl.u32 %v4436_v52, 16  ;;  %v5508_v16 = vshll.u32 %v4421_v47, 16 }
  0x42   : > { %3711 = vmatprep.subr.bf16.mxu0 %v4235_v1  ;;  %v1689_v21 = vrot.slane %v1687_v57, 2 }
  0x43   : > { %v1507_v2 = vor.u32 %v1506_v42, %v1503_v41  ;;  %v1530_v41 = vrot.slane %v1528_v19, 1  ;;  %v1684_v42 = vshrl.u32 %v4315_v13, 16 }
  0x44   : > { %3670 = vmatmul.mubr.bf16.gmra.mrb[24].mxu0 %v577_v58  ;;  %v585_v58 = vsel %vm557_vm4, %v580_v38, %v584_v48  ;;  %v3215_v38 = vld [vmem:[%s5496_s3 + $0x8] sm:$0xf] }
  0x45   : > { %3673 = vmatprep.mubr.msk.bf16.mxu0 %vm4236_vm1, %v4235_v1  ;;  %3712 = vmatpush3.bf16.msra.mxu0 %v4159_v10  ;;  %v4605_v22 = vsel %vm1491_vm5, %v1499_v35, %v1507_v2  ;;  %v1521_v10 = vrot.slane %v1519_v50, 1  ;;  %v4612_v37 = vsel %vm1491_vm5, %v1507_v2, %v1516_v17  ;;  %v4161_v35 = vld [vmem:[%s5495_s2 + $0xa0] sm:$0xff]   ;;  %v588_v2 = vor.u32 %v5507_v51, %v584_v48 }
  0x46   : > { %3713 = vmatprep.subr.bf16.mxu0 %v4235_v1  ;;  %3646 = vmatmul.mubr.bf16.gmra.mrb[16].mxu1 %v4539_v44  ;;  %v1686_v19 = vrot.slane %v1684_v42, 1  ;;  %v1701_v48 = vshrl.u32 %v4417_v45, 16  ;;  %v1704_v51 = vshll.u32 %v4417_v45, 16  ;;  %v751_v42 = vshrl.u32 %v4340_v18, 16 }
  0x47   : > { %v1525_v50 = vor.u32 %v1524_v20, %v1521_v10  ;;  %3687 = vmatprep.mubr.msk.bf16.mxu1 %vm4236_vm1, %v4235_v1  ;;  %v4634_v20 = vor.u32 %v1533_v9, %v1530_v41  ;;  %v594_v41 = vshrl.u32 %v4539_v44, 16  ;;  %v758_v9 = vshrl.u32 %v4378_v32, 16 }
  0x48   : > { %v1690_v11 = vor.u32 %v1689_v21, %v1686_v19  ;;  %v1703_v57 = vrot.slane %v1701_v48, 1  ;;  %v905_v48 = vrot.slane %v4411_v43, 1 }
  0x49   : > { %3714 = vmatpush3.bf16.msra.mxu0 %v4160_v30  ;;  %v4629_v30 = vcombine.low %v4427_v49, %v4427_v49  ;;  %v4632_v10 = vsel %vm1491_vm5, %v1516_v17, %v1525_v50  ;;  %v750_v49 = vsel %vm557_vm4, %v4541_v46, %v4586_v31  ;;  %v1087_v17 = vsel %vm341_vm0, %v3215_v38, 0  ;;  %v4166_v38 = vld [vmem:[%s5495_s2 + $0xb0] sm:$0xff]  }
  0x4a   : > { %3715 = vmatprep.subr.bf16.mxu0 %v4235_v1  ;;  %v4650_v21 = vsel %vm1491_vm5, %v1525_v50, %v4634_v20  ;;  %v1706_v46 = vrot.slane %v1704_v51, 2  ;;  %v593_v51 = vsel %vm557_vm4, %v588_v2, %v4601_v59  ;;  %v4167_v2 = vld [vmem:[%s5495_s2 + $0xb8] sm:$0xff]  }
  0x4c   : > { %3674 = vmatmul.mubr.bf16.gmra.mrb[28].mxu0 %v585_v58  ;;  %v1698_v58 = vor.u32 %v1697_v25, %v1694_v27  ;;  %v756_v25 = vrot.slane %v5509_v7, 1  ;;  %v1707_v19 = vor.u32 %v1706_v46, %v1703_v57  ;;  %v1856_v7 = vrot.slane %v4358_v26, 2 }
  0x4d   : > { %3677 = vmatprep.mubr.msk.bf16.mxu0 %vm4236_vm1, %v4235_v1  ;;  %3716 = vmatpush3.bf16.msra.mxu0 %v4161_v35  ;;  %v598_v35 = vshll.u32 %v4629_v30, 16  ;;  %v768_v26 = vshll.u32 %v4464_v62, 16 }
  0x4e   : > { %3717 = vmatprep.subr.bf16.mxu0 %v4235_v1  ;;  %v4661_v50 = vsel %vm1491_vm5, %v1690_v11, %v1698_v58  ;;  %3688 = vmatmul.mubr.msk.bf16.vlgmr.msra.gmra.mrb[20].mxu1 %vm325_vm2, %v750_v49  ;;  %v753_v11 = vor.u32 %v751_v42, %v4586_v31  ;;  %v4675_v27 = vsel %vm1491_vm5, %v1698_v58, %v1707_v19  ;;  %v1710_v31 = vshrl.u32 %v4462_v61, 16 }
  0x4f   : > { %3744 = vmatpush3.bf16.msra.mxu1 %v1087_v17  ;;  %3691 = vmatprep.mubr.msk.bf16.mxu1 %vm4236_vm1, %v4235_v1  ;;  %v600_v49 = vrot.slane %v598_v35, 1  ;;  %v763_v17 = vrot.slane %v5508_v16, 1  ;;  %v596_v58 = vor.u32 %v594_v41, %v4601_v59  ;;  %v1855_v16 = vrot.slane %v4351_v24, 2 }
  0x50   : > { %3801 = vmatprep.subr.bf16.mxu1 %v4235_v1  ;;  %v757_v43 = vsel %vm557_vm4, %v753_v11, %v756_v25  ;;  %v1712_v57 = vrot.slane %v1710_v31, 1  ;;  %v760_v59 = vor.u32 %v758_v9, %v756_v25  ;;  %v906_v24 = vrot.slane %v4448_v55, 1 }
  0x51   : > { %3718 = vmatpush3.bf16.msra.mxu0 %v4162_v0  ;;  %v1713_v0 = vshll.u32 %v4462_v61, 16  ;;  %v4710_v11 = vsel %vm1854_vm6, %v1855_v16, %v1856_v7  ;;  %v765_v25 = vshrl.u32 %v4421_v47, 16  ;;  %v1858_v31 = vrot.slane %v4384_v34, 2  ;;  %v4169_v34 = vld [vmem:[%s5495_s2 + $0xc8] sm:$0xff]  }
  0x52   : > { %3719 = vmatprep.subr.bf16.mxu0 %v4235_v1  ;;  %v907_v16 = vsel %vm904_vm3, %v905_v48, %v906_v24  ;;  %v908_v48 = vrot.slane %v4479_v5, 1 }
  0x53   : > { %v1715_v46 = vrot.slane %v1713_v0, 2  ;;  %v767_v0 = vor.u32 %v765_v25, %v763_v17 }
  0x54   : > { %3678 = vmatmul.mubr.bf16.gmra.mrb[32].mxu0 %v593_v51  ;;  %v601_v51 = vsel %vm557_vm4, %v596_v58, %v600_v49  ;;  %v770_v49 = vrot.slane %v768_v26, 1  ;;  %v4732_v58 = vcombine.low %v4460_v60, %v4460_v60  ;;  %v772_v60 = vshrl.u32 %v4464_v62, 16 }
  0x55   : > { %3681 = vmatprep.mubr.msk.bf16.mxu0 %vm4236_vm1, %v4235_v1  ;;  %3720 = vmatpush3.bf16.msra.mxu0 %v4166_v38  ;;  %v4694_v35 = vor.u32 %v1715_v46, %v1712_v57  ;;  %v909_v57 = vsel %vm904_vm3, %v906_v24, %v908_v48  ;;  %v4173_v46 = vld [vmem:[%s5495_s2 + $0xd0] sm:$0xff]   ;;  %v910_v24 = vrot.slane %v4506_v23, 1 }
  0x56   : > { %3721 = vmatprep.subr.bf16.mxu0 %v4235_v1  ;;  %3692 = vmatmul.mubr.msk.bf16.gmra.mrb[24].mxu1 %vm325_vm2, %v757_v43  ;;  %v4735_v43 = vsel %vm1854_vm6, %v1856_v7, %v1858_v31  ;;  %v776_v7 = vshll.u32 %v4732_v58, 16 }
  0x57   : > { %3695 = vmatprep.mubr.msk.bf16.mxu1 %vm4236_vm1, %v4235_v1  ;;  %v4707_v38 = vsel %vm1491_vm5, %v1707_v19, %v4694_v35  ;;  %v4168_v19 = vld [vmem:[%s5495_s2 + $0xc0] sm:$0xff]  }
  0x59   : > { %3722 = vmatpush3.bf16.msra.mxu0 %v4167_v2  ;;  %v764_v2 = vsel %vm557_vm4, %v760_v59, %v763_v17  ;;  %v771_v17 = vsel %vm557_vm4, %v767_v0, %v770_v49  ;;  %v774_v59 = vor.u32 %v772_v60, %v770_v49  ;;  %v2004_v0 = vrot.slane %v4315_v13, 2 }
  0x5a   : > { %3765 = vmatprep.subr.bf16.mxu0 %v4235_v1 }
  0x5c   : > { %3682 = vmatmul.mubr.bf16.gmra.mrb[36].mxu0 %v601_v51  ;;  %v1860_v51 = vrot.slane %v4401_v40, 2  ;;  %v4174_v40 = vld [vmem:[%s5495_s2 + $0xd8] sm:$0xff]  }
  0x5d   : > { %3723 = vmatprep.mubr.msk.bf16.mxu0 %vm4236_vm1, %v4235_v1 }
  0x5e   : > { %3696 = vmatmul.mubr.msk.bf16.gmra.mrb[28].mxu1 %vm325_vm2, %v764_v2  ;;  %v778_v2 = vrot.slane %v776_v7, 1  ;;  %v1060_v7 = vrot.slane %v4313_v12, 1  ;;  %v4176_v12 = vld [vmem:[%s5495_s2 + $0xe8] sm:$0xff]  }
  0x5f   : > { %3699 = vmatprep.mubr.msk.bf16.mxu1 %vm4236_vm1, %v4235_v1 }
  0x60   : > { %v779_v49 = vsel %vm557_vm4, %v774_v59, %v778_v2 }
  0x64   : > { %3724 = vmatmul.mubr.bf16.vlgmr.msra.gmra.mrb[40].mxu0 %v907_v16  ;;  %v1862_v16 = vrot.slane %v4436_v52, 2  ;;  %v4175_v52 = vld [vmem:[%s5495_s2 + $0xe0] sm:$0xff]  }
  0x65   : > { %3727 = vmatprep.mubr.msk.bf16.mxu0 %vm4236_vm1, %v4235_v1  ;;  %3766 = vmatpush3.bf16.msra.mxu0 %v4168_v19  ;;  %v4759_v19 = vsel %vm1854_vm6, %v1858_v31, %v1860_v51 }
  0x66   : > { %3767 = vmatprep.subr.bf16.mxu0 %v4235_v1  ;;  %3700 = vmatmul.mubr.msk.bf16.gmra.mrb[32].mxu1 %vm325_vm2, %v771_v17  ;;  %v4771_v31 = vsel %vm1854_vm6, %v1860_v51, %v1862_v16  ;;  %v911_v17 = vsel %vm904_vm3, %v908_v48, %v910_v24  ;;  %v912_v48 = vrot.slane %v4539_v44, 1 }
  0x67   : > { %3703 = vmatprep.mubr.msk.bf16.mxu1 %vm4236_vm1, %v4235_v1 }
  0x69   : > { %3768 = vmatpush3.bf16.msra.mxu0 %v4169_v34  ;;  %v2005_v34 = vrot.slane %v4320_v15, 2  ;;  %v3257_v15 = vld [vmem:[%s5496_s3 + $0xc] sm:$0xf] }
  0x6a   : > { %3769 = vmatprep.subr.bf16.mxu0 %v4235_v1  ;;  %v1389_v59 = vsel %vm341_vm0, %v3257_v15, 0  ;;  %v1065_v15 = vrot.slane %v4421_v47, 1 }
  0x6b   : > { %v4786_v13 = vsel %vm1854_vm6, %v2004_v0, %v2005_v34  ;;  %v4177_v0 = vld [vmem:[%s5495_s2 + $0xf0] sm:$0xff]  }
  0x6c   : > { %3728 = vmatmul.mubr.bf16.gmra.mrb[44].mxu0 %v909_v57  ;;  %v1061_v57 = vrot.slane %v4340_v18, 1 }
  0x6d   : > { %3731 = vmatprep.mubr.msk.bf16.mxu0 %vm4236_vm1, %v4235_v1  ;;  %3770 = vmatpush3.bf16.msra.mxu0 %v4173_v46  ;;  %v1864_v46 = vrot.slane %v4519_v33, 2 }
  0x6e   : > { %3771 = vmatprep.subr.bf16.mxu0 %v4235_v1  ;;  %3704 = vmatmul.mubr.msk.bf16.gmra.mrb[36].mxu1 %vm325_vm2, %v779_v49  ;;  %v1062_v51 = vsel %vm904_vm3, %v1060_v7, %v1061_v57  ;;  %v913_v49 = vsel %vm904_vm3, %v910_v24, %v912_v48  ;;  %v4178_v24 = vld [vmem:[%s5495_s2 + $0xf8] sm:$0xff]  }
  0x6f   : > { %3745 = vmatprep.mubr.msk.bf16.mxu1 %vm4236_vm1, %v4235_v1  ;;  %v4802_v2 = vsel %vm1854_vm6, %v1862_v16, %v1864_v46  ;;  %v4181_v46 = vld [vmem:[%s5495_s2 + $0x108] sm:$0xff]  }
  0x71   : > { %3772 = vmatpush3.bf16.msra.mxu0 %v4174_v40  ;;  %v2007_v40 = vrot.slane %v4417_v45, 2  ;;  %v914_v45 = vrot.slane %v4629_v30, 1 }
  0x72   : > { %3773 = vmatprep.subr.bf16.mxu0 %v4235_v1 }
  0x73   : > { %v4814_v16 = vsel %vm1854_vm6, %v2005_v34, %v2007_v40  ;;  %v2009_v34 = vrot.slane %v4462_v61, 2  ;;  %v915_v7 = vsel %vm904_vm3, %v912_v48, %v914_v45  ;;  %v4180_v48 = vld [vmem:[%s5495_s2 + $0x100] sm:$0xff]   ;;  %v5510_v45 = vshrl.u32 %v4448_v55, 16  ;;  %v4211_v61 = vld [vmem:[%s5495_s2 + $0x1d0] sm:$0xff]  }
  0x74   : > { %3732 = vmatmul.mubr.bf16.gmra.mrb[48].mxu0 %v911_v17  ;;  %v1063_v17 = vrot.slane %v4378_v32, 1 }
  0x75   : > { %3735 = vmatprep.mubr.msk.bf16.mxu0 %vm4236_vm1, %v4235_v1  ;;  %3774 = vmatpush3.bf16.msra.mxu0 %v4175_v52  ;;  %v4832_v30 = vsel %vm1854_vm6, %v2007_v40, %v2009_v34  ;;  %v4184_v40 = vld [vmem:[%s5495_s2 + $0x118] sm:$0xff]  }
  0x76   : > { %3775 = vmatprep.subr.bf16.mxu0 %v4235_v1  ;;  %3746 = vmatmul.mubr.msk.bf16.vlgmr.msra.gmra.mrb[40].mxu1 %vm325_vm2, %v1062_v51  ;;  %v1064_v52 = vsel %vm904_vm3, %v1061_v57, %v1063_v17  ;;  %v1066_v57 = vsel %vm904_vm3, %v1063_v17, %v1065_v15 }
  0x77   : > { %3802 = vmatpush3.bf16.msra.mxu1 %v1389_v59  ;;  %3749 = vmatprep.mubr.msk.bf16.mxu1 %vm4236_vm1, %v4235_v1  ;;  %v4183_v59 = vld [vmem:[%s5495_s2 + $0x110] sm:$0xff]  }
  0x78   : > { %3859 = vmatprep.subr.bf16.mxu1 %v4235_v1 }
  0x79   : > { %3776 = vmatpush3.bf16.msra.mxu0 %v4176_v12  ;;  %v1067_v12 = vrot.slane %v4464_v62, 1 }
  0x7a   : > { %3777 = vmatprep.subr.bf16.mxu0 %v4235_v1 }
  0x7b   : > { %v1068_v51 = vsel %vm904_vm3, %v1065_v15, %v1067_v12 }
  0x7c   : > { %3736 = vmatmul.mubr.bf16.gmra.mrb[52].mxu0 %v913_v49 }
  0x7d   : > { %3739 = vmatprep.mubr.msk.bf16.mxu0 %vm4236_vm1, %v4235_v1  ;;  %3778 = vmatpush3.bf16.msra.mxu0 %v4177_v0  ;;  %v4186_v0 = vld [vmem:[%s5495_s2 + $0x128] sm:$0xff]  }
  0x7e   : > { %3779 = vmatprep.subr.bf16.mxu0 %v4235_v1  ;;  %3750 = vmatmul.mubr.msk.bf16.gmra.mrb[44].mxu1 %vm325_vm2, %v1064_v52 }
  0x7f   : > { %3753 = vmatprep.mubr.msk.bf16.mxu1 %vm4236_vm1, %v4235_v1 }
  0x81   : > { %3780 = vmatpush3.bf16.msra.mxu0 %v4178_v24  ;;  %v2420_v24 = vrot.slane %v5510_v45, 2  ;;  %v3317_v45 = vld [vmem:[%s5496_s3 + $0x14] sm:$0xf] }
  0x82   : > { %3823 = vmatprep.subr.bf16.mxu0 %v4235_v1 }
  0x84   : > { %3740 = vmatmul.mubr.bf16.gmra.mrb[56].mxu0 %v915_v7  ;;  %v5512_v7 = vshrl.u32 %v4479_v5, 16 }
  0x85   : > { %3781 = vmatprep.mubr.msk.bf16.mxu0 %vm4236_vm1, %v4235_v1 }
  0x86   : > { %3754 = vmatmul.mubr.msk.bf16.gmra.mrb[48].mxu1 %vm325_vm2, %v1066_v57  ;;  %v2423_v15 = vrot.slane %v5512_v7, 2  ;;  %v4190_v57 = vld [vmem:[%s5495_s2 + $0x138] sm:$0xff]  }
  0x87   : > { %3757 = vmatprep.mubr.msk.bf16.mxu1 %vm4236_vm1, %v4235_v1 }
  0x8c   : > { %3782 = vmatmul.mubr.bf16.vlgmr.msra.gmra.mrb[60].mxu0 %v4513_v28  ;;  %v1069_v28 = vrot.slane %v4732_v58, 1  ;;  %v4185_v58 = vld [vmem:[%s5495_s2 + $0x120] sm:$0xff]  }
  0x8d   : > { %3785 = vmatprep.mubr.msk.bf16.mxu0 %vm4236_vm1, %v4235_v1  ;;  %3824 = vmatpush3.bf16.msra.mxu0 %v4180_v48 }
  0x8e   : > { %3825 = vmatprep.subr.bf16.mxu0 %v4235_v1  ;;  %3758 = vmatmul.mubr.msk.bf16.gmra.mrb[52].mxu1 %vm325_vm2, %v1068_v51  ;;  %v1070_v49 = vsel %vm904_vm3, %v1067_v12, %v1069_v28  ;;  %v2591_v28 = vrot.slane %v751_v42, 2 }
  0x8f   : > { %3761 = vmatprep.mubr.msk.bf16.mxu1 %vm4236_vm1, %v4235_v1 }
  0x91   : > { %3826 = vmatpush3.bf16.msra.mxu0 %v4181_v46 }
  0x92   : > { %3827 = vmatprep.subr.bf16.mxu0 %v4235_v1 }
  0x94   : > { %3786 = vmatmul.mubr.bf16.gmra.mrb[64].mxu0 %v4516_v29  ;;  %v3287_v29 = vld [vmem:[%s5496_s3 + $0x10] sm:$0xf] }
  0x95   : > { %3789 = vmatprep.mubr.msk.bf16.mxu0 %vm4236_vm1, %v4235_v1  ;;  %3828 = vmatpush3.bf16.msra.mxu0 %v4183_v59  ;;  %v1752_v17 = vsel %vm341_vm0, %v3287_v29, 0  ;;  %v5516_v29 = vshll.u32 %v4340_v18, 16 }
  0x96   : > { %3829 = vmatprep.subr.bf16.mxu0 %v4235_v1  ;;  %3762 = vmatmul.mubr.msk.bf16.gmra.mrb[56].mxu1 %vm325_vm2, %v1070_v49  ;;  %v4196_v49 = vld [vmem:[%s5495_s2 + $0x158] sm:$0xff]  }
  0x97   : > { %3803 = vmatprep.mubr.msk.bf16.mxu1 %vm4236_vm1, %v4235_v1 }
  0x99   : > { %3830 = vmatpush3.bf16.msra.mxu0 %v4184_v40 }
  0x9a   : > { %3831 = vmatprep.subr.bf16.mxu0 %v4235_v1 }
  0x9c   : > { %3790 = vmatmul.mubr.bf16.gmra.mrb[68].mxu0 %v4525_v36  ;;  %v4189_v36 = vld [vmem:[%s5495_s2 + $0x130] sm:$0xff]  }
  0x9d   : > { %3793 = vmatprep.mubr.msk.bf16.mxu0 %vm4236_vm1, %v4235_v1  ;;  %3832 = vmatpush3.bf16.msra.mxu0 %v4185_v58  ;;  %v5515_v58 = vrot.slane %v4472_v3, 1 }
  0x9e   : > { %3833 = vmatprep.subr.bf16.mxu0 %v4235_v1  ;;  %3804 = vmatmul.mubr.msk.bf16.vlgmr.msra.gmra.mrb[60].mxu1 %vm325_vm2, %v4547_v54  ;;  %v5511_v54 = vshll.u32 %v4479_v5, 16 }
  0x9f   : > { %3860 = vmatpush3.bf16.msra.mxu1 %v1752_v17  ;;  %3807 = vmatprep.mubr.msk.bf16.mxu1 %vm4236_vm1, %v4235_v1 }
  0xa0   : > { %3917 = vmatprep.subr.bf16.mxu1 %v4235_v1  ;;  %v2424_v52 = vrot.slane %v5511_v54, 3  ;;  %v1537_v54 = vshrl.u32 %v4519_v33, 16 }
  0xa1   : > { %3834 = vmatpush3.bf16.msra.mxu0 %v4186_v0  ;;  %v2592_v0 = vrot.slane %v5516_v29, 3 }
  0xa2   : > { %3835 = vmatprep.subr.bf16.mxu0 %v4235_v1  ;;  %v4916_v46 = vor.u32 %v2424_v52, %v2423_v15  ;;  %v1540_v52 = vshll.u32 %v4519_v33, 16  ;;  %v1539_v7 = vrot.slane %v1537_v54, 1  ;;  %v4207_v54 = vld [vmem:[%s5495_s2 + $0x1b0] sm:$0xff]  }
  0xa4   : > { %3794 = vmatmul.mubr.bf16.gmra.mrb[72].mxu0 %v4529_v39  ;;  %v5513_v39 = vshll.u32 %v4448_v55, 16  ;;  %v1542_v15 = vrot.slane %v1540_v52, 2 }
  0xa5   : > { %3797 = vmatprep.mubr.msk.bf16.mxu0 %vm4236_vm1, %v4235_v1  ;;  %3836 = vmatpush3.bf16.msra.mxu0 %v4189_v36 }
  0xa6   : > { %3837 = vmatprep.subr.bf16.mxu0 %v4235_v1  ;;  %v2421_v48 = vrot.slane %v5513_v39, 3  ;;  %3808 = vmatmul.mubr.msk.bf16.gmra.mrb[64].mxu1 %vm325_vm2, %v4562_v8  ;;  %v4192_v8 = vld [vmem:[%s5495_s2 + $0x140] sm:$0xff]   ;;  %v1543_v33 = vor.u32 %v1542_v15, %v1539_v7 }
  0xa7   : > { %3811 = vmatprep.mubr.msk.bf16.mxu1 %vm4236_vm1, %v4235_v1 }
  0xa8   : > { %v2422_v12 = vor.u32 %v2421_v48, %v2420_v24  ;;  %v4198_v24 = vld [vmem:[%s5495_s2 + $0x168] sm:$0xff]   ;;  %v1544_v39 = vsel %vm1491_vm5, %v4634_v20, %v1543_v33  ;;  %v1722_v48 = vshll.u32 %v4472_v3, 16  ;;  %v4201_v20 = vld [vmem:[%s5495_s2 + $0x180] sm:$0xff]  }
  0xa9   : > { %3838 = vmatpush3.bf16.msra.mxu0 %v4190_v57  ;;  %v4199_v57 = vld [vmem:[%s5495_s2 + $0x170] sm:$0xff]  }
  0xaa   : > { %3881 = vmatprep.subr.bf16.mxu0 %v4235_v1  ;;  %v4923_v51 = vsel %vm2419_vm7, %v2422_v12, %v4916_v46 }
  0xac   : > { %3798 = vmatmul.mubr.bf16.gmra.mrb[76].mxu0 %v4559_v6  ;;  %v4193_v6 = vld [vmem:[%s5495_s2 + $0x148] sm:$0xff]  }
  0xad   : > { %3839 = vmatprep.mubr.msk.bf16.mxu0 %vm4236_vm1, %v4235_v1 }
  0xae   : > { %3812 = vmatmul.mubr.msk.bf16.gmra.mrb[68].mxu1 %vm325_vm2, %v4570_v14  ;;  %v4944_v14 = vcombine.low %v4467_v63, %v4467_v63  ;;  %v5514_v63 = vshll.u32 %v4378_v32, 16 }
  0xaf   : > { %3815 = vmatprep.mubr.msk.bf16.mxu1 %vm4236_vm1, %v4235_v1 }
  0xb0   : > { %v1371_v59 = vrot.slane %v4944_v14, 1  ;;  %v2595_v40 = vrot.slane %v5514_v63, 3 }
  0xb2   : > { %v1372_v42 = vsel %vm904_vm3, %v5515_v58, %v1371_v59 }
  0xb4   : > { %3840 = vmatmul.mubr.bf16.vlgmr.msra.gmra.mrb[80].mxu0 %v4605_v22  ;;  %v4195_v22 = vld [vmem:[%s5495_s2 + $0x150] sm:$0xff]  }
  0xb5   : > { %3843 = vmatprep.mubr.msk.bf16.mxu0 %vm4236_vm1, %v4235_v1  ;;  %3882 = vmatpush3.bf16.msra.mxu0 %v4192_v8  ;;  %v1724_v8 = vrot.slane %v1722_v48, 2 }
  0xb6   : > { %3883 = vmatprep.subr.bf16.mxu0 %v4235_v1  ;;  %3816 = vmatmul.mubr.msk.bf16.gmra.mrb[72].mxu1 %vm325_vm2, %v4591_v56  ;;  %v2594_v56 = vrot.slane %v758_v9, 2  ;;  %v2593_v9 = vor.u32 %v2592_v0, %v2591_v28  ;;  %v3351_v0 = vld [vmem:[%s5496_s3 + $0x18] sm:$0xf] }
  0xb7   : > { %3819 = vmatprep.mubr.msk.bf16.mxu1 %vm4236_vm1, %v4235_v1 }
  0xb8   : > { %v4973_v17 = vor.u32 %v2595_v40, %v2594_v56 }
  0xb9   : > { %3884 = vmatpush3.bf16.msra.mxu0 %v4193_v6  ;;  %v1728_v6 = vshrl.u32 %v4944_v14, 16 }
  0xba   : > { %3885 = vmatprep.subr.bf16.mxu0 %v4235_v1  ;;  %v4984_v36 = vsel %vm2419_vm7, %v2593_v9, %v4973_v17  ;;  %v4206_v9 = vld [vmem:[%s5495_s2 + $0x1a8] sm:$0xff]  }
  0xbb   : > { %v1730_v28 = vrot.slane %v1728_v6, 1  ;;  %v4209_v6 = vld [vmem:[%s5495_s2 + $0x1c0] sm:$0xff]  }
  0xbc   : > { %3844 = vmatmul.mubr.bf16.gmra.mrb[84].mxu0 %v4612_v37  ;;  %v4197_v37 = vld [vmem:[%s5495_s2 + $0x160] sm:$0xff]  }
  0xbd   : > { %3847 = vmatprep.mubr.msk.bf16.mxu0 %vm4236_vm1, %v4235_v1  ;;  %3886 = vmatpush3.bf16.msra.mxu0 %v4195_v22  ;;  %v1731_v22 = vshll.u32 %v4944_v14, 16 }
  0xbe   : > { %3887 = vmatprep.subr.bf16.mxu0 %v4235_v1  ;;  %3820 = vmatmul.mubr.msk.bf16.gmra.mrb[76].mxu1 %vm325_vm2, %v1372_v42 }
  0xbf   : > { %3861 = vmatprep.mubr.msk.bf16.mxu1 %vm4236_vm1, %v4235_v1  ;;  %v1733_v63 = vrot.slane %v1731_v22, 2 }
  0xc1   : > { %3888 = vmatpush3.bf16.msra.mxu0 %v4196_v49  ;;  %v1734_v40 = vor.u32 %v1733_v63, %v1730_v28 }
  0xc2   : > { %3889 = vmatprep.subr.bf16.mxu0 %v4235_v1 }
  0xc4   : > { %3848 = vmatmul.mubr.bf16.gmra.mrb[88].mxu0 %v4632_v10  ;;  %v2031_v10 = vsel %vm341_vm0, %v3317_v45, 0  ;;  %v2317_v45 = vsel %vm341_vm0, %v3351_v0, 0 }
  0xc5   : > { %3851 = vmatprep.mubr.msk.bf16.mxu0 %vm4236_vm1, %v4235_v1  ;;  %3890 = vmatpush3.bf16.msra.mxu0 %v4197_v37 }
  0xc6   : > { %3891 = vmatprep.subr.bf16.mxu0 %v4235_v1  ;;  %3862 = vmatmul.mubr.msk.bf16.vlgmr.msra.gmra.mrb[80].mxu1 %vm325_vm2, %v4661_v50  ;;  %v4200_v50 = vld [vmem:[%s5495_s2 + $0x178] sm:$0xff]  }
  0xc7   : > { %3918 = vmatpush3.bf16.msra.mxu1 %v2031_v10  ;;  %3865 = vmatprep.mubr.msk.bf16.mxu1 %vm4236_vm1, %v4235_v1 }
  0xc8   : > { %3975 = vmatprep.subr.bf16.mxu1 %v4235_v1 }
  0xc9   : > { %3892 = vmatpush3.bf16.msra.mxu0 %v4198_v24 }
  0xca   : > { %3893 = vmatprep.subr.bf16.mxu0 %v4235_v1 }
  0xcc   : > { %3852 = vmatmul.mubr.bf16.gmra.mrb[92].mxu0 %v4650_v21  ;;  %v1719_v21 = vshrl.u32 %v4472_v3, 16 }
  0xcd   : > { %3855 = vmatprep.mubr.msk.bf16.mxu0 %vm4236_vm1, %v4235_v1  ;;  %3894 = vmatpush3.bf16.msra.mxu0 %v4199_v57 }
  0xce   : > { %3895 = vmatprep.subr.bf16.mxu0 %v4235_v1  ;;  %3866 = vmatmul.mubr.msk.bf16.gmra.mrb[84].mxu1 %vm325_vm2, %v4675_v27  ;;  %v1721_v12 = vrot.slane %v1719_v21, 1 }
  0xcf   : > { %3869 = vmatprep.mubr.msk.bf16.mxu1 %vm4236_vm1, %v4235_v1 }
  0xd0   : > { %v1725_v27 = vor.u32 %v1724_v8, %v1721_v12 }
  0xd1   : > { %3896 = vmatpush3.bf16.msra.mxu0 %v4200_v50 }
  0xd2   : > { %3939 = vmatprep.subr.bf16.mxu0 %v4235_v1  ;;  %v1726_v59 = vsel %vm1491_vm5, %v4694_v35, %v1725_v27  ;;  %v4204_v35 = vld [vmem:[%s5495_s2 + $0x198] sm:$0xff]   ;;  %v1735_v56 = vsel %vm1491_vm5, %v1725_v27, %v1734_v40 }
  0xd4   : > { %3856 = vmatmul.mubr.bf16.gmra.mrb[96].mxu0 %v1544_v39  ;;  %v2137_v39 = vrot.slane %v4448_v55, 2 }
  0xd5   : > { %3897 = vmatprep.mubr.msk.bf16.mxu0 %vm4236_vm1, %v4235_v1 }
  0xd6   : > { %3870 = vmatmul.mubr.msk.bf16.gmra.mrb[88].mxu1 %vm325_vm2, %v4707_v38  ;;  %v4202_v38 = vld [vmem:[%s5495_s2 + $0x188] sm:$0xff]  }
  0xd7   : > { %3873 = vmatprep.mubr.msk.bf16.mxu1 %vm4236_vm1, %v4235_v1 }
  0xdc   : > { %3898 = vmatmul.mubr.bf16.vlgmr.msra.gmra.mrb[100].mxu0 %v4710_v11  ;;  %v4203_v11 = vld [vmem:[%s5495_s2 + $0x190] sm:$0xff]  }
  0xdd   : > { %3901 = vmatprep.mubr.msk.bf16.mxu0 %vm4236_vm1, %v4235_v1  ;;  %3940 = vmatpush3.bf16.msra.mxu0 %v4201_v20 }
  0xde   : > { %3941 = vmatprep.subr.bf16.mxu0 %v4235_v1  ;;  %3874 = vmatmul.mubr.msk.bf16.gmra.mrb[92].mxu1 %vm325_vm2, %v1726_v59 }
  0xdf   : > { %3877 = vmatprep.mubr.msk.bf16.mxu1 %vm4236_vm1, %v4235_v1 }
  0xe1   : > { %3942 = vmatpush3.bf16.msra.mxu0 %v4202_v38  ;;  %v2011_v38 = vrot.slane %v4472_v3, 2 }
  0xe2   : > { %3943 = vmatprep.subr.bf16.mxu0 %v4235_v1 }
  0xe3   : > { %v2012_v3 = vsel %vm1854_vm6, %v2009_v34, %v2011_v38 }
  0xe4   : > { %3902 = vmatmul.mubr.bf16.gmra.mrb[104].mxu0 %v4735_v43  ;;  %v4205_v43 = vld [vmem:[%s5495_s2 + $0x1a0] sm:$0xff]  }
  0xe5   : > { %3905 = vmatprep.mubr.msk.bf16.mxu0 %vm4236_vm1, %v4235_v1  ;;  %3944 = vmatpush3.bf16.msra.mxu0 %v4203_v11  ;;  %v4210_v11 = vld [vmem:[%s5495_s2 + $0x1c8] sm:$0xff]  }
  0xe6   : > { %3945 = vmatprep.subr.bf16.mxu0 %v4235_v1  ;;  %3878 = vmatmul.mubr.msk.bf16.gmra.mrb[96].mxu1 %vm325_vm2, %v1735_v56 }
  0xe7   : > { %v379_v49 = vpop.f32.mrb[0].mxu0  ;;  %3919 = vmatprep.mubr.msk.bf16.mxu1 %vm4236_vm1, %v4235_v1 }
  0xe8   : > { %v3595_v58 = vpop.f32.mrb[1].mxu0 }
  0xe9   : > { %v382_v42 = vpop.f32.mrb[2].mxu0  ;;  %3946 = vmatpush3.bf16.msra.mxu0 %v4204_v35 }
  0xea   : > { %v3596_v29 = vpop.f32.mrb[3].mxu0  ;;  %3947 = vmatprep.subr.bf16.mxu0 %v4235_v1 }
  0xeb   : > { %v2013_v29 = vrot.slane %v4944_v14, 2 }
  0xec   : > { %3906 = vmatmul.mubr.bf16.gmra.mrb[108].mxu0 %v4759_v19 }
  0xed   : > { %3909 = vmatprep.mubr.msk.bf16.mxu0 %vm4236_vm1, %v4235_v1  ;;  %3948 = vmatpush3.bf16.msra.mxu0 %v4205_v43  ;;  %v2014_v14 = vsel %vm1854_vm6, %v2011_v38, %v2013_v29 }
  0xee   : > { %3949 = vmatprep.subr.bf16.mxu0 %v4235_v1  ;;  %3920 = vmatmul.mubr.msk.bf16.vlgmr.msra.gmra.mrb[100].mxu1 %vm325_vm2, %v4786_v13  ;;  %v4208_v13 = vld [vmem:[%s5495_s2 + $0x1b8] sm:$0xff]  }
  0xef   : > { %v387_v37 = vpop.f32.mrb[4].mxu0  ;;  %3976 = vmatpush3.bf16.msra.mxu1 %v2317_v45  ;;  %3923 = vmatprep.mubr.msk.bf16.mxu1 %vm4236_vm1, %v4235_v1  ;;  %v2142_v45 = vrot.slane %v4539_v44, 2 }
  0xf0   : > { %v3599_v24 = vpop.f32.mrb[5].mxu0  ;;  %4033 = vmatprep.subr.bf16.mxu1 %v4235_v1 }
  0xf1   : > { %v390_v19 = vpop.f32.mrb[6].mxu0  ;;  %3950 = vmatpush3.bf16.msra.mxu0 %v4206_v9  ;;  %v4212_v24 = vld [vmem:[%s5495_s2 + $0x1d8] sm:$0xff]  }
  0xf2   : > { %v3600_v52 = vpop.f32.mrb[7].mxu0  ;;  %3951 = vmatprep.subr.bf16.mxu0 %v4235_v1 }
  0xf4   : > { %3910 = vmatmul.mubr.bf16.gmra.mrb[112].mxu0 %v4771_v31 }
  0xf5   : > { %3913 = vmatprep.mubr.msk.bf16.mxu0 %vm4236_vm1, %v4235_v1  ;;  %3952 = vmatpush3.bf16.msra.mxu0 %v4207_v54 }
  0xf6   : > { %3953 = vmatprep.subr.bf16.mxu0 %v4235_v1  ;;  %3924 = vmatmul.mubr.msk.bf16.gmra.mrb[104].mxu1 %vm325_vm2, %v4814_v16  ;;  %v2138_v16 = vrot.slane %v4479_v5, 2 }
  0xf7   : > { %v395_v10 = vpop.f32.mrb[8].mxu0  ;;  %3927 = vmatprep.mubr.msk.bf16.mxu1 %vm4236_vm1, %v4235_v1 }
  0xf8   : > { %v3603_v7 = vpop.f32.mrb[9].mxu0 }
  0xf9   : > { %v398_v15 = vpop.f32.mrb[10].mxu0  ;;  %3954 = vmatpush3.bf16.msra.mxu0 %v4208_v13  ;;  %v500_v31 = vpop.f32.mrb[0].mxu1 }
  0xfa   : > { %v3604_v57 = vpop.f32.mrb[11].mxu0  ;;  %3997 = vmatprep.subr.bf16.mxu0 %v4235_v1  ;;  %v501_v33 = vadd.f32 %v500_v31, %v379_v49  ;;  %v3631_v50 = vpop.f32.mrb[1].mxu1 }
  0xfb   : > { %v503_v21 = vpop.f32.mrb[2].mxu1  ;;  %v4213_v50 = vld [vmem:[%s5495_s2 + $0x1e0] sm:$0xff]  }
  0xfc   : > { %3914 = vmatmul.mubr.bf16.gmra.mrb[116].mxu0 %v4802_v2  ;;  %v504_v48 = vadd.f32 %v503_v21, %v382_v42  ;;  %v3632_v12 = vpop.f32.mrb[3].mxu1  ;;  %v2139_v2 = vsel %vm1854_vm6, %v2137_v39, %v2138_v16 }
  0xfd   : > { %3955 = vmatprep.mubr.msk.bf16.mxu0 %vm4236_vm1, %v4235_v1  ;;  %v3381_v12 = vld [vmem:[%s5496_s3 + $0x1c] sm:$0xf] }
  0xfe   : > { %3928 = vmatmul.mubr.msk.bf16.gmra.mrb[108].mxu1 %vm325_vm2, %v4832_v30  ;;  %v2140_v30 = vrot.slane %v4506_v23, 2 }
  0xff   : > { %v5103_v8 = vpop.f32.mrb[12].mxu0  ;;  %3931 = vmatprep.mubr.msk.bf16.mxu1 %vm4236_vm1, %v4235_v1 }
 0x100   : > { %v3607_v20 = vpop.f32.mrb[13].mxu0  ;;  %v2141_v42 = vsel %vm1854_vm6, %v2138_v16, %v2140_v30  ;;  %v2143_v31 = vsel %vm1854_vm6, %v2140_v30, %v2142_v45  ;;  %v2640_v30 = vsel %vm341_vm0, %v3381_v12, 0 }
 0x101   : > { %v5108_v27 = vpop.f32.mrb[14].mxu0  ;;  %v508_v59 = vpop.f32.mrb[4].mxu1 }
 0x102   : > { %v3608_v22 = vpop.f32.mrb[15].mxu0  ;;  %v5116_v28 = vadd.f32 %v508_v59, %v387_v37  ;;  %v3635_v63 = vpop.f32.mrb[5].mxu1 }
 0x103   : > { %v511_v40 = vpop.f32.mrb[6].mxu1 }
 0x104   : > { %3956 = vmatmul.mubr.bf16.vlgmr.msra.gmra.mrb[120].mxu0 %v2139_v2  ;;  %v5128_v35 = vadd.f32 %v511_v40, %v390_v19  ;;  %v3636_v56 = vpop.f32.mrb[7].mxu1  ;;  %v2144_v2 = vrot.slane %v4441_v53, 2 }
 0x105   : > { %3959 = vmatprep.mubr.msk.bf16.mxu0 %vm4236_vm1, %v4235_v1  ;;  %3998 = vmatpush3.bf16.msra.mxu0 %v4209_v6  ;;  %v4214_v6 = vld [vmem:[%s5495_s2 + $0x1e8] sm:$0xff]  }
 0x106   : > { %3999 = vmatprep.subr.bf16.mxu0 %v4235_v1  ;;  %3932 = vmatmul.mubr.msk.bf16.gmra.mrb[112].mxu1 %vm325_vm2, %v2012_v3  ;;  %v2145_v56 = vsel %vm1854_vm6, %v2142_v45, %v2144_v2 }
 0x107   : > { %v5130_v49 = vpop.f32.mrb[16].mxu0  ;;  %3935 = vmatprep.mubr.msk.bf16.mxu1 %vm4236_vm1, %v4235_v1 }
 0x108   : > { %v3611_v58 = vpop.f32.mrb[17].mxu0 }
 0x109   : > { %v5134_v43 = vpop.f32.mrb[18].mxu0  ;;  %4000 = vmatpush3.bf16.msra.mxu0 %v4210_v11  ;;  %v516_v0 = vpop.f32.mrb[8].mxu1  ;;  %v5191_v58 = vld [vmem:[%s4333_s15 + $0x30] ss:$0 sps:$4 sm:$0xff]  }
 0x10a   : > { %v3612_v34 = vpop.f32.mrb[19].mxu0  ;;  %4001 = vmatprep.subr.bf16.mxu0 %v4235_v1  ;;  %v5143_v9 = vadd.f32 %v516_v0, %v395_v10  ;;  %v3639_v37 = vpop.f32.mrb[9].mxu1 }
 0x10b   : > { %v519_v19 = vpop.f32.mrb[10].mxu1  ;;  %v4217_v37 = vld [vmem:[%s5495_s2 + $0x1f8] sm:$0xff]  }
 0x10c   : > { %3960 = vmatmul.mubr.bf16.gmra.mrb[124].mxu0 %v2141_v42  ;;  %v5153_v52 = vadd.f32 %v519_v19, %v398_v15  ;;  %v3640_v13 = vpop.f32.mrb[11].mxu1  ;;  %v2290_v15 = vrot.slane %v4340_v18, 2  ;;  %v4216_v42 = vld [vmem:[%s5495_s2 + $0x1f0] sm:$0xff]  }
 0x10d   : > { %3963 = vmatprep.mubr.msk.bf16.mxu0 %vm4236_vm1, %v4235_v1  ;;  %4002 = vmatpush3.bf16.msra.mxu0 %v4211_v61 }
 0x10e   : > { %4003 = vmatprep.subr.bf16.mxu0 %v4235_v1  ;;  %3936 = vmatmul.mubr.msk.bf16.gmra.mrb[116].mxu1 %vm325_vm2, %v2014_v14 }
 0x10f   : > { %v689_v54 = vpop.f32.mrb[20].mxu0  ;;  %3977 = vmatprep.mubr.msk.bf16.mxu1 %vm4236_vm1, %v4235_v1 }
 0x110   : > { %v5155_v10 = vadd.f32 %v689_v54, %v501_v33  ;;  %v3667_v7 = vpop.f32.mrb[21].mxu0  ;;  %v2291_v33 = vrot.slane %v4378_v32, 2 }
 0x111   : > { %v692_v57 = vpop.f32.mrb[22].mxu0  ;;  %4004 = vmatpush3.bf16.msra.mxu0 %v4212_v24  ;;  %v524_v21 = vpop.f32.mrb[12].mxu1 }
 0x112   : > { %v5162_v39 = vadd.f32 %v692_v57, %v504_v48  ;;  %v3668_v16 = vpop.f32.mrb[23].mxu0  ;;  %4005 = vmatprep.subr.bf16.mxu0 %v4235_v1  ;;  %v5173_v20 = vadd.f32 %v524_v21, %v5103_v8  ;;  %v3643_v48 = vpop.f32.mrb[13].mxu1  ;;  %v2292_v38 = vsel %vm1854_vm6, %v2290_v15, %v2291_v33 }
 0x113   : > { %v527_v22 = vpop.f32.mrb[14].mxu1 }
 0x114   : > { %3964 = vmatmul.mubr.bf16.gmra.mrb[128].mxu0 %v2143_v31  ;;  %v528_v8 = vadd.f32 %v527_v22, %v5108_v27  ;;  %v3644_v63 = vpop.f32.mrb[15].mxu1 }
 0x115   : > { %3967 = vmatprep.mubr.msk.bf16.mxu0 %vm4236_vm1, %v4235_v1  ;;  %4006 = vmatpush3.bf16.msra.mxu0 %v4213_v50 }
 0x116   : > { %4007 = vmatprep.subr.bf16.mxu0 %v4235_v1  ;;  %3978 = vmatmul.mubr.msk.bf16.vlgmr.msra.gmra.mrb[120].mxu1 %vm325_vm2, %v2292_v38 }
 0x117   : > { %v697_v59 = vpop.f32.mrb[24].mxu0  ;;  %4034 = vmatpush3.bf16.msra.mxu1 %v2640_v30  ;;  %3981 = vmatprep.mubr.msk.bf16.mxu1 %vm4236_vm1, %v4235_v1  ;;  %v4218_v30 = vld [vmem:[%s5495_s2 + $0x200] sm:$0xff]  }
 0x118   : > { %v5186_v11 = vadd.f32 %v697_v59, %v5116_v28  ;;  %v3671_v40 = vpop.f32.mrb[25].mxu0  ;;  %v2293_v28 = vrot.slane %v4421_v47, 2  ;;  %4113 = vmatprep.subr.bf16.mxu1 %v4235_v1  ;;  %v5518_v59 = vshll.u32 %v4506_v23, 16 }
 0x119   : > { %v700_v3 = vpop.f32.mrb[26].mxu0  ;;  %4008 = vmatpush3.bf16.msra.mxu0 %v4214_v6  ;;  %v532_v34 = vpop.f32.mrb[16].mxu1 }
 0x11a   : > { %v5197_v27 = vadd.f32 %v700_v3, %v5128_v35  ;;  %v3672_v61 = vpop.f32.mrb[27].mxu0  ;;  %4009 = vmatprep.subr.bf16.mxu0 %v4235_v1  ;;  %v533_v29 = vadd.f32 %v532_v34, %v5130_v49  ;;  %v3647_v0 = vpop.f32.mrb[17].mxu1  ;;  %v2146_v35 = vrot.slane %v5191_v58, 2  ;;  %v2294_v24 = vsel %vm1854_vm6, %v2291_v33, %v2293_v28 }
 0x11b   : > { %v535_v45 = vpop.f32.mrb[18].mxu1  ;;  %v2428_v63 = vrot.slane %v5518_v59, 3 }
 0x11c   : > { %3968 = vmatmul.mubr.bf16.gmra.mrb[132].mxu0 %v2145_v56  ;;  %v536_v14 = vadd.f32 %v535_v45, %v5134_v43  ;;  %v3648_v49 = vpop.f32.mrb[19].mxu1  ;;  %v2147_v57 = vsel %vm1854_vm6, %v2144_v2, %v2146_v35  ;;  %v2295_v43 = vrot.slane %v4464_v62, 2 }
 0x11d   : > { %3971 = vmatprep.mubr.msk.bf16.mxu0 %vm4236_vm1, %v4235_v1  ;;  %4010 = vmatpush3.bf16.msra.mxu0 %v4216_v42  ;;  %v2431_v49 = vrot.slane %v594_v41, 2 }
 0x11e   : > { %4011 = vmatprep.subr.bf16.mxu0 %v4235_v1  ;;  %3982 = vmatmul.mubr.msk.bf16.gmra.mrb[124].mxu1 %vm325_vm2, %v2294_v24 }
 0x11f   : > { %v705_v19 = vpop.f32.mrb[28].mxu0  ;;  %3985 = vmatprep.mubr.msk.bf16.mxu1 %vm4236_vm1, %v4235_v1 }
 0x120   : > { %v5215_v54 = vadd.f32 %v705_v19, %v5143_v9  ;;  %v3675_v13 = vpop.f32.mrb[29].mxu0 }
 0x121   : > { %v708_v7 = vpop.f32.mrb[30].mxu0  ;;  %4012 = vmatpush3.bf16.msra.mxu0 %v4217_v37  ;;  %v832_v9 = vpop.f32.mrb[20].mxu1  ;;  %v5519_v13 = vshll.u32 %v4539_v44, 16 }
 0x122   : > { %v5220_v31 = vadd.f32 %v708_v7, %v5153_v52  ;;  %v3676_v50 = vpop.f32.mrb[31].mxu0  ;;  %4055 = vmatprep.subr.bf16.mxu0 %v4235_v1  ;;  %v5227_v16 = vadd.f32 %v832_v9, %v5155_v10  ;;  %v3689_v15 = vpop.f32.mrb[21].mxu1  ;;  %v2296_v52 = vsel %vm1854_vm6, %v2293_v28, %v2295_v43  ;;  %v5517_v10 = vshrl.u32 %v4506_v23, 16 }
 0x123   : > { %v835_v33 = vpop.f32.mrb[22].mxu1  ;;  %v2432_v7 = vrot.slane %v5519_v13, 3  ;;  %v2436_v15 = vshrl.u32 %v4441_v53, 16 }
 0x124   : > { %3972 = vmatmul.mubr.bf16.gmra.mrb[136].mxu0 %v2147_v57  ;;  %v5233_v12 = vadd.f32 %v835_v33, %v5162_v39  ;;  %v3690_v48 = vpop.f32.mrb[23].mxu1  ;;  %v2427_v38 = vrot.slane %v5517_v10, 2  ;;  %v2439_v33 = vshll.u32 %v4441_v53, 16 }
 0x125   : > { %4013 = vmatprep.mubr.msk.bf16.mxu0 %vm4236_vm1, %v4235_v1  ;;  %v2433_v9 = vor.u32 %v2432_v7, %v2431_v49 }
 0x126   : > { %3986 = vmatmul.mubr.msk.bf16.gmra.mrb[128].mxu1 %vm325_vm2, %v2296_v52  ;;  %v2429_v61 = vor.u32 %v2428_v63, %v2427_v38  ;;  %v2438_v63 = vrot.slane %v2436_v15, 2 }
 0x127   : > { %v713_v21 = vpop.f32.mrb[32].mxu0  ;;  %3989 = vmatprep.mubr.msk.bf16.mxu1 %vm4236_vm1, %v4235_v1 }
 0x128   : > { %v5236_v2 = vadd.f32 %v713_v21, %v5173_v20  ;;  %v3679_v6 = vpop.f32.mrb[33].mxu0  ;;  %v2297_v20 = vrot.slane %v4476_v4, 2  ;;  %v2430_v19 = vsel %vm2419_vm7, %v4916_v46, %v2429_v61  ;;  %v2434_v59 = vsel %vm2419_vm7, %v2429_v61, %v2433_v9 }
 0x129   : > { %v716_v22 = vpop.f32.mrb[34].mxu0  ;;  %v840_v3 = vpop.f32.mrb[24].mxu1 }
 0x12a   : > { %v5246_v39 = vadd.f32 %v716_v22, %v528_v8  ;;  %v3680_v40 = vpop.f32.mrb[35].mxu0  ;;  %v5253_v56 = vadd.f32 %v840_v3, %v5186_v11  ;;  %v3693_v42 = vpop.f32.mrb[25].mxu1  ;;  %v4219_v8 = vld [vmem:[%s5495_s2 + $0x208] sm:$0xff]   ;;  %v2298_v34 = vsel %vm1854_vm6, %v2295_v43, %v2297_v20  ;;  %v3411_v3 = vld [vmem:[%s5496_s3 + $0x20] sm:$0xf] }
 0x12b   : > { %v843_v28 = vpop.f32.mrb[26].mxu1  ;;  %v4223_v40 = vld [vmem:[%s5495_s2 + $0x220] sm:$0xff]   ;;  %v5337_v13 = vsel %vm341_vm0, %v3411_v3, 0 }
 0x12c   : > { %4014 = vmatmul.mubr.bf16.vlgmr.msra.gmra.mrb[140].mxu0 %v4923_v51  ;;  %v5263_v51 = vld [vmem:[%s4303_s6 + $0x30] ss:$0 sps:$4 sm:$0xff]   ;;  %v5266_v11 = vadd.f32 %v843_v28, %v5197_v27  ;;  %v3694_v35 = vpop.f32.mrb[27].mxu1  ;;  %v2445_v28 = vshrl.u32 %v5191_v58, 16 }
 0x12d   : > { %4017 = vmatprep.mubr.msk.bf16.mxu0 %vm4236_vm1, %v4235_v1  ;;  %4056 = vmatpush3.bf16.msra.mxu0 %v4218_v30  ;;  %v4221_v27 = vld [vmem:[%s5495_s2 + $0x210] sm:$0xff]   ;;  %v2299_v50 = vrot.slane %v5263_v51, 2  ;;  %v2441_v30 = vrot.slane %v2439_v33, 3  ;;  %v5520_v35 = vshll.u32 %v4421_v47, 16  ;;  %v4226_v33 = vld [vmem:[%s5495_s2 + $0x238] sm:$0xff]  }
 0x12e   : > { %4057 = vmatprep.subr.bf16.mxu0 %v4235_v1  ;;  %3990 = vmatmul.mubr.msk.bf16.gmra.mrb[132].mxu1 %vm325_vm2, %v2298_v34  ;;  %v2448_v34 = vshll.u32 %v5191_v58, 16 }
 0x12f   : > { %v721_v0 = vpop.f32.mrb[36].mxu0  ;;  %3993 = vmatprep.mubr.msk.bf16.mxu1 %vm4236_vm1, %v4235_v1  ;;  %v2300_v21 = vsel %vm1854_vm6, %v2297_v20, %v2299_v50 }
 0x130   : > { %v5268_v37 = vadd.f32 %v721_v0, %v533_v29  ;;  %v3683_v45 = vpop.f32.mrb[37].mxu0 }
 0x131   : > { %v724_v24 = vpop.f32.mrb[38].mxu0  ;;  %4058 = vmatpush3.bf16.msra.mxu0 %v4219_v8  ;;  %v848_v46 = vpop.f32.mrb[28].mxu1  ;;  %v4224_v8 = vld [vmem:[%s5495_s2 + $0x228] sm:$0xff]   ;;  %v2599_v45 = vrot.slane %v5520_v35, 3 }
 0x132   : > { %v5280_v29 = vadd.f32 %v724_v24, %v536_v14  ;;  %v3684_v57 = vpop.f32.mrb[39].mxu0  ;;  %4059 = vmatprep.subr.bf16.mxu0 %v4235_v1  ;;  %v5287_v41 = vadd.f32 %v848_v46, %v5215_v54  ;;  %v3697_v43 = vpop.f32.mrb[29].mxu1  ;;  %v4222_v14 = vld [vmem:[%s5495_s2 + $0x218] sm:$0xff]   ;;  %v2450_v46 = vrot.slane %v2448_v34, 3 }
 0x133   : > { %v851_v52 = vpop.f32.mrb[30].mxu1 }
 0x134   : > { %4018 = vmatmul.mubr.bf16.gmra.mrb[144].mxu0 %v2430_v19  ;;  %v5299_v48 = vadd.f32 %v851_v52, %v5220_v31  ;;  %v3698_v6 = vpop.f32.mrb[31].mxu1 }
 0x135   : > { %4021 = vmatprep.mubr.msk.bf16.mxu0 %vm4236_vm1, %v4235_v1  ;;  %4060 = vmatpush3.bf16.msra.mxu0 %v4221_v27 }
 0x136   : > { %4061 = vmatprep.subr.bf16.mxu0 %v4235_v1  ;;  %3994 = vmatmul.mubr.msk.bf16.gmra.mrb[136].mxu1 %vm325_vm2, %v2300_v21 }
 0x137   : > { %v1003_v54 = vpop.f32.mrb[40].mxu0  ;;  %4035 = vmatprep.mubr.msk.bf16.mxu1 %vm4236_vm1, %v4235_v1 }
 0x138   : > { %v5302_v22 = vadd.f32 %v1003_v54, %v5227_v16  ;;  %v3725_v10 = vpop.f32.mrb[41].mxu0  ;;  %v2603_v54 = vrot.slane %v768_v26, 3 }
 0x139   : > { %v1006_v38 = vpop.f32.mrb[42].mxu0  ;;  %4062 = vmatpush3.bf16.msra.mxu0 %v4222_v14  ;;  %v856_v16 = vpop.f32.mrb[32].mxu1 }
 0x13a   : > { %v5310_v31 = vadd.f32 %v1006_v38, %v5233_v12  ;;  %v3726_v20 = vpop.f32.mrb[43].mxu0  ;;  %4063 = vmatprep.subr.bf16.mxu0 %v4235_v1  ;;  %v5319_v42 = vadd.f32 %v856_v16, %v5236_v2  ;;  %v3701_v61 = vpop.f32.mrb[33].mxu1  ;;  %v2442_v12 = vor.u32 %v2441_v30, %v2438_v63  ;;  %v2598_v2 = vrot.slane %v765_v25, 2 }
 0x13b   : > { %v859_v0 = vpop.f32.mrb[34].mxu1  ;;  %v2447_v25 = vrot.slane %v2445_v28, 2  ;;  %v2744_v61 = vrot.slane %v4479_v5, 3 }
 0x13c   : > { %4022 = vmatmul.mubr.bf16.gmra.mrb[148].mxu0 %v2434_v59  ;;  %v5334_v19 = vadd.f32 %v859_v0, %v5246_v39  ;;  %v3702_v49 = vpop.f32.mrb[35].mxu1  ;;  %v2443_v50 = vsel %vm2419_vm7, %v2433_v9, %v2442_v12  ;;  %v4225_v39 = vld [vmem:[%s5495_s2 + $0x230] sm:$0xff]   ;;  %v2600_v9 = vor.u32 %v2599_v45, %v2598_v2 }
 0x13d   : > { %4025 = vmatprep.mubr.msk.bf16.mxu0 %vm4236_vm1, %v4235_v1  ;;  %4064 = vmatpush3.bf16.msra.mxu0 %v4223_v40 }
 0x13e   : > { %4065 = vmatprep.subr.bf16.mxu0 %v4235_v1  ;;  %4036 = vmatmul.mubr.msk.bf16.vlgmr.msra.gmra.mrb[140].mxu1 %vm325_vm2, %v4984_v36  ;;  %v2601_v21 = vsel %vm2419_vm7, %v4973_v17, %v2600_v9 }
 0x13f   : > { %v1011_v24 = vpop.f32.mrb[44].mxu0  ;;  %4114 = vmatpush3.bf16.msra.mxu1 %v5337_v13  ;;  %4039 = vmatprep.mubr.msk.bf16.mxu1 %vm4236_vm1, %v4235_v1 }
 0x140   : > { %v5340_v7 = vadd.f32 %v1011_v24, %v5253_v56  ;;  %v3729_v27 = vpop.f32.mrb[45].mxu0 }
 0x141   : > { %v1014_v57 = vpop.f32.mrb[46].mxu0  ;;  %4066 = vmatpush3.bf16.msra.mxu0 %v4224_v8  ;;  %v864_v36 = vpop.f32.mrb[36].mxu1 }
 0x142   : > { %v5349_v43 = vadd.f32 %v1014_v57, %v5266_v11  ;;  %v3730_v56 = vpop.f32.mrb[47].mxu0  ;;  %4067 = vmatprep.subr.bf16.mxu0 %v4235_v1  ;;  %v5356_v14 = vadd.f32 %v864_v36, %v5268_v37  ;;  %v3705_v15 = vpop.f32.mrb[37].mxu1  ;;  %v2451_v11 = vor.u32 %v2450_v46, %v2447_v25  ;;  %v2602_v37 = vrot.slane %v772_v60, 2 }
 0x143   : > { %v867_v52 = vpop.f32.mrb[38].mxu1  ;;  %v2616_v57 = vshrl.u32 %v5263_v51, 16  ;;  %v2746_v46 = vrot.slane %v4506_v23, 3 }
 0x144   : > { %4026 = vmatmul.mubr.bf16.gmra.mrb[152].mxu0 %v2443_v50  ;;  %v880_v10 = vadd.f32 %v867_v52, %v5280_v29  ;;  %v3706_v38 = vpop.f32.mrb[39].mxu1  ;;  %v2452_v40 = vsel %vm2419_vm7, %v2442_v12, %v2451_v11  ;;  %v2604_v26 = vor.u32 %v2603_v54, %v2602_v37  ;;  %v2607_v29 = vshrl.u32 %v4476_v4, 16 }
 0x145   : > { %4029 = vmatprep.mubr.msk.bf16.mxu0 %vm4236_vm1, %v4235_v1  ;;  %4068 = vmatpush3.bf16.msra.mxu0 %v4225_v39  ;;  %v2618_v56 = vrot.slane %v2616_v57, 2 }
 0x146   : > { %4069 = vmatprep.subr.bf16.mxu0 %v4235_v1  ;;  %4040 = vmatmul.mubr.msk.bf16.gmra.mrb[144].mxu1 %vm325_vm2, %v2601_v21  ;;  %v2605_v8 = vsel %vm2419_vm7, %v2600_v9, %v2604_v26  ;;  %v2609_v28 = vrot.slane %v2607_v29, 2  ;;  %v2747_v21 = vsel %vm2742_vm8, %v2744_v61, %v2746_v46 }
 0x147   : > { %v1019_v6 = vpop.f32.mrb[48].mxu0  ;;  %4043 = vmatprep.mubr.msk.bf16.mxu1 %vm4236_vm1, %v4235_v1 }
 0x148   : > { %v5372_v59 = vadd.f32 %v1019_v6, %v5287_v41  ;;  %v3733_v63 = vpop.f32.mrb[49].mxu0  ;;  %v2610_v41 = vshll.u32 %v4476_v4, 16 }
 0x149   : > { %v1022_v30 = vpop.f32.mrb[50].mxu0  ;;  %4070 = vmatpush3.bf16.msra.mxu0 %v4226_v33  ;;  %v1123_v20 = vpop.f32.mrb[40].mxu1 }
 0x14a   : > { %v5377_v17 = vadd.f32 %v1022_v30, %v5299_v48  ;;  %v3734_v60 = vpop.f32.mrb[51].mxu0  ;;  %4091 = vmatprep.subr.bf16.mxu0 %v4235_v1  ;;  %v1162_v16 = vadd.f32 %v1123_v20, %v5302_v22  ;;  %v3747_v3 = vpop.f32.mrb[41].mxu1  ;;  %v2743_v48 = vrot.slane %v4448_v55, 3  ;;  %v2612_v34 = vrot.slane %v2610_v41, 3 }
 0x14b   : > { %v1126_v12 = vpop.f32.mrb[42].mxu1  ;;  %v2895_v3 = vrot.slane %v4421_v47, 3 }
 0x14c   : > { %4030 = vmatmul.mubr.bf16.gmra.mrb[156].mxu0 %v2452_v40  ;;  %v1163_v2 = vadd.f32 %v1126_v12, %v5310_v31  ;;  %v3748_v35 = vpop.f32.mrb[43].mxu1  ;;  %v2745_v55 = vsel %vm2742_vm8, %v2743_v48, %v2744_v61  ;;  %v2613_v27 = vor.u32 %v2612_v34, %v2609_v28  ;;  %v2619_v31 = vshll.u32 %v5263_v51, 16 }
 0x14d   : > { %4071 = vmatprep.mubr.msk.bf16.mxu0 %vm4236_vm1, %v4235_v1 }
 0x14e   : > { %4044 = vmatmul.mubr.msk.bf16.gmra.mrb[148].mxu1 %vm325_vm2, %v2605_v8  ;;  %v2614_v39 = vsel %vm2419_vm7, %v2604_v26, %v2613_v27  ;;  %v2621_v9 = vrot.slane %v2619_v31, 3 }
 0x14f   : > { %v1027_v0 = vpop.f32.mrb[52].mxu0  ;;  %4047 = vmatprep.mubr.msk.bf16.mxu1 %vm4236_vm1, %v4235_v1 }
 0x150   : > { %v1048_v22 = vadd.f32 %v1027_v0, %v5319_v42  ;;  %v3737_v45 = vpop.f32.mrb[53].mxu0 }
 0x151   : > { %v1030_v24 = vpop.f32.mrb[54].mxu0  ;;  %v1131_v50 = vpop.f32.mrb[44].mxu1 }
 0x152   : > { %v1049_v5 = vadd.f32 %v1030_v24, %v5334_v19  ;;  %v3738_v49 = vpop.f32.mrb[55].mxu0  ;;  %v1164_v42 = vadd.f32 %v1131_v50, %v5340_v7  ;;  %v3751_v25 = vpop.f32.mrb[45].mxu1 }
 0x153   : > { %v1134_v19 = vpop.f32.mrb[46].mxu1 }
 0x154   : > { %4072 = vmatmul.mubr.bf16.vlgmr.msra.gmra.mrb[160].mxu0 %v2745_v55  ;;  %v1165_v15 = vadd.f32 %v1134_v19, %v5349_v43  ;;  %v3752_v11 = vpop.f32.mrb[47].mxu1 }
 0x155   : > { %4075 = vmatprep.mubr.msk.bf16.mxu0 %vm4236_vm1, %v4235_v1  ;;  %4092 = vmatpush3.bf16.msra.mxu0 %v5337_v13  ;;  %v2622_v13 = vor.u32 %v2621_v9, %v2618_v56  ;;  %v2892_v11 = vrot.slane %v4340_v18, 3  ;;  %v2901_v18 = vrot.slane %v5263_v51, 3 }
 0x156   : > { %4048 = vmatmul.mubr.msk.bf16.gmra.mrb[152].mxu1 %vm325_vm2, %v2614_v39 }
 0x157   : > { %v1035_v36 = vpop.f32.mrb[56].mxu0  ;;  %4051 = vmatprep.mubr.msk.bf16.mxu1 %vm4236_vm1, %v4235_v1  ;;  %v2623_v63 = vsel %vm2419_vm7, %v2613_v27, %v2622_v13 }
 0x158   : > { %v1050_v33 = vadd.f32 %v1035_v36, %v5356_v14  ;;  %v3741_v7 = vpop.f32.mrb[57].mxu0  ;;  %v2748_v14 = vrot.slane %v4539_v44, 3  ;;  %v2893_v44 = vrot.slane %v4378_v32, 3 }
 0x159   : > { %v1038_v52 = vpop.f32.mrb[58].mxu0  ;;  %v1139_v54 = vpop.f32.mrb[48].mxu1 }
 0x15a   : > { %v1051_v23 = vadd.f32 %v1038_v52, %v880_v10  ;;  %v3742_v37 = vpop.f32.mrb[59].mxu0  ;;  %v1166_v6 = vadd.f32 %v1139_v54, %v5372_v59  ;;  %v3755_v43 = vpop.f32.mrb[49].mxu1  ;;  %v2749_v59 = vsel %vm2742_vm8, %v2746_v46, %v2748_v14  ;;  %v2896_v8 = vsel %vm2742_vm8, %v2893_v44, %v2895_v3 }
 0x15b   : > { %v1142_v38 = vpop.f32.mrb[50].mxu1 }
 0x15c   : > { %4076 = vmatmul.mubr.bf16.gmra.mrb[164].mxu0 %v2747_v21  ;;  %v1167_v10 = vadd.f32 %v1142_v38, %v5377_v17  ;;  %v3756_v40 = vpop.f32.mrb[51].mxu1 }
 0x15d   : > { %4079 = vmatprep.mubr.msk.bf16.mxu0 %vm4236_vm1, %v4235_v1 }
 0x15e   : > { %4052 = vmatmul.mubr.msk.bf16.gmra.mrb[156].mxu1 %vm325_vm2, %v2623_v63 }
 0x15f   : > { %v1299_v30 = vpop.f32.mrb[60].mxu0  ;;  %4097 = vmatprep.mubr.msk.bf16.mxu1 %vm4236_vm1, %v4235_v1 }
 0x160   : > { %v1338_v60 = vadd.f32 %v1299_v30, %v1162_v16  ;;  %v3783_v26 = vpop.f32.mrb[61].mxu0  ;;  %v2750_v16 = vrot.slane %v4441_v53, 3  ;;  %v2897_v53 = vrot.slane %v4464_v62, 3 }
 0x161   : > { %v1302_v29 = vpop.f32.mrb[62].mxu0  ;;  %v1147_v48 = vpop.f32.mrb[52].mxu1 }
 0x162   : > { %v1339_v41 = vadd.f32 %v1302_v29, %v1163_v2  ;;  %v3784_v20 = vpop.f32.mrb[63].mxu0  ;;  %v1168_v17 = vadd.f32 %v1147_v48, %v1048_v22  ;;  %v3759_v61 = vpop.f32.mrb[53].mxu1  ;;  %v2751_v47 = vsel %vm2742_vm8, %v2748_v14, %v2750_v16  ;;  %v2898_v57 = vsel %vm2742_vm8, %v2895_v3, %v2897_v53 }
 0x163   : > { %v1150_v12 = vpop.f32.mrb[54].mxu1 }
 0x164   : > { %4080 = vmatmul.mubr.bf16.gmra.mrb[168].mxu0 %v2749_v59  ;;  %v1169_v34 = vadd.f32 %v1150_v12, %v1049_v5  ;;  %v3760_v0 = vpop.f32.mrb[55].mxu1  ;;  %v2752_v5 = vrot.slane %v5191_v58, 3  ;;  %v2899_v58 = vrot.slane %v4476_v4, 3  ;;  %v2894_v4 = vsel %vm2742_vm8, %v2892_v11, %v2893_v44 }
 0x165   : > { %4083 = vmatprep.mubr.msk.bf16.mxu0 %vm4236_vm1, %v4235_v1 }
 0x166   : > { %4098 = vmatmul.mubr.msk.bf16.vlgmr.msra.gmra.mrb[160].mxu1 %vm325_vm2, %v2896_v8  ;;  %v2753_v62 = vsel %vm2742_vm8, %v2750_v16, %v2752_v5  ;;  %v2900_v7 = vsel %vm2742_vm8, %v2897_v53, %v2899_v58 }
 0x167   : > { %v1307_v28 = vpop.f32.mrb[64].mxu0  ;;  %4101 = vmatprep.mubr.msk.bf16.mxu1 %vm4236_vm1, %v4235_v1 }
 0x168   : > { %v1340_v2 = vadd.f32 %v1307_v28, %v1164_v42  ;;  %v3787_v35 = vpop.f32.mrb[65].mxu0 }
 0x169   : > { %v1310_v32 = vpop.f32.mrb[66].mxu0  ;;  %v1155_v24 = vpop.f32.mrb[56].mxu1 }
 0x16a   : > { %v1341_v22 = vadd.f32 %v1310_v32, %v1165_v15  ;;  %v3788_v45 = vpop.f32.mrb[67].mxu0  ;;  %v1170_v55 = vadd.f32 %v1155_v24, %v1050_v33  ;;  %v3763_v49 = vpop.f32.mrb[57].mxu1 }
 0x16b   : > { %v1158_v27 = vpop.f32.mrb[58].mxu1 }
 0x16c   : > { %4084 = vmatmul.mubr.bf16.gmra.mrb[172].mxu0 %v2751_v47  ;;  %v1171_v50 = vadd.f32 %v1158_v27, %v1051_v23  ;;  %v3764_v42 = vpop.f32.mrb[59].mxu1 }
 0x16d   : > { %4087 = vmatprep.mubr.msk.bf16.mxu0 %vm4236_vm1, %v4235_v1 }
 0x16e   : > { %4102 = vmatmul.mubr.msk.bf16.gmra.mrb[164].mxu1 %vm325_vm2, %v2898_v57 }
 0x16f   : > { %v1315_v31 = vpop.f32.mrb[68].mxu0  ;;  %4105 = vmatprep.mubr.msk.bf16.mxu1 %vm4236_vm1, %v4235_v1 }
 0x170   : > { %v1342_v25 = vadd.f32 %v1315_v31, %v1166_v6  ;;  %v3791_v46 = vpop.f32.mrb[69].mxu0 }
 0x171   : > { %v1318_v19 = vpop.f32.mrb[70].mxu0  ;;  %v1425_v9 = vpop.f32.mrb[60].mxu1 }
 0x172   : > { %v1343_v39 = vadd.f32 %v1318_v19, %v1167_v10  ;;  %v3792_v56 = vpop.f32.mrb[71].mxu0  ;;  %v1464_v36 = vadd.f32 %v1425_v9, %v1338_v60  ;;  %v3805_v15 = vpop.f32.mrb[61].mxu1  ;;  %v2902_v10 = vsel %vm2742_vm8, %v2899_v58, %v2901_v18 }
 0x173   : > { %v1428_v33 = vpop.f32.mrb[62].mxu1 }
 0x174   : > { %4088 = vmatmul.mubr.bf16.gmra.mrb[176].mxu0 %v2753_v62  ;;  %v1465_v21 = vadd.f32 %v1428_v33, %v1339_v41  ;;  %v3806_v23 = vpop.f32.mrb[63].mxu1 }
 0x175   : > { %4093 = vmatprep.mubr.msk.bf16.mxu0 %vm4236_vm1, %v4235_v1 }
 0x176   : > { %4106 = vmatmul.mubr.msk.bf16.gmra.mrb[168].mxu1 %vm325_vm2, %v2900_v7 }
 0x177   : > { %v1323_v52 = vpop.f32.mrb[72].mxu0  ;;  %4109 = vmatprep.mubr.msk.bf16.mxu1 %vm4236_vm1, %v4235_v1 }
 0x178   : > { %v1344_v37 = vadd.f32 %v1323_v52, %v1168_v17  ;;  %v3795_v13 = vpop.f32.mrb[73].mxu0 }
 0x179   : > { %v1326_v54 = vpop.f32.mrb[74].mxu0  ;;  %v1433_v14 = vpop.f32.mrb[64].mxu1 }
 0x17a   : > { %v1345_v6 = vadd.f32 %v1326_v54, %v1169_v34  ;;  %v3796_v43 = vpop.f32.mrb[75].mxu0  ;;  %v1466_v38 = vadd.f32 %v1433_v14, %v1340_v2  ;;  %v3809_v63 = vpop.f32.mrb[65].mxu1 }
 0x17b   : > { %v1436_v30 = vpop.f32.mrb[66].mxu1 }
 0x17c   : > { %4094 = vmatmul.mubr.msk.bf16.vlgmr.msra.gmra.mrb[180].mxu0 %vm325_vm2, %v2894_v4  ;;  %v1467_v60 = vadd.f32 %v1436_v30, %v1341_v22  ;;  %v3810_v26 = vpop.f32.mrb[67].mxu1 }
 0x17e   : > { %4110 = vmatmul.mubr.msk.bf16.gmra.mrb[172].mxu1 %vm325_vm2, %v2902_v10 }
 0x17f   : > { %v1331_v40 = vpop.f32.mrb[76].mxu0 }
 0x180   : > { %v1346_v29 = vadd.f32 %v1331_v40, %v1170_v55  ;;  %v3799_v59 = vpop.f32.mrb[77].mxu0 }
 0x181   : > { %v1334_v41 = vpop.f32.mrb[78].mxu0  ;;  %v1441_v44 = vpop.f32.mrb[68].mxu1 }
 0x182   : > { %v1347_v20 = vadd.f32 %v1334_v41, %v1171_v50  ;;  %v3800_v1 = vpop.f32.mrb[79].mxu0  ;;  %v1468_v51 = vadd.f32 %v1441_v44, %v1342_v25  ;;  %v3813_v3 = vpop.f32.mrb[69].mxu1 }
 0x183   : > { %v1444_v48 = vpop.f32.mrb[70].mxu1 }
 0x184   : > { %v1469_v61 = vadd.f32 %v1444_v48, %v1343_v39  ;;  %v3814_v16 = vpop.f32.mrb[71].mxu1 }
 0x187   : > { %v1632_v17 = vpop.f32.mrb[80].mxu0 }
 0x188   : > { %v1671_v12 = vadd.f32 %v1632_v17, %v1464_v36  ;;  %v3841_v8 = vpop.f32.mrb[81].mxu0 }
 0x189   : > { %v1635_v28 = vpop.f32.mrb[82].mxu0  ;;  %v1449_v2 = vpop.f32.mrb[72].mxu1 }
 0x18a   : > { %v1672_v34 = vadd.f32 %v1635_v28, %v1465_v21  ;;  %v3842_v0 = vpop.f32.mrb[83].mxu0  ;;  %v1470_v35 = vadd.f32 %v1449_v2, %v1344_v37  ;;  %v3817_v32 = vpop.f32.mrb[73].mxu1 }
 0x18b   : > { %v1452_v47 = vpop.f32.mrb[74].mxu1 }
 0x18c   : > { %v1471_v45 = vadd.f32 %v1452_v47, %v1345_v6  ;;  %v3818_v53 = vpop.f32.mrb[75].mxu1 }
 0x18f   : > { %v1640_v22 = vpop.f32.mrb[84].mxu0 }
 0x190   : > { %v1673_v24 = vadd.f32 %v1640_v22, %v1466_v38  ;;  %v3845_v55 = vpop.f32.mrb[85].mxu0 }
 0x191   : > { %v1643_v49 = vpop.f32.mrb[86].mxu0  ;;  %v1457_v57 = vpop.f32.mrb[76].mxu1 }
 0x192   : > { %v1674_v5 = vadd.f32 %v1643_v49, %v1467_v60  ;;  %v3846_v27 = vpop.f32.mrb[87].mxu0  ;;  %v1472_v31 = vadd.f32 %v1457_v57, %v1346_v29  ;;  %v3821_v50 = vpop.f32.mrb[77].mxu1 }
 0x193   : > { %v1460_v42 = vpop.f32.mrb[78].mxu1 }
 0x194   : > { %v1473_v46 = vadd.f32 %v1460_v42, %v1347_v20  ;;  %v3822_v19 = vpop.f32.mrb[79].mxu1 }
 0x197   : > { %v1648_v25 = vpop.f32.mrb[88].mxu0 }
 0x198   : > { %v1675_v62 = vadd.f32 %v1648_v25, %v1468_v51  ;;  %v3849_v39 = vpop.f32.mrb[89].mxu0 }
 0x199   : > { %v1651_v56 = vpop.f32.mrb[90].mxu0  ;;  %v1788_v36 = vpop.f32.mrb[80].mxu1 }
 0x19a   : > { %v1676_v58 = vadd.f32 %v1651_v56, %v1469_v61  ;;  %v3850_v9 = vpop.f32.mrb[91].mxu0  ;;  %v1827_v15 = vadd.f32 %v1788_v36, %v1671_v12  ;;  %v3863_v11 = vpop.f32.mrb[81].mxu1 }
 0x19b   : > { %v1791_v33 = vpop.f32.mrb[82].mxu1 }
 0x19c   : > { %v1828_v52 = vadd.f32 %v1791_v33, %v1672_v34  ;;  %v3864_v21 = vpop.f32.mrb[83].mxu1 }
 0x19f   : > { %v1656_v7 = vpop.f32.mrb[92].mxu0 }
 0x1a0   : > { %v1677_v23 = vadd.f32 %v1656_v7, %v1470_v35  ;;  %v3853_v37 = vpop.f32.mrb[93].mxu0 }
 0x1a1   : > { %v1659_v13 = vpop.f32.mrb[94].mxu0  ;;  %v1796_v6 = vpop.f32.mrb[84].mxu1 }
 0x1a2   : > { %v1678_v54 = vadd.f32 %v1659_v13, %v1471_v45  ;;  %v3854_v4 = vpop.f32.mrb[95].mxu0  ;;  %v1829_v43 = vadd.f32 %v1796_v6, %v1673_v24  ;;  %v3867_v18 = vpop.f32.mrb[85].mxu1 }
 0x1a3   : > { %v1799_v14 = vpop.f32.mrb[86].mxu1 }
 0x1a4   : > { %v1830_v63 = vadd.f32 %v1799_v14, %v1674_v5  ;;  %v3868_v30 = vpop.f32.mrb[87].mxu1 }
 0x1a7   : > { %v1664_v38 = vpop.f32.mrb[96].mxu0 }
 0x1a8   : > { %v1679_v10 = vadd.f32 %v1664_v38, %v1472_v31  ;;  %v3857_v40 = vpop.f32.mrb[97].mxu0 }
 0x1a9   : > { %v1667_v60 = vpop.f32.mrb[98].mxu0  ;;  %v1804_v59 = vpop.f32.mrb[88].mxu1 }
 0x1aa   : > { %v1680_v26 = vadd.f32 %v1667_v60, %v1473_v46  ;;  %v3858_v29 = vpop.f32.mrb[99].mxu0  ;;  %v1831_v41 = vadd.f32 %v1804_v59, %v1675_v62  ;;  %v3871_v20 = vpop.f32.mrb[89].mxu1 }
 0x1ab   : > { %v1807_v1 = vpop.f32.mrb[90].mxu1 }
 0x1ac   : > { %v1832_v51 = vadd.f32 %v1807_v1, %v1676_v58  ;;  %v3872_v3 = vpop.f32.mrb[91].mxu1 }
 0x1af   : > { %v1953_v44 = vpop.f32.mrb[100].mxu0 }
 0x1b0   : > { %v1992_v48 = vadd.f32 %v1953_v44, %v1827_v15  ;;  %v3899_v17 = vpop.f32.mrb[101].mxu0 }
 0x1b1   : > { %v1956_v61 = vpop.f32.mrb[102].mxu0  ;;  %v1812_v8 = vpop.f32.mrb[92].mxu1 }
 0x1b2   : > { %v1993_v16 = vadd.f32 %v1956_v61, %v1828_v52  ;;  %v3900_v12 = vpop.f32.mrb[103].mxu0  ;;  %v1833_v28 = vadd.f32 %v1812_v8, %v1677_v23  ;;  %v3875_v34 = vpop.f32.mrb[93].mxu1 }
 0x1b3   : > { %v1815_v0 = vpop.f32.mrb[94].mxu1 }
 0x1b4   : > { %v1834_v35 = vadd.f32 %v1815_v0, %v1678_v54  ;;  %v3876_v32 = vpop.f32.mrb[95].mxu1 }
 0x1b7   : > { %v1961_v2 = vpop.f32.mrb[104].mxu0 }
 0x1b8   : > { %v1994_v47 = vadd.f32 %v1961_v2, %v1829_v43  ;;  %v3903_v22 = vpop.f32.mrb[105].mxu0 }
 0x1b9   : > { %v1964_v45 = vpop.f32.mrb[106].mxu0  ;;  %v1820_v55 = vpop.f32.mrb[96].mxu1 }
 0x1ba   : > { %v1995_v53 = vadd.f32 %v1964_v45, %v1830_v63  ;;  %v3904_v24 = vpop.f32.mrb[107].mxu0  ;;  %v1835_v49 = vadd.f32 %v1820_v55, %v1679_v10  ;;  %v3879_v5 = vpop.f32.mrb[97].mxu1 }
 0x1bb   : > { %v1823_v27 = vpop.f32.mrb[98].mxu1 }
 0x1bc   : > { %v1836_v31 = vadd.f32 %v1823_v27, %v1680_v26  ;;  %v3880_v50 = vpop.f32.mrb[99].mxu1 }
 0x1bf   : > { %v1969_v57 = vpop.f32.mrb[108].mxu0 }
 0x1c0   : > { %v1996_v42 = vadd.f32 %v1969_v57, %v1831_v41  ;;  %v3907_v25 = vpop.f32.mrb[109].mxu0 }
 0x1c1   : > { %v1972_v46 = vpop.f32.mrb[110].mxu0  ;;  %v2067_v39 = vpop.f32.mrb[100].mxu1 }
 0x1c2   : > { %v1997_v19 = vadd.f32 %v1972_v46, %v1832_v51  ;;  %v3908_v62 = vpop.f32.mrb[111].mxu0  ;;  %v2106_v56 = vadd.f32 %v2067_v39, %v1992_v48  ;;  %v3921_v58 = vpop.f32.mrb[101].mxu1 }
 0x1c3   : > { %v2070_v9 = vpop.f32.mrb[102].mxu1 }
 0x1c4   : > { %v2107_v15 = vadd.f32 %v2070_v9, %v1993_v16  ;;  %v3922_v11 = vpop.f32.mrb[103].mxu1 }
 0x1c7   : > { %v1977_v36 = vpop.f32.mrb[112].mxu0 }
 0x1c8   : > { %v1998_v33 = vadd.f32 %v1977_v36, %v1833_v28  ;;  %v3911_v7 = vpop.f32.mrb[113].mxu0 }
 0x1c9   : > { %v1980_v52 = vpop.f32.mrb[114].mxu0  ;;  %v2075_v37 = vpop.f32.mrb[104].mxu1 }
 0x1ca   : > { %v1999_v21 = vadd.f32 %v1980_v52, %v1834_v35  ;;  %v3912_v23 = vpop.f32.mrb[115].mxu0  ;;  %v2108_v13 = vadd.f32 %v2075_v37, %v1994_v47  ;;  %v3925_v54 = vpop.f32.mrb[105].mxu1 }
 0x1cb   : > { %v2078_v4 = vpop.f32.mrb[106].mxu1 }
 0x1cc   : > { %v2109_v43 = vadd.f32 %v2078_v4, %v1995_v53  ;;  %v3926_v18 = vpop.f32.mrb[107].mxu1 }
 0x1cf   : > { %v1985_v6 = vpop.f32.mrb[116].mxu0 }
 0x1d0   : > { %v2000_v14 = vadd.f32 %v1985_v6, %v1835_v49  ;;  %v3915_v38 = vpop.f32.mrb[117].mxu0 }
 0x1d1   : > { %v1988_v63 = vpop.f32.mrb[118].mxu0  ;;  %v2083_v40 = vpop.f32.mrb[108].mxu1 }
 0x1d2   : > { %v2001_v30 = vadd.f32 %v1988_v63, %v1836_v31  ;;  %v3916_v10 = vpop.f32.mrb[119].mxu0  ;;  %v2110_v60 = vadd.f32 %v2083_v40, %v1996_v42  ;;  %v3929_v26 = vpop.f32.mrb[109].mxu1 }
 0x1d3   : > { %v2086_v29 = vpop.f32.mrb[110].mxu1 }
 0x1d4   : > { %v2111_v41 = vadd.f32 %v2086_v29, %v1997_v19  ;;  %v3930_v20 = vpop.f32.mrb[111].mxu1 }
 0x1d7   : > { %v2235_v59 = vpop.f32.mrb[120].mxu0 }
 0x1d8   : > { %v2274_v1 = vadd.f32 %v2235_v59, %v2106_v56  ;;  %v3957_v44 = vpop.f32.mrb[121].mxu0 }
 0x1d9   : > { %v2238_v51 = vpop.f32.mrb[122].mxu0  ;;  %v2091_v17 = vpop.f32.mrb[112].mxu1 }
 0x1da   : > { %v2275_v3 = vadd.f32 %v2238_v51, %v2107_v15  ;;  %v3958_v48 = vpop.f32.mrb[123].mxu0  ;;  %v2112_v61 = vadd.f32 %v2091_v17, %v1998_v33  ;;  %v3933_v16 = vpop.f32.mrb[113].mxu1 }
 0x1db   : > { %v2094_v12 = vpop.f32.mrb[114].mxu1 }
 0x1dc   : > { %v2113_v28 = vadd.f32 %v2094_v12, %v1999_v21  ;;  %v3934_v34 = vpop.f32.mrb[115].mxu1 }
 0x1df   : > { %v2243_v8 = vpop.f32.mrb[124].mxu0 }
 0x1e0   : > { %v2276_v0 = vadd.f32 %v2243_v8, %v2108_v13  ;;  %v3961_v2 = vpop.f32.mrb[125].mxu0 }
 0x1e1   : > { %v2246_v35 = vpop.f32.mrb[126].mxu0  ;;  %v2099_v22 = vpop.f32.mrb[116].mxu1 }
 0x1e2   : > { %v2277_v32 = vadd.f32 %v2246_v35, %v2109_v43  ;;  %v3962_v47 = vpop.f32.mrb[127].mxu0  ;;  %v2114_v45 = vadd.f32 %v2099_v22, %v2000_v14  ;;  %v3937_v53 = vpop.f32.mrb[117].mxu1 }
 0x1e3   : > { %v2102_v24 = vpop.f32.mrb[118].mxu1 }
 0x1e4   : > { %v2115_v49 = vadd.f32 %v2102_v24, %v2001_v30  ;;  %v3938_v5 = vpop.f32.mrb[119].mxu1 }
 0x1e7   : > { %v2251_v55 = vpop.f32.mrb[128].mxu0 }
 0x1e8   : > { %v2278_v27 = vadd.f32 %v2251_v55, %v2110_v60  ;;  %v3965_v57 = vpop.f32.mrb[129].mxu0 }
 0x1e9   : > { %v2254_v31 = vpop.f32.mrb[130].mxu0  ;;  %v2353_v25 = vpop.f32.mrb[120].mxu1 }
 0x1ea   : > { %v2279_v50 = vadd.f32 %v2254_v31, %v2111_v41  ;;  %v3966_v42 = vpop.f32.mrb[131].mxu0  ;;  %v2392_v46 = vadd.f32 %v2353_v25, %v2274_v1  ;;  %v3979_v19 = vpop.f32.mrb[121].mxu1 }
 0x1eb   : > { %v2356_v62 = vpop.f32.mrb[122].mxu1 }
 0x1ec   : > { %v2393_v56 = vadd.f32 %v2356_v62, %v2275_v3  ;;  %v3980_v58 = vpop.f32.mrb[123].mxu1 }
 0x1ef   : > { %v2259_v39 = vpop.f32.mrb[132].mxu0 }
 0x1f0   : > { %v2280_v9 = vadd.f32 %v2259_v39, %v2112_v61  ;;  %v3969_v36 = vpop.f32.mrb[133].mxu0 }
 0x1f1   : > { %v2262_v15 = vpop.f32.mrb[134].mxu0  ;;  %v2361_v7 = vpop.f32.mrb[124].mxu1 }
 0x1f2   : > { %v2281_v11 = vadd.f32 %v2262_v15, %v2113_v28  ;;  %v3970_v33 = vpop.f32.mrb[135].mxu0  ;;  %v2394_v52 = vadd.f32 %v2361_v7, %v2276_v0  ;;  %v3983_v21 = vpop.f32.mrb[125].mxu1 }
 0x1f3   : > { %v2364_v23 = vpop.f32.mrb[126].mxu1 }
 0x1f4   : > { %v2395_v13 = vadd.f32 %v2364_v23, %v2277_v32  ;;  %v3984_v54 = vpop.f32.mrb[127].mxu1 }
 0x1f7   : > { %v2267_v37 = vpop.f32.mrb[136].mxu0 }
 0x1f8   : > { %v2282_v4 = vadd.f32 %v2267_v37, %v2114_v45  ;;  %v3973_v6 = vpop.f32.mrb[137].mxu0 }
 0x1f9   : > { %v2270_v43 = vpop.f32.mrb[138].mxu0  ;;  %v2369_v38 = vpop.f32.mrb[128].mxu1 }
 0x1fa   : > { %v2283_v18 = vadd.f32 %v2270_v43, %v2115_v49  ;;  %v3974_v14 = vpop.f32.mrb[139].mxu0  ;;  %v2396_v63 = vadd.f32 %v2369_v38, %v2278_v27  ;;  %v3987_v30 = vpop.f32.mrb[129].mxu1 }
 0x1fb   : > { %v2372_v10 = vpop.f32.mrb[130].mxu1 }
 0x1fc   : > { %v2397_v60 = vadd.f32 %v2372_v10, %v2279_v50  ;;  %v3988_v26 = vpop.f32.mrb[131].mxu1 }
 0x1ff   : > { %v2540_v40 = vpop.f32.mrb[140].mxu0 }
 0x200   : > { %v2579_v29 = vadd.f32 %v2540_v40, %v2392_v46  ;;  %v4015_v59 = vpop.f32.mrb[141].mxu0 }
 0x201   : > { %v2543_v41 = vpop.f32.mrb[142].mxu0  ;;  %v2377_v44 = vpop.f32.mrb[132].mxu1 }
 0x202   : > { %v2580_v20 = vadd.f32 %v2543_v41, %v2393_v56  ;;  %v4016_v1 = vpop.f32.mrb[143].mxu0  ;;  %v2398_v51 = vadd.f32 %v2377_v44, %v2280_v9  ;;  %v3991_v3 = vpop.f32.mrb[133].mxu1 }
 0x203   : > { %v2380_v48 = vpop.f32.mrb[134].mxu1 }
 0x204   : > { %v2399_v61 = vadd.f32 %v2380_v48, %v2281_v11  ;;  %v3992_v16 = vpop.f32.mrb[135].mxu1 }
 0x207   : > { %v2548_v17 = vpop.f32.mrb[144].mxu0 }
 0x208   : > { %v2581_v12 = vadd.f32 %v2548_v17, %v2394_v52  ;;  %v4019_v8 = vpop.f32.mrb[145].mxu0 }
 0x209   : > { %v2551_v28 = vpop.f32.mrb[146].mxu0  ;;  %v2385_v2 = vpop.f32.mrb[136].mxu1 }
 0x20a   : > { %v2582_v34 = vadd.f32 %v2551_v28, %v2395_v13  ;;  %v4020_v0 = vpop.f32.mrb[147].mxu0  ;;  %v2400_v35 = vadd.f32 %v2385_v2, %v2282_v4  ;;  %v3995_v32 = vpop.f32.mrb[137].mxu1 }
 0x20b   : > { %v2388_v47 = vpop.f32.mrb[138].mxu1 }
 0x20c   : > { %v2401_v45 = vadd.f32 %v2388_v47, %v2283_v18  ;;  %v3996_v53 = vpop.f32.mrb[139].mxu1 }
 0x20f   : > { %v2556_v22 = vpop.f32.mrb[148].mxu0 }
 0x210   : > { %v2583_v24 = vadd.f32 %v2556_v22, %v2396_v63  ;;  %v4023_v55 = vpop.f32.mrb[149].mxu0 }
 0x211   : > { %v2559_v49 = vpop.f32.mrb[150].mxu0  ;;  %v2676_v57 = vpop.f32.mrb[140].mxu1 }
 0x212   : > { %v2584_v5 = vadd.f32 %v2559_v49, %v2397_v60  ;;  %v4024_v27 = vpop.f32.mrb[151].mxu0  ;;  %v2715_v31 = vadd.f32 %v2676_v57, %v2579_v29  ;;  %v4037_v50 = vpop.f32.mrb[141].mxu1  ;;  %v5460_v49 = vld [vmem:[%s5497_s4] ss:$0 sm:$0xff] }
 0x213   : > { %v2679_v42 = vpop.f32.mrb[142].mxu1 }
 0x214   : > { %v2716_v46 = vadd.f32 %v2679_v42, %v2580_v20  ;;  %v4038_v19 = vpop.f32.mrb[143].mxu1 }
 0x217   : > { %v2564_v25 = vpop.f32.mrb[152].mxu0 }
 0x218   : > { %v2585_v62 = vadd.f32 %v2564_v25, %v2398_v51  ;;  %v4027_v39 = vpop.f32.mrb[153].mxu0 }
 0x219   : > { %v2567_v56 = vpop.f32.mrb[154].mxu0  ;;  %v2684_v36 = vpop.f32.mrb[144].mxu1 }
 0x21a   : > { %v2586_v58 = vadd.f32 %v2567_v56, %v2399_v61  ;;  %v4028_v9 = vpop.f32.mrb[155].mxu0  ;;  %v2717_v15 = vadd.f32 %v2684_v36, %v2581_v12  ;;  %v4041_v11 = vpop.f32.mrb[145].mxu1 }
 0x21b   : > { %v2687_v33 = vpop.f32.mrb[146].mxu1 }
 0x21c   : > { %v2718_v52 = vadd.f32 %v2687_v33, %v2582_v34  ;;  %v4042_v21 = vpop.f32.mrb[147].mxu1 }
 0x21f   : > { %v2572_v7 = vpop.f32.mrb[156].mxu0 }
 0x220   : > { %v2587_v23 = vadd.f32 %v2572_v7, %v2400_v35  ;;  %v4031_v37 = vpop.f32.mrb[157].mxu0 }
 0x221   : > { %v2575_v13 = vpop.f32.mrb[158].mxu0  ;;  %v2692_v6 = vpop.f32.mrb[148].mxu1 }
 0x222   : > { %v2588_v54 = vadd.f32 %v2575_v13, %v2401_v45  ;;  %v4032_v4 = vpop.f32.mrb[159].mxu0  ;;  %v2719_v43 = vadd.f32 %v2692_v6, %v2583_v24  ;;  %v4045_v18 = vpop.f32.mrb[149].mxu1 }
 0x223   : > { %v2695_v14 = vpop.f32.mrb[150].mxu1 }
 0x224   : > { %v2720_v63 = vadd.f32 %v2695_v14, %v2584_v5  ;;  %v4046_v30 = vpop.f32.mrb[151].mxu1 }
 0x227   : > { %v2841_v38 = vpop.f32.mrb[160].mxu0 }
 0x228   : > { %v5453_v10 = vadd.f32 %v2841_v38, %v2715_v31  ;;  %v4073_v40 = vpop.f32.mrb[161].mxu0 }
 0x229   : > { %v2844_v60 = vpop.f32.mrb[162].mxu0  ;;  %v2700_v59 = vpop.f32.mrb[152].mxu1 }
 0x22a   : > { %v5455_v26 = vadd.f32 %v2844_v60, %v2716_v46  ;;  %v4074_v29 = vpop.f32.mrb[163].mxu0  ;;  %v2721_v41 = vadd.f32 %v2700_v59, %v2585_v62  ;;  %v4049_v20 = vpop.f32.mrb[153].mxu1 }
 0x22b   : > { %v2703_v1 = vpop.f32.mrb[154].mxu1 }
 0x22c   : > { %v2722_v51 = vadd.f32 %v2703_v1, %v2586_v58  ;;  %v4050_v3 = vpop.f32.mrb[155].mxu1 }
 0x22f   : > { %v2849_v44 = vpop.f32.mrb[164].mxu0 }
 0x230   : > { %v2882_v48 = vadd.f32 %v2849_v44, %v2717_v15  ;;  %v4077_v17 = vpop.f32.mrb[165].mxu0 }
 0x231   : > { %v2852_v61 = vpop.f32.mrb[166].mxu0  ;;  %v2708_v8 = vpop.f32.mrb[156].mxu1 }
 0x232   : > { %v2883_v16 = vadd.f32 %v2852_v61, %v2718_v52  ;;  %v4078_v12 = vpop.f32.mrb[167].mxu0  ;;  %v2723_v28 = vadd.f32 %v2708_v8, %v2587_v23  ;;  %v4053_v34 = vpop.f32.mrb[157].mxu1 }
 0x233   : > { %v2711_v0 = vpop.f32.mrb[158].mxu1 }
 0x234   : > { %v2724_v35 = vadd.f32 %v2711_v0, %v2588_v54  ;;  %v4054_v32 = vpop.f32.mrb[159].mxu1 }
 0x237   : > { %v2857_v2 = vpop.f32.mrb[168].mxu0 }
 0x238   : > { %v2884_v47 = vadd.f32 %v2857_v2, %v2719_v43  ;;  %v4081_v22 = vpop.f32.mrb[169].mxu0 }
 0x239   : > { %v2860_v45 = vpop.f32.mrb[170].mxu0  ;;  %v2963_v55 = vpop.f32.mrb[160].mxu1 }
 0x23a   : > { %v2885_v53 = vadd.f32 %v2860_v45, %v2720_v63  ;;  %v4082_v24 = vpop.f32.mrb[171].mxu0  ;;  %v2996_v5 = vadd.f32 %v2963_v55, %v2882_v48  ;;  %v4099_v27 = vpop.f32.mrb[161].mxu1 }
 0x23b   : > { %v2966_v57 = vpop.f32.mrb[162].mxu1 }
 0x23c   : > { %v3013_v50 = vadd.f32 %v5460_v49, %v2996_v5  ;;  %v2997_v42 = vadd.f32 %v2966_v57, %v2883_v16  ;;  %v4100_v25 = vpop.f32.mrb[163].mxu1 }
 0x23e   : > { %vm3023_vm9 = vcmp.gt.f32.partialorder %v3013_v50, 0.0  ;;  %v3033_v62 = vmul.f32 0.01, %v3013_v50  ;;  %v3014_v56 = vadd.f32 %v5460_v49, %v2997_v42 }
 0x23f   : > { %v2865_v31 = vpop.f32.mrb[172].mxu0 }
 0x240   : > { %v2886_v46 = vadd.f32 %v2865_v31, %v2721_v41  ;;  %v4085_v19 = vpop.f32.mrb[173].mxu0  ;;  %v3043_v36 = vsel %vm3023_vm9, %v3013_v50, %v3033_v62  ;;  %vm3024_vm10 = vcmp.gt.f32.partialorder %v3014_v56, 0.0  ;;  %v3034_v15 = vmul.f32 0.01, %v3014_v56 }
 0x241   : > { %v2868_v39 = vpop.f32.mrb[174].mxu0  ;;  %3053 = vst [vmem:[%s5467_s21 + $0x10] sm:$0xff] %v3043_v36  ;;  %v2971_v11 = vpop.f32.mrb[164].mxu1 }
 0x242   : > { %v2887_v58 = vadd.f32 %v2868_v39, %v2722_v51  ;;  %v4086_v9 = vpop.f32.mrb[175].mxu0  ;;  %v3044_v33 = vsel %vm3024_vm10, %v3014_v56, %v3034_v15  ;;  %v2998_v7 = vadd.f32 %v2971_v11, %v2884_v47  ;;  %v4103_v52 = vpop.f32.mrb[165].mxu1 }
 0x243   : > { %3054 = vst [vmem:[%s5467_s21 + $0x18] sm:$0xff] %v3044_v33  ;;  %v2974_v21 = vpop.f32.mrb[166].mxu1 }
 0x244   : > { %v3015_v37 = vadd.f32 %v5460_v49, %v2998_v7  ;;  %v2999_v13 = vadd.f32 %v2974_v21, %v2885_v53  ;;  %v4104_v54 = vpop.f32.mrb[167].mxu1 }
 0x246   : > { %vm3025_vm11 = vcmp.gt.f32.partialorder %v3015_v37, 0.0  ;;  %v3035_v43 = vmul.f32 0.01, %v3015_v37  ;;  %v3016_v14 = vadd.f32 %v5460_v49, %v2999_v13 }
 0x247   : > { %v2873_v23 = vpop.f32.mrb[176].mxu0 }
 0x248   : > { %v2888_v4 = vadd.f32 %v2873_v23, %v2723_v28  ;;  %v4089_v6 = vpop.f32.mrb[177].mxu0  ;;  %v3045_v30 = vsel %vm3025_vm11, %v3015_v37, %v3035_v43  ;;  %vm3026_vm12 = vcmp.gt.f32.partialorder %v3016_v14, 0.0  ;;  %v3036_v40 = vmul.f32 0.01, %v3016_v14 }
 0x249   : > { %v2876_v18 = vpop.f32.mrb[178].mxu0  ;;  %3055 = vst [vmem:[%s5467_s21 + $0x20] sm:$0xff] %v3045_v30  ;;  %v2979_v60 = vpop.f32.mrb[168].mxu1 }
 0x24a   : > { %v2889_v38 = vadd.f32 %v2876_v18, %v2724_v35  ;;  %v4090_v63 = vpop.f32.mrb[179].mxu0  ;;  %v3046_v29 = vsel %vm3026_vm12, %v3016_v14, %v3036_v40  ;;  %v3000_v59 = vadd.f32 %v2979_v60, %v2886_v46  ;;  %v4107_v41 = vpop.f32.mrb[169].mxu1 }
 0x24b   : > { %3056 = vst [vmem:[%s5467_s21 + $0x28] sm:$0xff] %v3046_v29  ;;  %v2982_v20 = vpop.f32.mrb[170].mxu1 }
 0x24c   : > { %v3017_v44 = vadd.f32 %v5460_v49, %v3000_v59  ;;  %v3001_v51 = vadd.f32 %v2982_v20, %v2887_v58  ;;  %v4108_v3 = vpop.f32.mrb[171].mxu1 }
 0x24e   : > { %vm3027_vm13 = vcmp.gt.f32.partialorder %v3017_v44, 0.0  ;;  %v3037_v61 = vmul.f32 0.01, %v3017_v44  ;;  %v3018_v12 = vadd.f32 %v5460_v49, %v3001_v51 }
 0x24f   : > { %v2955_v1 = vpop.f32.mrb[180].mxu0 }
 0x250   : > { %v2994_v48 = vadd.f32 %v2955_v1, %v5453_v10  ;;  %v4095_v17 = vpop.f32.mrb[181].mxu0  ;;  %v3047_v0 = vsel %vm3027_vm13, %v3017_v44, %v3037_v61  ;;  %vm3028_vm14 = vcmp.gt.f32.partialorder %v3018_v12, 0.0  ;;  %v3038_v2 = vmul.f32 0.01, %v3018_v12 }
 0x251   : > { %v2958_v16 = vpop.f32.mrb[182].mxu0  ;;  %3057 = vst [vmem:[%s5467_s21 + $0x30] sm:$0xff] %v3047_v0  ;;  %v2987_v32 = vpop.f32.mrb[172].mxu1 }
 0x252   : > { %v3011_v8 = vadd.f32 %v5460_v49, %v2994_v48  ;;  %v2995_v28 = vadd.f32 %v2958_v16, %v5455_v26  ;;  %v4096_v34 = vpop.f32.mrb[183].mxu0  ;;  %v3048_v47 = vsel %vm3028_vm14, %v3018_v12, %v3038_v2  ;;  %v3002_v22 = vadd.f32 %v2987_v32, %v2888_v4  ;;  %v4111_v45 = vpop.f32.mrb[173].mxu1 }
 0x253   : > { %3058 = vst [vmem:[%s5467_s21 + $0x38] sm:$0xff] %v3048_v47  ;;  %v2990_v24 = vpop.f32.mrb[174].mxu1 }
 0x254   : > { %vm3021_vm15 = vcmp.gt.f32.partialorder %v3011_v8, 0.0  ;;  %v3031_v35 = vmul.f32 0.01, %v3011_v8  ;;  %v3012_v10 = vadd.f32 %v5460_v49, %v2995_v28  ;;  %v3019_v55 = vadd.f32 %v5460_v49, %v3002_v22  ;;  %v4112_v27 = vpop.f32.mrb[175].mxu1 }
 0x255   : > { %v3003_v5 = vadd.f32 %v2990_v24, %v2889_v38 }
 0x256   : > { %v3041_v53 = vsel %vm3021_vm15, %v3011_v8, %v3031_v35  ;;  %vm3022_vm0 = vcmp.gt.f32.partialorder %v3012_v10, 0.0  ;;  %v3032_v26 = vmul.f32 0.01, %v3012_v10  ;;  %vm3029_vm1 = vcmp.gt.f32.partialorder %v3019_v55, 0.0 }
 0x257   : > { %3051 = vst [vmem:[%s5467_s21] sm:$0xff] %v3041_v53  ;;  %v3039_v31 = vmul.f32 0.01, %v3019_v55  ;;  %v3020_v50 = vadd.f32 %v5460_v49, %v3003_v5 }
 0x258   : > { %v3042_v57 = vsel %vm3022_vm0, %v3012_v10, %v3032_v26 }
 0x259   : > { %3052 = vst [vmem:[%s5467_s21 + $0x8] sm:$0xff] %v3042_v57  ;;  %v3049_v42 = vsel %vm3029_vm1, %v3019_v55, %v3039_v31  ;;  %vm3030_vm2 = vcmp.gt.f32.partialorder %v3020_v50, 0.0  ;;  %v3040_v25 = vmul.f32 0.01, %v3020_v50 }
 0x25a   : > { %3059 = vst [vmem:[%s5467_s21 + $0x40] sm:$0xff] %v3049_v42 }
 0x25b   : > { %v3050_v46 = vsel %vm3030_vm2, %v3020_v50, %v3040_v25 }
 0x25c   : > { %3060 = vst [vmem:[%s5467_s21 + $0x48] sm:$0xff] %v3050_v46 }
 0x25d PF: > { %s15_s18 = sadd.s32 1, %s4233_s18  }
 0x25e   : > { %p12_p4 = scmp.ge.s32.totalorder %s15_s18, 4  }
 0x260   :  { %14 = sbr.rel (!%p12_p4) target bundleno = 1 (0x1), region = 89 }

</bundles_post_ra>
